<compile_context>
chip_gen: v7x
topology: tpu7x:2x2x1
jax: 0.10.0
libtpu: 0.0.40
codegen_flags: <defaults>
</compile_context>

<pallas_src>
import jax
import jax.numpy as jnp
from jax import lax
from jax.experimental import pallas as pl
from jax.experimental.pallas import tpu as pltpu


def _round_up(x, m):
    return ((x + m - 1) // m) * m


def _vmem_caps():
    """Returns (vmem_limit_bytes for pallas_call, tiling working-set budget)."""
    try:
        cap = int(getattr(pltpu.get_tpu_info(), "vmem_capacity_bytes", 0)) or (64 << 20)
    except Exception:
        cap = 64 << 20                      # conservative (v7x physical = 64 MiB)
    limit = max(32 << 20, min(cap - (24 << 20), 100 << 20))
    return limit, limit // 2


# ----------------------------------------------------------------------------
# Kernel 1: batched input-gate projection (both directions at once).
#   acc = sum_j x_j @ w_j + b      # (tile_m, 6H), f32 accumulation
#   gf  = acc[:, :3H]   (forward  r|z|n gates)   -> stored bf16
#   gb  = acc[:, 3H:]   (backward r|z|n gates)   -> stored bf16
# ----------------------------------------------------------------------------
def _make_proj_kernel(n_in, g_half):
    def kernel(*refs):
        x_refs = refs[:n_in]
        w_refs = refs[n_in:2 * n_in]
        b_ref = refs[2 * n_in]
        gf_ref = refs[2 * n_in + 1]
        gb_ref = refs[2 * n_in + 2]
        acc = jnp.dot(x_refs[0][...], w_refs[0][...],
                      preferred_element_type=jnp.float32)
        for j in range(1, n_in):
            acc = acc + jnp.dot(x_refs[j][...], w_refs[j][...],
                                preferred_element_type=jnp.float32)
        acc = acc + b_ref[...]
        gf_ref[...] = acc[:, :g_half].astype(gf_ref.dtype)
        gb_ref[...] = acc[:, g_half:].astype(gb_ref.dtype)
    return kernel


def input_projection(xs, ws, b, *, tile_m=512, vmem_limit=48 << 20):
    """xs: list of (M, K_j) bf16; ws: list of (K_j, 6H) bf16; b: (1, 6H) f32.
    Returns (gx_fwd, gx_bwd), each (M, 3H) bf16."""
    M = xs[0].shape[0]
    N = ws[0].shape[1]
    g_half = N // 2
    n_in = len(xs)
    tile_m = min(tile_m, M)                 # M = T*B is always a multiple of 8
    Mp = _round_up(M, tile_m)               # pad rows instead of shrinking tile
    if Mp != M:
        xs = [jnp.pad(x, ((0, Mp - M), (0, 0))) for x in xs]
    grid = (Mp // tile_m,)

    in_specs = [pl.BlockSpec((tile_m, x.shape[1]), lambda i: (i, 0)) for x in xs]
    in_specs += [pl.BlockSpec((w.shape[0], N), lambda i: (0, 0)) for w in ws]
    in_specs.append(pl.BlockSpec((1, N), lambda i: (0, 0)))
    out_specs = (pl.BlockSpec((tile_m, g_half), lambda i: (i, 0)),
                 pl.BlockSpec((tile_m, g_half), lambda i: (i, 0)))

    flops = 2 * Mp * N * sum(x.shape[1] for x in xs)
    bytes_accessed = (sum(Mp * x.shape[1] * 2 for x in xs)
                      + sum(w.shape[0] * N * 2 for w in ws)
                      + Mp * N * 2)

    gx_f, gx_b = pl.pallas_call(
        _make_proj_kernel(n_in, g_half),
        out_shape=(jax.ShapeDtypeStruct((Mp, g_half), jnp.bfloat16),
                   jax.ShapeDtypeStruct((Mp, g_half), jnp.bfloat16)),
        grid=grid,
        in_specs=in_specs,
        out_specs=out_specs,
        compiler_params=pltpu.CompilerParams(
            dimension_semantics=("parallel",),
            vmem_limit_bytes=vmem_limit),
        cost_estimate=pl.CostEstimate(flops=flops, transcendentals=0,
                                      bytes_accessed=bytes_accessed),
    )(*xs, *ws, b)
    if Mp != M:
        gx_f, gx_b = gx_f[:M], gx_b[:M]
    return gx_f, gx_b


# ----------------------------------------------------------------------------
# Kernel 2: bidirectional GRU recurrence, streamed over time.
#   layout is time-major-flat: row t*B + b  <->  (time t, batch b)
#   fwd processes block i in time order; bwd processes block nblk-1-i in
#   reverse, so both recurrences advance one timestep per loop iteration.
# ----------------------------------------------------------------------------
def _make_bigru_kernel(tile_t, B, H, unroll):
    def kernel(gxf_ref, gxb_ref, whh_ref, bhnf_ref, bhnb_ref,
               outf_ref, outb_ref, h_scr):
        @pl.when(pl.program_id(0) == 0)
        def _init():
            h_scr[...] = jnp.zeros_like(h_scr)   # h0 = 0 (PyTorch default)

        # Bias broadcasts hoisted: once per grid step, not per timestep.
        bhn_f = jnp.broadcast_to(bhnf_ref[...], (B, H))
        bhn_b = jnp.broadcast_to(bhnb_ref[...], (B, H))

        def gates(gx, gh, h, bhn):
            # gx already contains W_i* x_t + b_i* (+ b_hr / b_hz folded in).
            r = jax.nn.sigmoid(gx[:, 0:H] + gh[:, 0:H])
            z = jax.nn.sigmoid(gx[:, H:2 * H] + gh[:, H:2 * H])
            n = jnp.tanh(gx[:, 2 * H:3 * H] + r * (gh[:, 2 * H:3 * H] + bhn))
            return n + z * (h - n)               # == (1 - z) * n + z * h

        def step(t, hcat):
            rf = pl.multiple_of(t * B, B)                   # fwd local time t
            rb = pl.multiple_of((tile_t - 1 - t) * B, B)    # bwd local time tile_t-1-t
            # ONE fused hidden matmul per step for BOTH directions:
            #   [h_f; h_b] (2B,H) @ [Whh_f | Whh_b] (H,6H).
            # The weight stays a Ref and is indexed next to the dot (not held
            # live in vregs across the unrolled loop).
            gh = jnp.dot(hcat.astype(jnp.bfloat16), whh_ref[...],
                         preferred_element_type=jnp.float32)        # (2B, 6H)
            h_f = gates(gxf_ref[pl.ds(rf, B), :].astype(jnp.float32),
                        gh[:B, 0:3 * H], hcat[:B], bhn_f)
            h_b = gates(gxb_ref[pl.ds(rb, B), :].astype(jnp.float32),
                        gh[B:, 3 * H:6 * H], hcat[B:], bhn_b)
            outf_ref[pl.ds(rf, B), :] = h_f.astype(outf_ref.dtype)
            outb_ref[pl.ds(rb, B), :] = h_b.astype(outb_ref.dtype)
            return jnp.concatenate([h_f, h_b], axis=0)

        # Hidden state is carried in the loop; scratch only bridges grid steps.
        h_scr[...] = lax.fori_loop(0, tile_t, step, h_scr[...], unroll=unroll)
    return kernel


def _choose_time_tile(T, B, H, budget_bytes):
    # per timestep (double-buffered, bf16): gx_f+gx_b (3H each) + out_f+out_b (H each)
    per_t = 2 * 2 * B * (3 * H + H) * 2
    resident = 2 * (H * 6 * H) * 2 + 2 * B * H * 4 + (1 << 20)
    cap = max(1, (budget_bytes - resident) // per_t)
    tile_t = min(T, cap)
    if tile_t > 8:
        tile_t = min(cap, _round_up(tile_t, 8))   # keep unroll=8 friendly
    return max(1, tile_t)


def bigru_recurrence(gx_f, gx_b, whh_cat, bhn_f, bhn_b, *, seq_len, batch,
                     vmem_limit, vmem_budget):
    T, B = seq_len, batch
    H = whh_cat.shape[0]
    G = 3 * H
    tile_t = _choose_time_tile(T, B, H, vmem_budget)
    Tp = _round_up(T, tile_t)
    pad_t = Tp - T
    if pad_t:
        pr = pad_t * B
        gx_f = jnp.pad(gx_f, ((0, pr), (0, 0)))   # fwd: pad at END of time
        gx_b = jnp.pad(gx_b, ((pr, 0), (0, 0)))   # bwd: pad at START (reverse chain
                                                  # still begins at real t = T-1)
    nblk = Tp // tile_t
    rows = tile_t * B
    Mp = Tp * B

    if tile_t <= 8:
        unroll = True
    elif tile_t % 8 == 0:
        unroll = 8
    elif tile_t % 4 == 0:
        unroll = 4
    else:
        unroll = 2 if tile_t % 2 == 0 else 1

    flops = 2 * Tp * (2 * B) * H * (6 * H)
    transcendentals = 2 * Tp * B * 3 * H
    bytes_accessed = 2 * Mp * G * 2 + 2 * Mp * H * 2 + nblk * H * 6 * H * 2

    out_f, out_b = pl.pallas_call(
        _make_bigru_kernel(tile_t, B, H, unroll),
        out_shape=(jax.ShapeDtypeStruct((Mp, H), jnp.bfloat16),
                   jax.ShapeDtypeStruct((Mp, H), jnp.bfloat16)),
        grid=(nblk,),
        in_specs=[
            pl.BlockSpec((rows, G), lambda i: (i, 0)),               # gx fwd (time order)
            pl.BlockSpec((rows, G), lambda i: (nblk - 1 - i, 0)),    # gx bwd (reverse)
            pl.BlockSpec((H, 6 * H), lambda i: (0, 0)),              # [Whh_f | Whh_b]
            pl.BlockSpec((1, H), lambda i: (0, 0)),                  # b_hn fwd
            pl.BlockSpec((1, H), lambda i: (0, 0)),                  # b_hn bwd
        ],
        out_specs=(
            pl.BlockSpec((rows, H), lambda i: (i, 0)),               # out fwd
            pl.BlockSpec((rows, H), lambda i: (nblk - 1 - i, 0)),    # out bwd (reverse)
        ),
        scratch_shapes=[pltpu.VMEM((2 * B, H), jnp.float32)],        # [h_f; h_b] carry
        compiler_params=pltpu.CompilerParams(
            dimension_semantics=("arbitrary",),
            vmem_limit_bytes=vmem_limit),
        cost_estimate=pl.CostEstimate(flops=flops, transcendentals=transcendentals,
                                      bytes_accessed=bytes_accessed),
    )(gx_f, gx_b, whh_cat, bhn_f, bhn_b)
    if pad_t:
        out_f = out_f[:T * B]
        out_b = out_b[pad_t * B:]
    return out_f, out_b


# ----------------------------------------------------------------------------
# Parameters: U(-1/sqrt(H), 1/sqrt(H)) like nn.GRU.reset_parameters, repacked
# into the fused layouts the kernels want (gate order r, z, n as in PyTorch).
# ----------------------------------------------------------------------------
def init_gru_params(key, n_embed, hidden, n_layers):
    H = hidden
    assert H % 128 == 0, "hidden size must be a multiple of 128 for lane-dense kernels"
    k = float(H) ** -0.5
    params = []
    for layer in range(n_layers):
        in_size = n_embed if layer == 0 else 2 * H
        packs = []
        for _ in range(2):                               # forward, backward
            key, k1, k2, k3, k4 = jax.random.split(key, 5)
            w_ih = jax.random.uniform(k1, (3 * H, in_size), jnp.float32, -k, k)
            w_hh = jax.random.uniform(k2, (3 * H, H), jnp.float32, -k, k)
            b_ih = jax.random.uniform(k3, (3 * H,), jnp.float32, -k, k)
            b_hh = jax.random.uniform(k4, (3 * H,), jnp.float32, -k, k)
            # fold b_ih and the r/z parts of b_hh into the projection bias;
            # only b_hn must stay separate (gated by r inside the cell).
            b_proj = b_ih + jnp.concatenate(
                [b_hh[:2 * H], jnp.zeros((H,), jnp.float32)])
            packs.append((w_ih.T, w_hh.T, b_proj, b_hh[2 * H:].reshape(1, H)))
        (wih_f, whh_f, bpf, bhn_f), (wih_b, whh_b, bpb, bhn_b) = packs
        w_cat = jnp.concatenate([wih_f, wih_b], axis=1)  # (in, 6H) = [fwd 3H | bwd 3H]
        if layer == 0:
            w_proj = [w_cat.astype(jnp.bfloat16)]
        else:
            # layer l>0 input is [fwd_out | bwd_out]; split rows so the next
            # projection consumes the two halves without a concat round-trip.
            w_proj = [w_cat[:H].astype(jnp.bfloat16), w_cat[H:].astype(jnp.bfloat16)]
        params.append(dict(
            w_proj=w_proj,
            b_proj=jnp.concatenate([bpf, bpb]).reshape(1, 6 * H),
            whh_cat=jnp.concatenate([whh_f, whh_b], axis=1).astype(jnp.bfloat16),
            bhn_f=bhn_f,
            bhn_b=bhn_b,
        ))
    return params


# ----------------------------------------------------------------------------
# Forward pass (equivalent of StackedGRUEncoder.forward for 3-D inputs).
# ----------------------------------------------------------------------------
def stacked_gru_encoder(xs_e, xs_mask, params):
    """xs_e: (B, T, n_embed) f32, xs_mask: (B, T) f32. Returns (B, T, 2*H) f32."""
    B0, T, E = xs_e.shape
    B = _round_up(B0, 8)                         # pad batch to a sublane multiple
    if B != B0:
        xs_e = jnp.pad(xs_e, ((0, B - B0), (0, 0), (0, 0)))
    # time-major, flattened (T*B, E), pre-cast to bf16 (matmul operand dtype).
    x = jnp.transpose(xs_e, (1, 0, 2)).reshape(T * B, E).astype(jnp.bfloat16)
    vmem_limit, vmem_budget = _vmem_caps()
    chunks = [x]
    for lp in params:
        gx_f, gx_b = input_projection(chunks, lp["w_proj"], lp["b_proj"],
                                      vmem_limit=vmem_limit)
        out_f, out_b = bigru_recurrence(
            gx_f, gx_b, lp["whh_cat"], lp["bhn_f"], lp["bhn_b"],
            seq_len=T, batch=B, vmem_limit=vmem_limit, vmem_budget=vmem_budget)
        chunks = [out_f, out_b]
        # TODO(synk): inter-layer dropout (p=0.3) omitted — inference/eval semantics.
    H = params[-1]["bhn_f"].shape[1]
    out = jnp.concatenate(chunks, axis=-1).reshape(T, B, 2 * H)
    out = jnp.transpose(out, (1, 0, 2))[:B0].astype(jnp.float32)     # (B0, T, 2H)
    # Mask multiply stays in plain JAX (XLA fuses it with the transpose/slice),
    # matching the module: output * xs_mask[:, :, None].
    return out * xs_mask[:, :, None].astype(jnp.float32)


# ----------------------------------------------------------------------------
# Main
# ----------------------------------------------------------------------------
if __name__ == "__main__":
    # Small but lane/sublane-friendly shapes (H, E multiples of 128; B padded to 8).
    B, T, E, H = 4, 8, 128, 128
    n_layers = 2

    key = jax.random.PRNGKey(0)
    k_x, k_p = jax.random.split(key)

    # 3-D input path of the module: xs is already an embedded sequence.
    # TODO(synk): nn.Embedding (2-D token-id) input path not implemented here.
    xs_e = jax.random.normal(k_x, (B, T, E), dtype=jnp.float32)
    xs_mask = jnp.ones((B, T), dtype=jnp.float32).at[1, -2:].set(0.0)

    params = init_gru_params(k_p, E, H, n_layers)

    out = jax.jit(stacked_gru_encoder)(xs_e, xs_mask, params)
    out = jax.block_until_ready(out)
    assert out.shape == (B, T, 2 * H)
    assert bool(jnp.isfinite(out).all())
    print("KERNEL_OK")
</pallas_src>

<mosaic_0001>
module attributes {stable_mosaic.version = 11 : i64} {
  func.func @kernel(%arg0: i32, %arg1: memref<64x128xbf16, #tpu.memory_space<vmem>>, %arg2: memref<128x768xbf16, #tpu.memory_space<vmem>>, %arg3: memref<1x768xf32, #tpu.memory_space<vmem>>, %arg4: memref<64x384xbf16, #tpu.memory_space<vmem>>, %arg5: memref<64x384xbf16, #tpu.memory_space<vmem>>) attributes {dimension_semantics = [#tpu.dimension_semantics<parallel>], iteration_bounds = array<i64: 1>, scalar_prefetch = 0 : i64, scratch_operands = 0 : i64, tpu.core_type = #tpu.core_type<tc>, window_params = [{transform_indices = @transform_0, window_bounds = array<i64: 64, 128>}, {pipeline_mode = #tpu.pipeline_mode<synchronous>, transform_indices = @transform_1, window_bounds = array<i64: 128, 768>}, {pipeline_mode = #tpu.pipeline_mode<synchronous>, transform_indices = @transform_2, window_bounds = array<i64: 1, 768>}, {transform_indices = @transform_3, window_bounds = array<i64: 64, 384>}, {transform_indices = @transform_4, window_bounds = array<i64: 64, 384>}]} {
    %c0 = arith.constant 0 : index
    %c0_0 = arith.constant 0 : index
    %0 = vector.load %arg1[%c0, %c0_0] : memref<64x128xbf16, #tpu.memory_space<vmem>>, vector<64x128xbf16>
    %c0_1 = arith.constant 0 : index
    %c0_2 = arith.constant 0 : index
    %1 = vector.load %arg2[%c0_1, %c0_2] : memref<128x768xbf16, #tpu.memory_space<vmem>>, vector<128x768xbf16>
    %cst = arith.constant dense<0.000000e+00> : vector<64x768xf32>
    %2 = tpu.matmul %0, %1, %cst {dimension_numbers = #tpu.dot_dimension_numbers<[1], [0], [0], [1], [0, 0, 1, 1], [], []>} : vector<64x128xbf16>, vector<128x768xbf16>, vector<64x768xf32> -> vector<64x768xf32>
    %c0_3 = arith.constant 0 : index
    %c0_4 = arith.constant 0 : index
    %3 = vector.load %arg3[%c0_3, %c0_4] : memref<1x768xf32, #tpu.memory_space<vmem>>, vector<1x768xf32>
    %4 = vector.broadcast %3 : vector<1x768xf32> to vector<64x768xf32>
    %5 = arith.addf %2, %4 : vector<64x768xf32>
    %6 = vector.extract_strided_slice %5 {offsets = [0, 0], sizes = [64, 384], strides = [1, 1]} : vector<64x768xf32> to vector<64x384xf32>
    %7 = arith.truncf %6 : vector<64x384xf32> to vector<64x384xbf16>
    %c0_5 = arith.constant 0 : index
    %c0_6 = arith.constant 0 : index
    %8 = vector.load %arg4[%c0_5, %c0_6] : memref<64x384xbf16, #tpu.memory_space<vmem>>, vector<64x384xbf16>
    tpu.vector_store %arg4[%c0_5, %c0_6], %7 {strides = array<i32>} : memref<64x384xbf16, #tpu.memory_space<vmem>>, vector<64x384xbf16>,
    %9 = vector.extract_strided_slice %5 {offsets = [0, 384], sizes = [64, 384], strides = [1, 1]} : vector<64x768xf32> to vector<64x384xf32>
    %10 = arith.truncf %9 : vector<64x384xf32> to vector<64x384xbf16>
    %c0_7 = arith.constant 0 : index
    %c0_8 = arith.constant 0 : index
    %11 = vector.load %arg5[%c0_7, %c0_8] : memref<64x384xbf16, #tpu.memory_space<vmem>>, vector<64x384xbf16>
    tpu.vector_store %arg5[%c0_7, %c0_8], %10 {strides = array<i32>} : memref<64x384xbf16, #tpu.memory_space<vmem>>, vector<64x384xbf16>,
    return
  }
  func.func @transform_0(%arg0: i32) -> (i32, i32) {
    %c0_i32 = arith.constant 0 : i32
    %c0_i32_0 = arith.constant 0 : i32
    return %arg0, %c0_i32 : i32, i32
  }
  func.func @transform_1(%arg0: i32) -> (i32, i32) {
    %c0_i32 = arith.constant 0 : i32
    %c0_i32_0 = arith.constant 0 : i32
    %c0_i32_1 = arith.constant 0 : i32
    return %c0_i32, %c0_i32_0 : i32, i32
  }
  func.func @transform_2(%arg0: i32) -> (i32, i32) {
    %c0_i32 = arith.constant 0 : i32
    %c0_i32_0 = arith.constant 0 : i32
    %c0_i32_1 = arith.constant 0 : i32
    return %c0_i32, %c0_i32_0 : i32, i32
  }
  func.func @transform_3(%arg0: i32) -> (i32, i32) {
    %c0_i32 = arith.constant 0 : i32
    %c0_i32_0 = arith.constant 0 : i32
    return %arg0, %c0_i32 : i32, i32
  }
  func.func @transform_4(%arg0: i32) -> (i32, i32) {
    %c0_i32 = arith.constant 0 : i32
    %c0_i32_0 = arith.constant 0 : i32
    return %arg0, %c0_i32 : i32, i32
  }
}

module attributes {stable_mosaic.version = 11 : i64} {
  func.func @kernel(%arg0: i32, %arg1: memref<64x384xbf16, #tpu.memory_space<vmem>>, %arg2: memref<64x384xbf16, #tpu.memory_space<vmem>>, %arg3: memref<128x768xbf16, #tpu.memory_space<vmem>>, %arg4: memref<1x128xf32, #tpu.memory_space<vmem>>, %arg5: memref<1x128xf32, #tpu.memory_space<vmem>>, %arg6: memref<64x128xbf16, #tpu.memory_space<vmem>>, %arg7: memref<64x128xbf16, #tpu.memory_space<vmem>>, %arg8: memref<16x128xf32, #tpu.memory_space<vmem>>) attributes {dimension_semantics = [#tpu.dimension_semantics<arbitrary>], iteration_bounds = array<i64: 1>, scalar_prefetch = 0 : i64, scratch_operands = 1 : i64, tpu.core_type = #tpu.core_type<tc>, window_params = [{transform_indices = @transform_0, window_bounds = array<i64: 64, 384>}, {transform_indices = @transform_1, window_bounds = array<i64: 64, 384>}, {pipeline_mode = #tpu.pipeline_mode<synchronous>, transform_indices = @transform_2, window_bounds = array<i64: 128, 768>}, {pipeline_mode = #tpu.pipeline_mode<synchronous>, transform_indices = @transform_3, window_bounds = array<i64: 1, 128>}, {pipeline_mode = #tpu.pipeline_mode<synchronous>, transform_indices = @transform_4, window_bounds = array<i64: 1, 128>}, {transform_indices = @transform_5, window_bounds = array<i64: 64, 128>}, {transform_indices = @transform_6, window_bounds = array<i64: 64, 128>}]} {
    %c0_i32 = arith.constant 0 : i32
    %0 = arith.cmpi eq, %arg0, %c0_i32 : i32
    %1 = arith.extui %0 : i1 to i32
    %c0_i32_0 = arith.constant 0 : i32
    %2 = arith.cmpi ne, %1, %c0_i32_0 : i32
    scf.if %2 {
      %cst_120 = arith.constant 0.000000e+00 : f32
      %611 = vector.broadcast %cst_120 : f32 to vector<16x128xf32>
      %c0_121 = arith.constant 0 : index
      %c0_122 = arith.constant 0 : index
      %612 = vector.load %arg8[%c0_121, %c0_122] : memref<16x128xf32, #tpu.memory_space<vmem>>, vector<16x128xf32>
      tpu.vector_store %arg8[%c0_121, %c0_122], %611 {strides = array<i32>} : memref<16x128xf32, #tpu.memory_space<vmem>>, vector<16x128xf32>,
    } else {
    }
    %c0 = arith.constant 0 : index
    %c0_1 = arith.constant 0 : index
    %3 = vector.load %arg4[%c0, %c0_1] : memref<1x128xf32, #tpu.memory_space<vmem>>, vector<1x128xf32>
    %4 = vector.shape_cast %3 : vector<1x128xf32> to vector<1x128xf32>
    %5 = vector.broadcast %4 : vector<1x128xf32> to vector<8x128xf32>
    %c0_2 = arith.constant 0 : index
    %c0_3 = arith.constant 0 : index
    %6 = vector.load %arg5[%c0_2, %c0_3] : memref<1x128xf32, #tpu.memory_space<vmem>>, vector<1x128xf32>
    %7 = vector.shape_cast %6 : vector<1x128xf32> to vector<1x128xf32>
    %8 = vector.broadcast %7 : vector<1x128xf32> to vector<8x128xf32>
    %c0_4 = arith.constant 0 : index
    %c0_5 = arith.constant 0 : index
    %9 = vector.load %arg8[%c0_4, %c0_5] : memref<16x128xf32, #tpu.memory_space<vmem>>, vector<16x128xf32>
    %c0_i32_6 = arith.constant 0 : i32
    %c8_i32 = arith.constant 8 : i32
    %10 = arith.muli %c0_i32_6, %c8_i32 : i32
    %11 = tpu.assume_multiple %10, 8 : i32
    %c7_i32 = arith.constant 7 : i32
    %12 = arith.subi %c7_i32, %c0_i32_6 : i32
    %c8_i32_7 = arith.constant 8 : i32
    %13 = arith.muli %12, %c8_i32_7 : i32
    %14 = tpu.assume_multiple %13, 8 : i32
    %15 = arith.truncf %9 : vector<16x128xf32> to vector<16x128xbf16>
    %c0_8 = arith.constant 0 : index
    %c0_9 = arith.constant 0 : index
    %16 = vector.load %arg3[%c0_8, %c0_9] : memref<128x768xbf16, #tpu.memory_space<vmem>>, vector<128x768xbf16>
    %cst = arith.constant dense<0.000000e+00> : vector<16x768xf32>
    %17 = tpu.matmul %15, %16, %cst {dimension_numbers = #tpu.dot_dimension_numbers<[1], [0], [0], [1], [0, 0, 1, 1], [], []>} : vector<16x128xbf16>, vector<128x768xbf16>, vector<16x768xf32> -> vector<16x768xf32>
    %18 = arith.index_cast %11 : i32 to index
    %c0_10 = arith.constant 0 : index
    %19 = vector.load %arg1[%18, %c0_10] : memref<64x384xbf16, #tpu.memory_space<vmem>>, vector<8x384xbf16>
    %20 = arith.extf %19 : vector<8x384xbf16> to vector<8x384xf32>
    %21 = vector.extract_strided_slice %17 {offsets = [0, 0], sizes = [8, 384], strides = [1, 1]} : vector<16x768xf32> to vector<8x384xf32>
    %22 = vector.extract_strided_slice %9 {offsets = [0, 0], sizes = [8, 128], strides = [1, 1]} : vector<16x128xf32> to vector<8x128xf32>
    %23 = vector.extract_strided_slice %20 {offsets = [0, 0], sizes = [8, 128], strides = [1, 1]} : vector<8x384xf32> to vector<8x128xf32>
    %24 = vector.extract_strided_slice %21 {offsets = [0, 0], sizes = [8, 128], strides = [1, 1]} : vector<8x384xf32> to vector<8x128xf32>
    %25 = arith.addf %23, %24 : vector<8x128xf32>
    %26 = arith.negf %25 : vector<8x128xf32>
    %27 = math.exp %26 : vector<8x128xf32>
    %cst_11 = arith.constant 1.000000e+00 : f32
    %28 = vector.broadcast %cst_11 : f32 to vector<8x128xf32>
    %29 = arith.addf %28, %27 : vector<8x128xf32>
    %30 = arith.divf %28, %29 : vector<8x128xf32>
    %31 = vector.extract_strided_slice %20 {offsets = [0, 128], sizes = [8, 128], strides = [1, 1]} : vector<8x384xf32> to vector<8x128xf32>
    %32 = vector.extract_strided_slice %21 {offsets = [0, 128], sizes = [8, 128], strides = [1, 1]} : vector<8x384xf32> to vector<8x128xf32>
    %33 = arith.addf %31, %32 : vector<8x128xf32>
    %34 = arith.negf %33 : vector<8x128xf32>
    %35 = math.exp %34 : vector<8x128xf32>
    %cst_12 = arith.constant 1.000000e+00 : f32
    %36 = vector.broadcast %cst_12 : f32 to vector<8x128xf32>
    %37 = arith.addf %36, %35 : vector<8x128xf32>
    %38 = arith.divf %36, %37 : vector<8x128xf32>
    %39 = vector.extract_strided_slice %20 {offsets = [0, 256], sizes = [8, 128], strides = [1, 1]} : vector<8x384xf32> to vector<8x128xf32>
    %40 = vector.extract_strided_slice %21 {offsets = [0, 256], sizes = [8, 128], strides = [1, 1]} : vector<8x384xf32> to vector<8x128xf32>
    %41 = arith.addf %40, %5 : vector<8x128xf32>
    %42 = arith.mulf %30, %41 : vector<8x128xf32>
    %43 = arith.addf %39, %42 : vector<8x128xf32>
    %44 = math.tanh %43 : vector<8x128xf32>
    %45 = arith.subf %22, %44 : vector<8x128xf32>
    %46 = arith.mulf %38, %45 : vector<8x128xf32>
    %47 = arith.addf %44, %46 : vector<8x128xf32>
    %48 = arith.index_cast %14 : i32 to index
    %c0_13 = arith.constant 0 : index
    %49 = vector.load %arg2[%48, %c0_13] : memref<64x384xbf16, #tpu.memory_space<vmem>>, vector<8x384xbf16>
    %50 = arith.extf %49 : vector<8x384xbf16> to vector<8x384xf32>
    %51 = vector.extract_strided_slice %17 {offsets = [8, 384], sizes = [8, 384], strides = [1, 1]} : vector<16x768xf32> to vector<8x384xf32>
    %52 = vector.extract_strided_slice %9 {offsets = [8, 0], sizes = [8, 128], strides = [1, 1]} : vector<16x128xf32> to vector<8x128xf32>
    %53 = vector.extract_strided_slice %50 {offsets = [0, 0], sizes = [8, 128], strides = [1, 1]} : vector<8x384xf32> to vector<8x128xf32>
    %54 = vector.extract_strided_slice %51 {offsets = [0, 0], sizes = [8, 128], strides = [1, 1]} : vector<8x384xf32> to vector<8x128xf32>
    %55 = arith.addf %53, %54 : vector<8x128xf32>
    %56 = arith.negf %55 : vector<8x128xf32>
    %57 = math.exp %56 : vector<8x128xf32>
    %cst_14 = arith.constant 1.000000e+00 : f32
    %58 = vector.broadcast %cst_14 : f32 to vector<8x128xf32>
    %59 = arith.addf %58, %57 : vector<8x128xf32>
    %60 = arith.divf %58, %59 : vector<8x128xf32>
    %61 = vector.extract_strided_slice %50 {offsets = [0, 128], sizes = [8, 128], strides = [1, 1]} : vector<8x384xf32> to vector<8x128xf32>
    %62 = vector.extract_strided_slice %51 {offsets = [0, 128], sizes = [8, 128], strides = [1, 1]} : vector<8x384xf32> to vector<8x128xf32>
    %63 = arith.addf %61, %62 : vector<8x128xf32>
    %64 = arith.negf %63 : vector<8x128xf32>
    %65 = math.exp %64 : vector<8x128xf32>
    %cst_15 = arith.constant 1.000000e+00 : f32
    %66 = vector.broadcast %cst_15 : f32 to vector<8x128xf32>
    %67 = arith.addf %66, %65 : vector<8x128xf32>
    %68 = arith.divf %66, %67 : vector<8x128xf32>
    %69 = vector.extract_strided_slice %50 {offsets = [0, 256], sizes = [8, 128], strides = [1, 1]} : vector<8x384xf32> to vector<8x128xf32>
    %70 = vector.extract_strided_slice %51 {offsets = [0, 256], sizes = [8, 128], strides = [1, 1]} : vector<8x384xf32> to vector<8x128xf32>
    %71 = arith.addf %70, %8 : vector<8x128xf32>
    %72 = arith.mulf %60, %71 : vector<8x128xf32>
    %73 = arith.addf %69, %72 : vector<8x128xf32>
    %74 = math.tanh %73 : vector<8x128xf32>
    %75 = arith.subf %52, %74 : vector<8x128xf32>
    %76 = arith.mulf %68, %75 : vector<8x128xf32>
    %77 = arith.addf %74, %76 : vector<8x128xf32>
    %78 = arith.truncf %47 : vector<8x128xf32> to vector<8x128xbf16>
    %79 = arith.index_cast %11 : i32 to index
    %c0_16 = arith.constant 0 : index
    %80 = vector.load %arg6[%79, %c0_16] : memref<64x128xbf16, #tpu.memory_space<vmem>>, vector<8x128xbf16>
    tpu.vector_store %arg6[%79, %c0_16], %78 {strides = array<i32>} : memref<64x128xbf16, #tpu.memory_space<vmem>>, vector<8x128xbf16>,
    %81 = arith.truncf %77 : vector<8x128xf32> to vector<8x128xbf16>
    %82 = arith.index_cast %14 : i32 to index
    %c0_17 = arith.constant 0 : index
    %83 = vector.load %arg7[%82, %c0_17] : memref<64x128xbf16, #tpu.memory_space<vmem>>, vector<8x128xbf16>
    tpu.vector_store %arg7[%82, %c0_17], %81 {strides = array<i32>} : memref<64x128xbf16, #tpu.memory_space<vmem>>, vector<8x128xbf16>,
    %84 = tpu.concatenate %47, %77 in 0 : vector<8x128xf32>, vector<8x128xf32> -> vector<16x128xf32>
    %c1_i32 = arith.constant 1 : i32
    %c8_i32_18 = arith.constant 8 : i32
    %85 = arith.muli %c1_i32, %c8_i32_18 : i32
    %86 = tpu.assume_multiple %85, 8 : i32
    %c7_i32_19 = arith.constant 7 : i32
    %87 = arith.subi %c7_i32_19, %c1_i32 : i32
    %c8_i32_20 = arith.constant 8 : i32
    %88 = arith.muli %87, %c8_i32_20 : i32
    %89 = tpu.assume_multiple %88, 8 : i32
    %90 = arith.truncf %84 : vector<16x128xf32> to vector<16x128xbf16>
    %c0_21 = arith.constant 0 : index
    %c0_22 = arith.constant 0 : index
    %91 = vector.load %arg3[%c0_21, %c0_22] : memref<128x768xbf16, #tpu.memory_space<vmem>>, vector<128x768xbf16>
    %cst_23 = arith.constant dense<0.000000e+00> : vector<16x768xf32>
    %92 = tpu.matmul %90, %91, %cst_23 {dimension_numbers = #tpu.dot_dimension_numbers<[1], [0], [0], [1], [0, 0, 1, 1], [], []>} : vector<16x128xbf16>, vector<128x768xbf16>, vector<16x768xf32> -> vector<16x768xf32>
    %93 = arith.index_cast %86 : i32 to index
    %c0_24 = arith.constant 0 : index
    %94 = vector.load %arg1[%93, %c0_24] : memref<64x384xbf16, #tpu.memory_space<vmem>>, vector<8x384xbf16>
    %95 = arith.extf %94 : vector<8x384xbf16> to vector<8x384xf32>
    %96 = vector.extract_strided_slice %92 {offsets = [0, 0], sizes = [8, 384], strides = [1, 1]} : vector<16x768xf32> to vector<8x384xf32>
    %97 = vector.extract_strided_slice %84 {offsets = [0, 0], sizes = [8, 128], strides = [1, 1]} : vector<16x128xf32> to vector<8x128xf32>
    %98 = vector.extract_strided_slice %95 {offsets = [0, 0], sizes = [8, 128], strides = [1, 1]} : vector<8x384xf32> to vector<8x128xf32>
    %99 = vector.extract_strided_slice %96 {offsets = [0, 0], sizes = [8, 128], strides = [1, 1]} : vector<8x384xf32> to vector<8x128xf32>
    %100 = arith.addf %98, %99 : vector<8x128xf32>
    %101 = arith.negf %100 : vector<8x128xf32>
    %102 = math.exp %101 : vector<8x128xf32>
    %cst_25 = arith.constant 1.000000e+00 : f32
    %103 = vector.broadcast %cst_25 : f32 to vector<8x128xf32>
    %104 = arith.addf %103, %102 : vector<8x128xf32>
    %105 = arith.divf %103, %104 : vector<8x128xf32>
    %106 = vector.extract_strided_slice %95 {offsets = [0, 128], sizes = [8, 128], strides = [1, 1]} : vector<8x384xf32> to vector<8x128xf32>
    %107 = vector.extract_strided_slice %96 {offsets = [0, 128], sizes = [8, 128], strides = [1, 1]} : vector<8x384xf32> to vector<8x128xf32>
    %108 = arith.addf %106, %107 : vector<8x128xf32>
    %109 = arith.negf %108 : vector<8x128xf32>
    %110 = math.exp %109 : vector<8x128xf32>
    %cst_26 = arith.constant 1.000000e+00 : f32
    %111 = vector.broadcast %cst_26 : f32 to vector<8x128xf32>
    %112 = arith.addf %111, %110 : vector<8x128xf32>
    %113 = arith.divf %111, %112 : vector<8x128xf32>
    %114 = vector.extract_strided_slice %95 {offsets = [0, 256], sizes = [8, 128], strides = [1, 1]} : vector<8x384xf32> to vector<8x128xf32>
    %115 = vector.extract_strided_slice %96 {offsets = [0, 256], sizes = [8, 128], strides = [1, 1]} : vector<8x384xf32> to vector<8x128xf32>
    %116 = arith.addf %115, %5 : vector<8x128xf32>
    %117 = arith.mulf %105, %116 : vector<8x128xf32>
    %118 = arith.addf %114, %117 : vector<8x128xf32>
    %119 = math.tanh %118 : vector<8x128xf32>
    %120 = arith.subf %97, %119 : vector<8x128xf32>
    %121 = arith.mulf %113, %120 : vector<8x128xf32>
    %122 = arith.addf %119, %121 : vector<8x128xf32>
    %123 = arith.index_cast %89 : i32 to index
    %c0_27 = arith.constant 0 : index
    %124 = vector.load %arg2[%123, %c0_27] : memref<64x384xbf16, #tpu.memory_space<vmem>>, vector<8x384xbf16>
    %125 = arith.extf %124 : vector<8x384xbf16> to vector<8x384xf32>
    %126 = vector.extract_strided_slice %92 {offsets = [8, 384], sizes = [8, 384], strides = [1, 1]} : vector<16x768xf32> to vector<8x384xf32>
    %127 = vector.extract_strided_slice %84 {offsets = [8, 0], sizes = [8, 128], strides = [1, 1]} : vector<16x128xf32> to vector<8x128xf32>
    %128 = vector.extract_strided_slice %125 {offsets = [0, 0], sizes = [8, 128], strides = [1, 1]} : vector<8x384xf32> to vector<8x128xf32>
    %129 = vector.extract_strided_slice %126 {offsets = [0, 0], sizes = [8, 128], strides = [1, 1]} : vector<8x384xf32> to vector<8x128xf32>
    %130 = arith.addf %128, %129 : vector<8x128xf32>
    %131 = arith.negf %130 : vector<8x128xf32>
    %132 = math.exp %131 : vector<8x128xf32>
    %cst_28 = arith.constant 1.000000e+00 : f32
    %133 = vector.broadcast %cst_28 : f32 to vector<8x128xf32>
    %134 = arith.addf %133, %132 : vector<8x128xf32>
    %135 = arith.divf %133, %134 : vector<8x128xf32>
    %136 = vector.extract_strided_slice %125 {offsets = [0, 128], sizes = [8, 128], strides = [1, 1]} : vector<8x384xf32> to vector<8x128xf32>
    %137 = vector.extract_strided_slice %126 {offsets = [0, 128], sizes = [8, 128], strides = [1, 1]} : vector<8x384xf32> to vector<8x128xf32>
    %138 = arith.addf %136, %137 : vector<8x128xf32>
    %139 = arith.negf %138 : vector<8x128xf32>
    %140 = math.exp %139 : vector<8x128xf32>
    %cst_29 = arith.constant 1.000000e+00 : f32
    %141 = vector.broadcast %cst_29 : f32 to vector<8x128xf32>
    %142 = arith.addf %141, %140 : vector<8x128xf32>
    %143 = arith.divf %141, %142 : vector<8x128xf32>
    %144 = vector.extract_strided_slice %125 {offsets = [0, 256], sizes = [8, 128], strides = [1, 1]} : vector<8x384xf32> to vector<8x128xf32>
    %145 = vector.extract_strided_slice %126 {offsets = [0, 256], sizes = [8, 128], strides = [1, 1]} : vector<8x384xf32> to vector<8x128xf32>
    %146 = arith.addf %145, %8 : vector<8x128xf32>
    %147 = arith.mulf %135, %146 : vector<8x128xf32>
    %148 = arith.addf %144, %147 : vector<8x128xf32>
    %149 = math.tanh %148 : vector<8x128xf32>
    %150 = arith.subf %127, %149 : vector<8x128xf32>
    %151 = arith.mulf %143, %150 : vector<8x128xf32>
    %152 = arith.addf %149, %151 : vector<8x128xf32>
    %153 = arith.truncf %122 : vector<8x128xf32> to vector<8x128xbf16>
    %154 = arith.index_cast %86 : i32 to index
    %c0_30 = arith.constant 0 : index
    %155 = vector.load %arg6[%154, %c0_30] : memref<64x128xbf16, #tpu.memory_space<vmem>>, vector<8x128xbf16>
    tpu.vector_store %arg6[%154, %c0_30], %153 {strides = array<i32>} : memref<64x128xbf16, #tpu.memory_space<vmem>>, vector<8x128xbf16>,
    %156 = arith.truncf %152 : vector<8x128xf32> to vector<8x128xbf16>
    %157 = arith.index_cast %89 : i32 to index
    %c0_31 = arith.constant 0 : index
    %158 = vector.load %arg7[%157, %c0_31] : memref<64x128xbf16, #tpu.memory_space<vmem>>, vector<8x128xbf16>
    tpu.vector_store %arg7[%157, %c0_31], %156 {strides = array<i32>} : memref<64x128xbf16, #tpu.memory_space<vmem>>, vector<8x128xbf16>,
    %159 = tpu.concatenate %122, %152 in 0 : vector<8x128xf32>, vector<8x128xf32> -> vector<16x128xf32>
    %c2_i32 = arith.constant 2 : i32
    %c8_i32_32 = arith.constant 8 : i32
    %160 = arith.muli %c2_i32, %c8_i32_32 : i32
    %161 = tpu.assume_multiple %160, 8 : i32
    %c7_i32_33 = arith.constant 7 : i32
    %162 = arith.subi %c7_i32_33, %c2_i32 : i32
    %c8_i32_34 = arith.constant 8 : i32
    %163 = arith.muli %162, %c8_i32_34 : i32
    %164 = tpu.assume_multiple %163, 8 : i32
    %165 = arith.truncf %159 : vector<16x128xf32> to vector<16x128xbf16>
    %c0_35 = arith.constant 0 : index
    %c0_36 = arith.constant 0 : index
    %166 = vector.load %arg3[%c0_35, %c0_36] : memref<128x768xbf16, #tpu.memory_space<vmem>>, vector<128x768xbf16>
    %cst_37 = arith.constant dense<0.000000e+00> : vector<16x768xf32>
    %167 = tpu.matmul %165, %166, %cst_37 {dimension_numbers = #tpu.dot_dimension_numbers<[1], [0], [0], [1], [0, 0, 1, 1], [], []>} : vector<16x128xbf16>, vector<128x768xbf16>, vector<16x768xf32> -> vector<16x768xf32>
    %168 = arith.index_cast %161 : i32 to index
    %c0_38 = arith.constant 0 : index
    %169 = vector.load %arg1[%168, %c0_38] : memref<64x384xbf16, #tpu.memory_space<vmem>>, vector<8x384xbf16>
    %170 = arith.extf %169 : vector<8x384xbf16> to vector<8x384xf32>
    %171 = vector.extract_strided_slice %167 {offsets = [0, 0], sizes = [8, 384], strides = [1, 1]} : vector<16x768xf32> to vector<8x384xf32>
    %172 = vector.extract_strided_slice %159 {offsets = [0, 0], sizes = [8, 128], strides = [1, 1]} : vector<16x128xf32> to vector<8x128xf32>
    %173 = vector.extract_strided_slice %170 {offsets = [0, 0], sizes = [8, 128], strides = [1, 1]} : vector<8x384xf32> to vector<8x128xf32>
    %174 = vector.extract_strided_slice %171 {offsets = [0, 0], sizes = [8, 128], strides = [1, 1]} : vector<8x384xf32> to vector<8x128xf32>
    %175 = arith.addf %173, %174 : vector<8x128xf32>
    %176 = arith.negf %175 : vector<8x128xf32>
    %177 = math.exp %176 : vector<8x128xf32>
    %cst_39 = arith.constant 1.000000e+00 : f32
    %178 = vector.broadcast %cst_39 : f32 to vector<8x128xf32>
    %179 = arith.addf %178, %177 : vector<8x128xf32>
    %180 = arith.divf %178, %179 : vector<8x128xf32>
    %181 = vector.extract_strided_slice %170 {offsets = [0, 128], sizes = [8, 128], strides = [1, 1]} : vector<8x384xf32> to vector<8x128xf32>
    %182 = vector.extract_strided_slice %171 {offsets = [0, 128], sizes = [8, 128], strides = [1, 1]} : vector<8x384xf32> to vector<8x128xf32>
    %183 = arith.addf %181, %182 : vector<8x128xf32>
    %184 = arith.negf %183 : vector<8x128xf32>
    %185 = math.exp %184 : vector<8x128xf32>
    %cst_40 = arith.constant 1.000000e+00 : f32
    %186 = vector.broadcast %cst_40 : f32 to vector<8x128xf32>
    %187 = arith.addf %186, %185 : vector<8x128xf32>
    %188 = arith.divf %186, %187 : vector<8x128xf32>
    %189 = vector.extract_strided_slice %170 {offsets = [0, 256], sizes = [8, 128], strides = [1, 1]} : vector<8x384xf32> to vector<8x128xf32>
    %190 = vector.extract_strided_slice %171 {offsets = [0, 256], sizes = [8, 128], strides = [1, 1]} : vector<8x384xf32> to vector<8x128xf32>
    %191 = arith.addf %190, %5 : vector<8x128xf32>
    %192 = arith.mulf %180, %191 : vector<8x128xf32>
    %193 = arith.addf %189, %192 : vector<8x128xf32>
    %194 = math.tanh %193 : vector<8x128xf32>
    %195 = arith.subf %172, %194 : vector<8x128xf32>
    %196 = arith.mulf %188, %195 : vector<8x128xf32>
    %197 = arith.addf %194, %196 : vector<8x128xf32>
    %198 = arith.index_cast %164 : i32 to index
    %c0_41 = arith.constant 0 : index
    %199 = vector.load %arg2[%198, %c0_41] : memref<64x384xbf16, #tpu.memory_space<vmem>>, vector<8x384xbf16>
    %200 = arith.extf %199 : vector<8x384xbf16> to vector<8x384xf32>
    %201 = vector.extract_strided_slice %167 {offsets = [8, 384], sizes = [8, 384], strides = [1, 1]} : vector<16x768xf32> to vector<8x384xf32>
    %202 = vector.extract_strided_slice %159 {offsets = [8, 0], sizes = [8, 128], strides = [1, 1]} : vector<16x128xf32> to vector<8x128xf32>
    %203 = vector.extract_strided_slice %200 {offsets = [0, 0], sizes = [8, 128], strides = [1, 1]} : vector<8x384xf32> to vector<8x128xf32>
    %204 = vector.extract_strided_slice %201 {offsets = [0, 0], sizes = [8, 128], strides = [1, 1]} : vector<8x384xf32> to vector<8x128xf32>
    %205 = arith.addf %203, %204 : vector<8x128xf32>
    %206 = arith.negf %205 : vector<8x128xf32>
    %207 = math.exp %206 : vector<8x128xf32>
    %cst_42 = arith.constant 1.000000e+00 : f32
    %208 = vector.broadcast %cst_42 : f32 to vector<8x128xf32>
    %209 = arith.addf %208, %207 : vector<8x128xf32>
    %210 = arith.divf %208, %209 : vector<8x128xf32>
    %211 = vector.extract_strided_slice %200 {offsets = [0, 128], sizes = [8, 128], strides = [1, 1]} : vector<8x384xf32> to vector<8x128xf32>
    %212 = vector.extract_strided_slice %201 {offsets = [0, 128], sizes = [8, 128], strides = [1, 1]} : vector<8x384xf32> to vector<8x128xf32>
    %213 = arith.addf %211, %212 : vector<8x128xf32>
    %214 = arith.negf %213 : vector<8x128xf32>
    %215 = math.exp %214 : vector<8x128xf32>
    %cst_43 = arith.constant 1.000000e+00 : f32
    %216 = vector.broadcast %cst_43 : f32 to vector<8x128xf32>
    %217 = arith.addf %216, %215 : vector<8x128xf32>
    %218 = arith.divf %216, %217 : vector<8x128xf32>
    %219 = vector.extract_strided_slice %200 {offsets = [0, 256], sizes = [8, 128], strides = [1, 1]} : vector<8x384xf32> to vector<8x128xf32>
    %220 = vector.extract_strided_slice %201 {offsets = [0, 256], sizes = [8, 128], strides = [1, 1]} : vector<8x384xf32> to vector<8x128xf32>
    %221 = arith.addf %220, %8 : vector<8x128xf32>
    %222 = arith.mulf %210, %221 : vector<8x128xf32>
    %223 = arith.addf %219, %222 : vector<8x128xf32>
    %224 = math.tanh %223 : vector<8x128xf32>
    %225 = arith.subf %202, %224 : vector<8x128xf32>
    %226 = arith.mulf %218, %225 : vector<8x128xf32>
    %227 = arith.addf %224, %226 : vector<8x128xf32>
    %228 = arith.truncf %197 : vector<8x128xf32> to vector<8x128xbf16>
    %229 = arith.index_cast %161 : i32 to index
    %c0_44 = arith.constant 0 : index
    %230 = vector.load %arg6[%229, %c0_44] : memref<64x128xbf16, #tpu.memory_space<vmem>>, vector<8x128xbf16>
    tpu.vector_store %arg6[%229, %c0_44], %228 {strides = array<i32>} : memref<64x128xbf16, #tpu.memory_space<vmem>>, vector<8x128xbf16>,
    %231 = arith.truncf %227 : vector<8x128xf32> to vector<8x128xbf16>
    %232 = arith.index_cast %164 : i32 to index
    %c0_45 = arith.constant 0 : index
    %233 = vector.load %arg7[%232, %c0_45] : memref<64x128xbf16, #tpu.memory_space<vmem>>, vector<8x128xbf16>
    tpu.vector_store %arg7[%232, %c0_45], %231 {strides = array<i32>} : memref<64x128xbf16, #tpu.memory_space<vmem>>, vector<8x128xbf16>,
    %234 = tpu.concatenate %197, %227 in 0 : vector<8x128xf32>, vector<8x128xf32> -> vector<16x128xf32>
    %c3_i32 = arith.constant 3 : i32
    %c8_i32_46 = arith.constant 8 : i32
    %235 = arith.muli %c3_i32, %c8_i32_46 : i32
    %236 = tpu.assume_multiple %235, 8 : i32
    %c7_i32_47 = arith.constant 7 : i32
    %237 = arith.subi %c7_i32_47, %c3_i32 : i32
    %c8_i32_48 = arith.constant 8 : i32
    %238 = arith.muli %237, %c8_i32_48 : i32
    %239 = tpu.assume_multiple %238, 8 : i32
    %240 = arith.truncf %234 : vector<16x128xf32> to vector<16x128xbf16>
    %c0_49 = arith.constant 0 : index
    %c0_50 = arith.constant 0 : index
    %241 = vector.load %arg3[%c0_49, %c0_50] : memref<128x768xbf16, #tpu.memory_space<vmem>>, vector<128x768xbf16>
    %cst_51 = arith.constant dense<0.000000e+00> : vector<16x768xf32>
    %242 = tpu.matmul %240, %241, %cst_51 {dimension_numbers = #tpu.dot_dimension_numbers<[1], [0], [0], [1], [0, 0, 1, 1], [], []>} : vector<16x128xbf16>, vector<128x768xbf16>, vector<16x768xf32> -> vector<16x768xf32>
    %243 = arith.index_cast %236 : i32 to index
    %c0_52 = arith.constant 0 : index
    %244 = vector.load %arg1[%243, %c0_52] : memref<64x384xbf16, #tpu.memory_space<vmem>>, vector<8x384xbf16>
    %245 = arith.extf %244 : vector<8x384xbf16> to vector<8x384xf32>
    %246 = vector.extract_strided_slice %242 {offsets = [0, 0], sizes = [8, 384], strides = [1, 1]} : vector<16x768xf32> to vector<8x384xf32>
    %247 = vector.extract_strided_slice %234 {offsets = [0, 0], sizes = [8, 128], strides = [1, 1]} : vector<16x128xf32> to vector<8x128xf32>
    %248 = vector.extract_strided_slice %245 {offsets = [0, 0], sizes = [8, 128], strides = [1, 1]} : vector<8x384xf32> to vector<8x128xf32>
    %249 = vector.extract_strided_slice %246 {offsets = [0, 0], sizes = [8, 128], strides = [1, 1]} : vector<8x384xf32> to vector<8x128xf32>
    %250 = arith.addf %248, %249 : vector<8x128xf32>
    %251 = arith.negf %250 : vector<8x128xf32>
    %252 = math.exp %251 : vector<8x128xf32>
    %cst_53 = arith.constant 1.000000e+00 : f32
    %253 = vector.broadcast %cst_53 : f32 to vector<8x128xf32>
    %254 = arith.addf %253, %252 : vector<8x128xf32>
    %255 = arith.divf %253, %254 : vector<8x128xf32>
    %256 = vector.extract_strided_slice %245 {offsets = [0, 128], sizes = [8, 128], strides = [1, 1]} : vector<8x384xf32> to vector<8x128xf32>
    %257 = vector.extract_strided_slice %246 {offsets = [0, 128], sizes = [8, 128], strides = [1, 1]} : vector<8x384xf32> to vector<8x128xf32>
    %258 = arith.addf %256, %257 : vector<8x128xf32>
    %259 = arith.negf %258 : vector<8x128xf32>
    %260 = math.exp %259 : vector<8x128xf32>
    %cst_54 = arith.constant 1.000000e+00 : f32
    %261 = vector.broadcast %cst_54 : f32 to vector<8x128xf32>
    %262 = arith.addf %261, %260 : vector<8x128xf32>
    %263 = arith.divf %261, %262 : vector<8x128xf32>
    %264 = vector.extract_strided_slice %245 {offsets = [0, 256], sizes = [8, 128], strides = [1, 1]} : vector<8x384xf32> to vector<8x128xf32>
    %265 = vector.extract_strided_slice %246 {offsets = [0, 256], sizes = [8, 128], strides = [1, 1]} : vector<8x384xf32> to vector<8x128xf32>
    %266 = arith.addf %265, %5 : vector<8x128xf32>
    %267 = arith.mulf %255, %266 : vector<8x128xf32>
    %268 = arith.addf %264, %267 : vector<8x128xf32>
    %269 = math.tanh %268 : vector<8x128xf32>
    %270 = arith.subf %247, %269 : vector<8x128xf32>
    %271 = arith.mulf %263, %270 : vector<8x128xf32>
    %272 = arith.addf %269, %271 : vector<8x128xf32>
    %273 = arith.index_cast %239 : i32 to index
    %c0_55 = arith.constant 0 : index
    %274 = vector.load %arg2[%273, %c0_55] : memref<64x384xbf16, #tpu.memory_space<vmem>>, vector<8x384xbf16>
    %275 = arith.extf %274 : vector<8x384xbf16> to vector<8x384xf32>
    %276 = vector.extract_strided_slice %242 {offsets = [8, 384], sizes = [8, 384], strides = [1, 1]} : vector<16x768xf32> to vector<8x384xf32>
    %277 = vector.extract_strided_slice %234 {offsets = [8, 0], sizes = [8, 128], strides = [1, 1]} : vector<16x128xf32> to vector<8x128xf32>
    %278 = vector.extract_strided_slice %275 {offsets = [0, 0], sizes = [8, 128], strides = [1, 1]} : vector<8x384xf32> to vector<8x128xf32>
    %279 = vector.extract_strided_slice %276 {offsets = [0, 0], sizes = [8, 128], strides = [1, 1]} : vector<8x384xf32> to vector<8x128xf32>
    %280 = arith.addf %278, %279 : vector<8x128xf32>
    %281 = arith.negf %280 : vector<8x128xf32>
    %282 = math.exp %281 : vector<8x128xf32>
    %cst_56 = arith.constant 1.000000e+00 : f32
    %283 = vector.broadcast %cst_56 : f32 to vector<8x128xf32>
    %284 = arith.addf %283, %282 : vector<8x128xf32>
    %285 = arith.divf %283, %284 : vector<8x128xf32>
    %286 = vector.extract_strided_slice %275 {offsets = [0, 128], sizes = [8, 128], strides = [1, 1]} : vector<8x384xf32> to vector<8x128xf32>
    %287 = vector.extract_strided_slice %276 {offsets = [0, 128], sizes = [8, 128], strides = [1, 1]} : vector<8x384xf32> to vector<8x128xf32>
    %288 = arith.addf %286, %287 : vector<8x128xf32>
    %289 = arith.negf %288 : vector<8x128xf32>
    %290 = math.exp %289 : vector<8x128xf32>
    %cst_57 = arith.constant 1.000000e+00 : f32
    %291 = vector.broadcast %cst_57 : f32 to vector<8x128xf32>
    %292 = arith.addf %291, %290 : vector<8x128xf32>
    %293 = arith.divf %291, %292 : vector<8x128xf32>
    %294 = vector.extract_strided_slice %275 {offsets = [0, 256], sizes = [8, 128], strides = [1, 1]} : vector<8x384xf32> to vector<8x128xf32>
    %295 = vector.extract_strided_slice %276 {offsets = [0, 256], sizes = [8, 128], strides = [1, 1]} : vector<8x384xf32> to vector<8x128xf32>
    %296 = arith.addf %295, %8 : vector<8x128xf32>
    %297 = arith.mulf %285, %296 : vector<8x128xf32>
    %298 = arith.addf %294, %297 : vector<8x128xf32>
    %299 = math.tanh %298 : vector<8x128xf32>
    %300 = arith.subf %277, %299 : vector<8x128xf32>
    %301 = arith.mulf %293, %300 : vector<8x128xf32>
    %302 = arith.addf %299, %301 : vector<8x128xf32>
    %303 = arith.truncf %272 : vector<8x128xf32> to vector<8x128xbf16>
    %304 = arith.index_cast %236 : i32 to index
    %c0_58 = arith.constant 0 : index
    %305 = vector.load %arg6[%304, %c0_58] : memref<64x128xbf16, #tpu.memory_space<vmem>>, vector<8x128xbf16>
    tpu.vector_store %arg6[%304, %c0_58], %303 {strides = array<i32>} : memref<64x128xbf16, #tpu.memory_space<vmem>>, vector<8x128xbf16>,
    %306 = arith.truncf %302 : vector<8x128xf32> to vector<8x128xbf16>
    %307 = arith.index_cast %239 : i32 to index
    %c0_59 = arith.constant 0 : index
    %308 = vector.load %arg7[%307, %c0_59] : memref<64x128xbf16, #tpu.memory_space<vmem>>, vector<8x128xbf16>
    tpu.vector_store %arg7[%307, %c0_59], %306 {strides = array<i32>} : memref<64x128xbf16, #tpu.memory_space<vmem>>, vector<8x128xbf16>,
    %309 = tpu.concatenate %272, %302 in 0 : vector<8x128xf32>, vector<8x128xf32> -> vector<16x128xf32>
    %c4_i32 = arith.constant 4 : i32
    %c8_i32_60 = arith.constant 8 : i32
    %310 = arith.muli %c4_i32, %c8_i32_60 : i32
    %311 = tpu.assume_multiple %310, 8 : i32
    %c7_i32_61 = arith.constant 7 : i32
    %312 = arith.subi %c7_i32_61, %c4_i32 : i32
    %c8_i32_62 = arith.constant 8 : i32
    %313 = arith.muli %312, %c8_i32_62 : i32
    %314 = tpu.assume_multiple %313, 8 : i32
    %315 = arith.truncf %309 : vector<16x128xf32> to vector<16x128xbf16>
    %c0_63 = arith.constant 0 : index
    %c0_64 = arith.constant 0 : index
    %316 = vector.load %arg3[%c0_63, %c0_64] : memref<128x768xbf16, #tpu.memory_space<vmem>>, vector<128x768xbf16>
    %cst_65 = arith.constant dense<0.000000e+00> : vector<16x768xf32>
    %317 = tpu.matmul %315, %316, %cst_65 {dimension_numbers = #tpu.dot_dimension_numbers<[1], [0], [0], [1], [0, 0, 1, 1], [], []>} : vector<16x128xbf16>, vector<128x768xbf16>, vector<16x768xf32> -> vector<16x768xf32>
    %318 = arith.index_cast %311 : i32 to index
    %c0_66 = arith.constant 0 : index
    %319 = vector.load %arg1[%318, %c0_66] : memref<64x384xbf16, #tpu.memory_space<vmem>>, vector<8x384xbf16>
    %320 = arith.extf %319 : vector<8x384xbf16> to vector<8x384xf32>
    %321 = vector.extract_strided_slice %317 {offsets = [0, 0], sizes = [8, 384], strides = [1, 1]} : vector<16x768xf32> to vector<8x384xf32>
    %322 = vector.extract_strided_slice %309 {offsets = [0, 0], sizes = [8, 128], strides = [1, 1]} : vector<16x128xf32> to vector<8x128xf32>
    %323 = vector.extract_strided_slice %320 {offsets = [0, 0], sizes = [8, 128], strides = [1, 1]} : vector<8x384xf32> to vector<8x128xf32>
    %324 = vector.extract_strided_slice %321 {offsets = [0, 0], sizes = [8, 128], strides = [1, 1]} : vector<8x384xf32> to vector<8x128xf32>
    %325 = arith.addf %323, %324 : vector<8x128xf32>
    %326 = arith.negf %325 : vector<8x128xf32>
    %327 = math.exp %326 : vector<8x128xf32>
    %cst_67 = arith.constant 1.000000e+00 : f32
    %328 = vector.broadcast %cst_67 : f32 to vector<8x128xf32>
    %329 = arith.addf %328, %327 : vector<8x128xf32>
    %330 = arith.divf %328, %329 : vector<8x128xf32>
    %331 = vector.extract_strided_slice %320 {offsets = [0, 128], sizes = [8, 128], strides = [1, 1]} : vector<8x384xf32> to vector<8x128xf32>
    %332 = vector.extract_strided_slice %321 {offsets = [0, 128], sizes = [8, 128], strides = [1, 1]} : vector<8x384xf32> to vector<8x128xf32>
    %333 = arith.addf %331, %332 : vector<8x128xf32>
    %334 = arith.negf %333 : vector<8x128xf32>
    %335 = math.exp %334 : vector<8x128xf32>
    %cst_68 = arith.constant 1.000000e+00 : f32
    %336 = vector.broadcast %cst_68 : f32 to vector<8x128xf32>
    %337 = arith.addf %336, %335 : vector<8x128xf32>
    %338 = arith.divf %336, %337 : vector<8x128xf32>
    %339 = vector.extract_strided_slice %320 {offsets = [0, 256], sizes = [8, 128], strides = [1, 1]} : vector<8x384xf32> to vector<8x128xf32>
    %340 = vector.extract_strided_slice %321 {offsets = [0, 256], sizes = [8, 128], strides = [1, 1]} : vector<8x384xf32> to vector<8x128xf32>
    %341 = arith.addf %340, %5 : vector<8x128xf32>
    %342 = arith.mulf %330, %341 : vector<8x128xf32>
    %343 = arith.addf %339, %342 : vector<8x128xf32>
    %344 = math.tanh %343 : vector<8x128xf32>
    %345 = arith.subf %322, %344 : vector<8x128xf32>
    %346 = arith.mulf %338, %345 : vector<8x128xf32>
    %347 = arith.addf %344, %346 : vector<8x128xf32>
    %348 = arith.index_cast %314 : i32 to index
    %c0_69 = arith.constant 0 : index
    %349 = vector.load %arg2[%348, %c0_69] : memref<64x384xbf16, #tpu.memory_space<vmem>>, vector<8x384xbf16>
    %350 = arith.extf %349 : vector<8x384xbf16> to vector<8x384xf32>
    %351 = vector.extract_strided_slice %317 {offsets = [8, 384], sizes = [8, 384], strides = [1, 1]} : vector<16x768xf32> to vector<8x384xf32>
    %352 = vector.extract_strided_slice %309 {offsets = [8, 0], sizes = [8, 128], strides = [1, 1]} : vector<16x128xf32> to vector<8x128xf32>
    %353 = vector.extract_strided_slice %350 {offsets = [0, 0], sizes = [8, 128], strides = [1, 1]} : vector<8x384xf32> to vector<8x128xf32>
    %354 = vector.extract_strided_slice %351 {offsets = [0, 0], sizes = [8, 128], strides = [1, 1]} : vector<8x384xf32> to vector<8x128xf32>
    %355 = arith.addf %353, %354 : vector<8x128xf32>
    %356 = arith.negf %355 : vector<8x128xf32>
    %357 = math.exp %356 : vector<8x128xf32>
    %cst_70 = arith.constant 1.000000e+00 : f32
    %358 = vector.broadcast %cst_70 : f32 to vector<8x128xf32>
    %359 = arith.addf %358, %357 : vector<8x128xf32>
    %360 = arith.divf %358, %359 : vector<8x128xf32>
    %361 = vector.extract_strided_slice %350 {offsets = [0, 128], sizes = [8, 128], strides = [1, 1]} : vector<8x384xf32> to vector<8x128xf32>
    %362 = vector.extract_strided_slice %351 {offsets = [0, 128], sizes = [8, 128], strides = [1, 1]} : vector<8x384xf32> to vector<8x128xf32>
    %363 = arith.addf %361, %362 : vector<8x128xf32>
    %364 = arith.negf %363 : vector<8x128xf32>
    %365 = math.exp %364 : vector<8x128xf32>
    %cst_71 = arith.constant 1.000000e+00 : f32
    %366 = vector.broadcast %cst_71 : f32 to vector<8x128xf32>
    %367 = arith.addf %366, %365 : vector<8x128xf32>
    %368 = arith.divf %366, %367 : vector<8x128xf32>
    %369 = vector.extract_strided_slice %350 {offsets = [0, 256], sizes = [8, 128], strides = [1, 1]} : vector<8x384xf32> to vector<8x128xf32>
    %370 = vector.extract_strided_slice %351 {offsets = [0, 256], sizes = [8, 128], strides = [1, 1]} : vector<8x384xf32> to vector<8x128xf32>
    %371 = arith.addf %370, %8 : vector<8x128xf32>
    %372 = arith.mulf %360, %371 : vector<8x128xf32>
    %373 = arith.addf %369, %372 : vector<8x128xf32>
    %374 = math.tanh %373 : vector<8x128xf32>
    %375 = arith.subf %352, %374 : vector<8x128xf32>
    %376 = arith.mulf %368, %375 : vector<8x128xf32>
    %377 = arith.addf %374, %376 : vector<8x128xf32>
    %378 = arith.truncf %347 : vector<8x128xf32> to vector<8x128xbf16>
    %379 = arith.index_cast %311 : i32 to index
    %c0_72 = arith.constant 0 : index
    %380 = vector.load %arg6[%379, %c0_72] : memref<64x128xbf16, #tpu.memory_space<vmem>>, vector<8x128xbf16>
    tpu.vector_store %arg6[%379, %c0_72], %378 {strides = array<i32>} : memref<64x128xbf16, #tpu.memory_space<vmem>>, vector<8x128xbf16>,
    %381 = arith.truncf %377 : vector<8x128xf32> to vector<8x128xbf16>
    %382 = arith.index_cast %314 : i32 to index
    %c0_73 = arith.constant 0 : index
    %383 = vector.load %arg7[%382, %c0_73] : memref<64x128xbf16, #tpu.memory_space<vmem>>, vector<8x128xbf16>
    tpu.vector_store %arg7[%382, %c0_73], %381 {strides = array<i32>} : memref<64x128xbf16, #tpu.memory_space<vmem>>, vector<8x128xbf16>,
    %384 = tpu.concatenate %347, %377 in 0 : vector<8x128xf32>, vector<8x128xf32> -> vector<16x128xf32>
    %c5_i32 = arith.constant 5 : i32
    %c8_i32_74 = arith.constant 8 : i32
    %385 = arith.muli %c5_i32, %c8_i32_74 : i32
    %386 = tpu.assume_multiple %385, 8 : i32
    %c7_i32_75 = arith.constant 7 : i32
    %387 = arith.subi %c7_i32_75, %c5_i32 : i32
    %c8_i32_76 = arith.constant 8 : i32
    %388 = arith.muli %387, %c8_i32_76 : i32
    %389 = tpu.assume_multiple %388, 8 : i32
    %390 = arith.truncf %384 : vector<16x128xf32> to vector<16x128xbf16>
    %c0_77 = arith.constant 0 : index
    %c0_78 = arith.constant 0 : index
    %391 = vector.load %arg3[%c0_77, %c0_78] : memref<128x768xbf16, #tpu.memory_space<vmem>>, vector<128x768xbf16>
    %cst_79 = arith.constant dense<0.000000e+00> : vector<16x768xf32>
    %392 = tpu.matmul %390, %391, %cst_79 {dimension_numbers = #tpu.dot_dimension_numbers<[1], [0], [0], [1], [0, 0, 1, 1], [], []>} : vector<16x128xbf16>, vector<128x768xbf16>, vector<16x768xf32> -> vector<16x768xf32>
    %393 = arith.index_cast %386 : i32 to index
    %c0_80 = arith.constant 0 : index
    %394 = vector.load %arg1[%393, %c0_80] : memref<64x384xbf16, #tpu.memory_space<vmem>>, vector<8x384xbf16>
    %395 = arith.extf %394 : vector<8x384xbf16> to vector<8x384xf32>
    %396 = vector.extract_strided_slice %392 {offsets = [0, 0], sizes = [8, 384], strides = [1, 1]} : vector<16x768xf32> to vector<8x384xf32>
    %397 = vector.extract_strided_slice %384 {offsets = [0, 0], sizes = [8, 128], strides = [1, 1]} : vector<16x128xf32> to vector<8x128xf32>
    %398 = vector.extract_strided_slice %395 {offsets = [0, 0], sizes = [8, 128], strides = [1, 1]} : vector<8x384xf32> to vector<8x128xf32>
    %399 = vector.extract_strided_slice %396 {offsets = [0, 0], sizes = [8, 128], strides = [1, 1]} : vector<8x384xf32> to vector<8x128xf32>
    %400 = arith.addf %398, %399 : vector<8x128xf32>
    %401 = arith.negf %400 : vector<8x128xf32>
    %402 = math.exp %401 : vector<8x128xf32>
    %cst_81 = arith.constant 1.000000e+00 : f32
    %403 = vector.broadcast %cst_81 : f32 to vector<8x128xf32>
    %404 = arith.addf %403, %402 : vector<8x128xf32>
    %405 = arith.divf %403, %404 : vector<8x128xf32>
    %406 = vector.extract_strided_slice %395 {offsets = [0, 128], sizes = [8, 128], strides = [1, 1]} : vector<8x384xf32> to vector<8x128xf32>
    %407 = vector.extract_strided_slice %396 {offsets = [0, 128], sizes = [8, 128], strides = [1, 1]} : vector<8x384xf32> to vector<8x128xf32>
    %408 = arith.addf %406, %407 : vector<8x128xf32>
    %409 = arith.negf %408 : vector<8x128xf32>
    %410 = math.exp %409 : vector<8x128xf32>
    %cst_82 = arith.constant 1.000000e+00 : f32
    %411 = vector.broadcast %cst_82 : f32 to vector<8x128xf32>
    %412 = arith.addf %411, %410 : vector<8x128xf32>
    %413 = arith.divf %411, %412 : vector<8x128xf32>
    %414 = vector.extract_strided_slice %395 {offsets = [0, 256], sizes = [8, 128], strides = [1, 1]} : vector<8x384xf32> to vector<8x128xf32>
    %415 = vector.extract_strided_slice %396 {offsets = [0, 256], sizes = [8, 128], strides = [1, 1]} : vector<8x384xf32> to vector<8x128xf32>
    %416 = arith.addf %415, %5 : vector<8x128xf32>
    %417 = arith.mulf %405, %416 : vector<8x128xf32>
    %418 = arith.addf %414, %417 : vector<8x128xf32>
    %419 = math.tanh %418 : vector<8x128xf32>
    %420 = arith.subf %397, %419 : vector<8x128xf32>
    %421 = arith.mulf %413, %420 : vector<8x128xf32>
    %422 = arith.addf %419, %421 : vector<8x128xf32>
    %423 = arith.index_cast %389 : i32 to index
    %c0_83 = arith.constant 0 : index
    %424 = vector.load %arg2[%423, %c0_83] : memref<64x384xbf16, #tpu.memory_space<vmem>>, vector<8x384xbf16>
    %425 = arith.extf %424 : vector<8x384xbf16> to vector<8x384xf32>
    %426 = vector.extract_strided_slice %392 {offsets = [8, 384], sizes = [8, 384], strides = [1, 1]} : vector<16x768xf32> to vector<8x384xf32>
    %427 = vector.extract_strided_slice %384 {offsets = [8, 0], sizes = [8, 128], strides = [1, 1]} : vector<16x128xf32> to vector<8x128xf32>
    %428 = vector.extract_strided_slice %425 {offsets = [0, 0], sizes = [8, 128], strides = [1, 1]} : vector<8x384xf32> to vector<8x128xf32>
    %429 = vector.extract_strided_slice %426 {offsets = [0, 0], sizes = [8, 128], strides = [1, 1]} : vector<8x384xf32> to vector<8x128xf32>
    %430 = arith.addf %428, %429 : vector<8x128xf32>
    %431 = arith.negf %430 : vector<8x128xf32>
    %432 = math.exp %431 : vector<8x128xf32>
    %cst_84 = arith.constant 1.000000e+00 : f32
    %433 = vector.broadcast %cst_84 : f32 to vector<8x128xf32>
    %434 = arith.addf %433, %432 : vector<8x128xf32>
    %435 = arith.divf %433, %434 : vector<8x128xf32>
    %436 = vector.extract_strided_slice %425 {offsets = [0, 128], sizes = [8, 128], strides = [1, 1]} : vector<8x384xf32> to vector<8x128xf32>
    %437 = vector.extract_strided_slice %426 {offsets = [0, 128], sizes = [8, 128], strides = [1, 1]} : vector<8x384xf32> to vector<8x128xf32>
    %438 = arith.addf %436, %437 : vector<8x128xf32>
    %439 = arith.negf %438 : vector<8x128xf32>
    %440 = math.exp %439 : vector<8x128xf32>
    %cst_85 = arith.constant 1.000000e+00 : f32
    %441 = vector.broadcast %cst_85 : f32 to vector<8x128xf32>
    %442 = arith.addf %441, %440 : vector<8x128xf32>
    %443 = arith.divf %441, %442 : vector<8x128xf32>
    %444 = vector.extract_strided_slice %425 {offsets = [0, 256], sizes = [8, 128], strides = [1, 1]} : vector<8x384xf32> to vector<8x128xf32>
    %445 = vector.extract_strided_slice %426 {offsets = [0, 256], sizes = [8, 128], strides = [1, 1]} : vector<8x384xf32> to vector<8x128xf32>
    %446 = arith.addf %445, %8 : vector<8x128xf32>
    %447 = arith.mulf %435, %446 : vector<8x128xf32>
    %448 = arith.addf %444, %447 : vector<8x128xf32>
    %449 = math.tanh %448 : vector<8x128xf32>
    %450 = arith.subf %427, %449 : vector<8x128xf32>
    %451 = arith.mulf %443, %450 : vector<8x128xf32>
    %452 = arith.addf %449, %451 : vector<8x128xf32>
    %453 = arith.truncf %422 : vector<8x128xf32> to vector<8x128xbf16>
    %454 = arith.index_cast %386 : i32 to index
    %c0_86 = arith.constant 0 : index
    %455 = vector.load %arg6[%454, %c0_86] : memref<64x128xbf16, #tpu.memory_space<vmem>>, vector<8x128xbf16>
    tpu.vector_store %arg6[%454, %c0_86], %453 {strides = array<i32>} : memref<64x128xbf16, #tpu.memory_space<vmem>>, vector<8x128xbf16>,
    %456 = arith.truncf %452 : vector<8x128xf32> to vector<8x128xbf16>
    %457 = arith.index_cast %389 : i32 to index
    %c0_87 = arith.constant 0 : index
    %458 = vector.load %arg7[%457, %c0_87] : memref<64x128xbf16, #tpu.memory_space<vmem>>, vector<8x128xbf16>
    tpu.vector_store %arg7[%457, %c0_87], %456 {strides = array<i32>} : memref<64x128xbf16, #tpu.memory_space<vmem>>, vector<8x128xbf16>,
    %459 = tpu.concatenate %422, %452 in 0 : vector<8x128xf32>, vector<8x128xf32> -> vector<16x128xf32>
    %c6_i32 = arith.constant 6 : i32
    %c8_i32_88 = arith.constant 8 : i32
    %460 = arith.muli %c6_i32, %c8_i32_88 : i32
    %461 = tpu.assume_multiple %460, 8 : i32
    %c7_i32_89 = arith.constant 7 : i32
    %462 = arith.subi %c7_i32_89, %c6_i32 : i32
    %c8_i32_90 = arith.constant 8 : i32
    %463 = arith.muli %462, %c8_i32_90 : i32
    %464 = tpu.assume_multiple %463, 8 : i32
    %465 = arith.truncf %459 : vector<16x128xf32> to vector<16x128xbf16>
    %c0_91 = arith.constant 0 : index
    %c0_92 = arith.constant 0 : index
    %466 = vector.load %arg3[%c0_91, %c0_92] : memref<128x768xbf16, #tpu.memory_space<vmem>>, vector<128x768xbf16>
    %cst_93 = arith.constant dense<0.000000e+00> : vector<16x768xf32>
    %467 = tpu.matmul %465, %466, %cst_93 {dimension_numbers = #tpu.dot_dimension_numbers<[1], [0], [0], [1], [0, 0, 1, 1], [], []>} : vector<16x128xbf16>, vector<128x768xbf16>, vector<16x768xf32> -> vector<16x768xf32>
    %468 = arith.index_cast %461 : i32 to index
    %c0_94 = arith.constant 0 : index
    %469 = vector.load %arg1[%468, %c0_94] : memref<64x384xbf16, #tpu.memory_space<vmem>>, vector<8x384xbf16>
    %470 = arith.extf %469 : vector<8x384xbf16> to vector<8x384xf32>
    %471 = vector.extract_strided_slice %467 {offsets = [0, 0], sizes = [8, 384], strides = [1, 1]} : vector<16x768xf32> to vector<8x384xf32>
    %472 = vector.extract_strided_slice %459 {offsets = [0, 0], sizes = [8, 128], strides = [1, 1]} : vector<16x128xf32> to vector<8x128xf32>
    %473 = vector.extract_strided_slice %470 {offsets = [0, 0], sizes = [8, 128], strides = [1, 1]} : vector<8x384xf32> to vector<8x128xf32>
    %474 = vector.extract_strided_slice %471 {offsets = [0, 0], sizes = [8, 128], strides = [1, 1]} : vector<8x384xf32> to vector<8x128xf32>
    %475 = arith.addf %473, %474 : vector<8x128xf32>
    %476 = arith.negf %475 : vector<8x128xf32>
    %477 = math.exp %476 : vector<8x128xf32>
    %cst_95 = arith.constant 1.000000e+00 : f32
    %478 = vector.broadcast %cst_95 : f32 to vector<8x128xf32>
    %479 = arith.addf %478, %477 : vector<8x128xf32>
    %480 = arith.divf %478, %479 : vector<8x128xf32>
    %481 = vector.extract_strided_slice %470 {offsets = [0, 128], sizes = [8, 128], strides = [1, 1]} : vector<8x384xf32> to vector<8x128xf32>
    %482 = vector.extract_strided_slice %471 {offsets = [0, 128], sizes = [8, 128], strides = [1, 1]} : vector<8x384xf32> to vector<8x128xf32>
    %483 = arith.addf %481, %482 : vector<8x128xf32>
    %484 = arith.negf %483 : vector<8x128xf32>
    %485 = math.exp %484 : vector<8x128xf32>
    %cst_96 = arith.constant 1.000000e+00 : f32
    %486 = vector.broadcast %cst_96 : f32 to vector<8x128xf32>
    %487 = arith.addf %486, %485 : vector<8x128xf32>
    %488 = arith.divf %486, %487 : vector<8x128xf32>
    %489 = vector.extract_strided_slice %470 {offsets = [0, 256], sizes = [8, 128], strides = [1, 1]} : vector<8x384xf32> to vector<8x128xf32>
    %490 = vector.extract_strided_slice %471 {offsets = [0, 256], sizes = [8, 128], strides = [1, 1]} : vector<8x384xf32> to vector<8x128xf32>
    %491 = arith.addf %490, %5 : vector<8x128xf32>
    %492 = arith.mulf %480, %491 : vector<8x128xf32>
    %493 = arith.addf %489, %492 : vector<8x128xf32>
    %494 = math.tanh %493 : vector<8x128xf32>
    %495 = arith.subf %472, %494 : vector<8x128xf32>
    %496 = arith.mulf %488, %495 : vector<8x128xf32>
    %497 = arith.addf %494, %496 : vector<8x128xf32>
    %498 = arith.index_cast %464 : i32 to index
    %c0_97 = arith.constant 0 : index
    %499 = vector.load %arg2[%498, %c0_97] : memref<64x384xbf16, #tpu.memory_space<vmem>>, vector<8x384xbf16>
    %500 = arith.extf %499 : vector<8x384xbf16> to vector<8x384xf32>
    %501 = vector.extract_strided_slice %467 {offsets = [8, 384], sizes = [8, 384], strides = [1, 1]} : vector<16x768xf32> to vector<8x384xf32>
    %502 = vector.extract_strided_slice %459 {offsets = [8, 0], sizes = [8, 128], strides = [1, 1]} : vector<16x128xf32> to vector<8x128xf32>
    %503 = vector.extract_strided_slice %500 {offsets = [0, 0], sizes = [8, 128], strides = [1, 1]} : vector<8x384xf32> to vector<8x128xf32>
    %504 = vector.extract_strided_slice %501 {offsets = [0, 0], sizes = [8, 128], strides = [1, 1]} : vector<8x384xf32> to vector<8x128xf32>
    %505 = arith.addf %503, %504 : vector<8x128xf32>
    %506 = arith.negf %505 : vector<8x128xf32>
    %507 = math.exp %506 : vector<8x128xf32>
    %cst_98 = arith.constant 1.000000e+00 : f32
    %508 = vector.broadcast %cst_98 : f32 to vector<8x128xf32>
    %509 = arith.addf %508, %507 : vector<8x128xf32>
    %510 = arith.divf %508, %509 : vector<8x128xf32>
    %511 = vector.extract_strided_slice %500 {offsets = [0, 128], sizes = [8, 128], strides = [1, 1]} : vector<8x384xf32> to vector<8x128xf32>
    %512 = vector.extract_strided_slice %501 {offsets = [0, 128], sizes = [8, 128], strides = [1, 1]} : vector<8x384xf32> to vector<8x128xf32>
    %513 = arith.addf %511, %512 : vector<8x128xf32>
    %514 = arith.negf %513 : vector<8x128xf32>
    %515 = math.exp %514 : vector<8x128xf32>
    %cst_99 = arith.constant 1.000000e+00 : f32
    %516 = vector.broadcast %cst_99 : f32 to vector<8x128xf32>
    %517 = arith.addf %516, %515 : vector<8x128xf32>
    %518 = arith.divf %516, %517 : vector<8x128xf32>
    %519 = vector.extract_strided_slice %500 {offsets = [0, 256], sizes = [8, 128], strides = [1, 1]} : vector<8x384xf32> to vector<8x128xf32>
    %520 = vector.extract_strided_slice %501 {offsets = [0, 256], sizes = [8, 128], strides = [1, 1]} : vector<8x384xf32> to vector<8x128xf32>
    %521 = arith.addf %520, %8 : vector<8x128xf32>
    %522 = arith.mulf %510, %521 : vector<8x128xf32>
    %523 = arith.addf %519, %522 : vector<8x128xf32>
    %524 = math.tanh %523 : vector<8x128xf32>
    %525 = arith.subf %502, %524 : vector<8x128xf32>
    %526 = arith.mulf %518, %525 : vector<8x128xf32>
    %527 = arith.addf %524, %526 : vector<8x128xf32>
    %528 = arith.truncf %497 : vector<8x128xf32> to vector<8x128xbf16>
    %529 = arith.index_cast %461 : i32 to index
    %c0_100 = arith.constant 0 : index
    %530 = vector.load %arg6[%529, %c0_100] : memref<64x128xbf16, #tpu.memory_space<vmem>>, vector<8x128xbf16>
    tpu.vector_store %arg6[%529, %c0_100], %528 {strides = array<i32>} : memref<64x128xbf16, #tpu.memory_space<vmem>>, vector<8x128xbf16>,
    %531 = arith.truncf %527 : vector<8x128xf32> to vector<8x128xbf16>
    %532 = arith.index_cast %464 : i32 to index
    %c0_101 = arith.constant 0 : index
    %533 = vector.load %arg7[%532, %c0_101] : memref<64x128xbf16, #tpu.memory_space<vmem>>, vector<8x128xbf16>
    tpu.vector_store %arg7[%532, %c0_101], %531 {strides = array<i32>} : memref<64x128xbf16, #tpu.memory_space<vmem>>, vector<8x128xbf16>,
    %534 = tpu.concatenate %497, %527 in 0 : vector<8x128xf32>, vector<8x128xf32> -> vector<16x128xf32>
    %c7_i32_102 = arith.constant 7 : i32
    %c8_i32_103 = arith.constant 8 : i32
    %535 = arith.muli %c7_i32_102, %c8_i32_103 : i32
    %536 = tpu.assume_multiple %535, 8 : i32
    %c7_i32_104 = arith.constant 7 : i32
    %537 = arith.subi %c7_i32_104, %c7_i32_102 : i32
    %c8_i32_105 = arith.constant 8 : i32
    %538 = arith.muli %537, %c8_i32_105 : i32
    %539 = tpu.assume_multiple %538, 8 : i32
    %540 = arith.truncf %534 : vector<16x128xf32> to vector<16x128xbf16>
    %c0_106 = arith.constant 0 : index
    %c0_107 = arith.constant 0 : index
    %541 = vector.load %arg3[%c0_106, %c0_107] : memref<128x768xbf16, #tpu.memory_space<vmem>>, vector<128x768xbf16>
    %cst_108 = arith.constant dense<0.000000e+00> : vector<16x768xf32>
    %542 = tpu.matmul %540, %541, %cst_108 {dimension_numbers = #tpu.dot_dimension_numbers<[1], [0], [0], [1], [0, 0, 1, 1], [], []>} : vector<16x128xbf16>, vector<128x768xbf16>, vector<16x768xf32> -> vector<16x768xf32>
    %543 = arith.index_cast %536 : i32 to index
    %c0_109 = arith.constant 0 : index
    %544 = vector.load %arg1[%543, %c0_109] : memref<64x384xbf16, #tpu.memory_space<vmem>>, vector<8x384xbf16>
    %545 = arith.extf %544 : vector<8x384xbf16> to vector<8x384xf32>
    %546 = vector.extract_strided_slice %542 {offsets = [0, 0], sizes = [8, 384], strides = [1, 1]} : vector<16x768xf32> to vector<8x384xf32>
    %547 = vector.extract_strided_slice %534 {offsets = [0, 0], sizes = [8, 128], strides = [1, 1]} : vector<16x128xf32> to vector<8x128xf32>
    %548 = vector.extract_strided_slice %545 {offsets = [0, 0], sizes = [8, 128], strides = [1, 1]} : vector<8x384xf32> to vector<8x128xf32>
    %549 = vector.extract_strided_slice %546 {offsets = [0, 0], sizes = [8, 128], strides = [1, 1]} : vector<8x384xf32> to vector<8x128xf32>
    %550 = arith.addf %548, %549 : vector<8x128xf32>
    %551 = arith.negf %550 : vector<8x128xf32>
    %552 = math.exp %551 : vector<8x128xf32>
    %cst_110 = arith.constant 1.000000e+00 : f32
    %553 = vector.broadcast %cst_110 : f32 to vector<8x128xf32>
    %554 = arith.addf %553, %552 : vector<8x128xf32>
    %555 = arith.divf %553, %554 : vector<8x128xf32>
    %556 = vector.extract_strided_slice %545 {offsets = [0, 128], sizes = [8, 128], strides = [1, 1]} : vector<8x384xf32> to vector<8x128xf32>
    %557 = vector.extract_strided_slice %546 {offsets = [0, 128], sizes = [8, 128], strides = [1, 1]} : vector<8x384xf32> to vector<8x128xf32>
    %558 = arith.addf %556, %557 : vector<8x128xf32>
    %559 = arith.negf %558 : vector<8x128xf32>
    %560 = math.exp %559 : vector<8x128xf32>
    %cst_111 = arith.constant 1.000000e+00 : f32
    %561 = vector.broadcast %cst_111 : f32 to vector<8x128xf32>
    %562 = arith.addf %561, %560 : vector<8x128xf32>
    %563 = arith.divf %561, %562 : vector<8x128xf32>
    %564 = vector.extract_strided_slice %545 {offsets = [0, 256], sizes = [8, 128], strides = [1, 1]} : vector<8x384xf32> to vector<8x128xf32>
    %565 = vector.extract_strided_slice %546 {offsets = [0, 256], sizes = [8, 128], strides = [1, 1]} : vector<8x384xf32> to vector<8x128xf32>
    %566 = arith.addf %565, %5 : vector<8x128xf32>
    %567 = arith.mulf %555, %566 : vector<8x128xf32>
    %568 = arith.addf %564, %567 : vector<8x128xf32>
    %569 = math.tanh %568 : vector<8x128xf32>
    %570 = arith.subf %547, %569 : vector<8x128xf32>
    %571 = arith.mulf %563, %570 : vector<8x128xf32>
    %572 = arith.addf %569, %571 : vector<8x128xf32>
    %573 = arith.index_cast %539 : i32 to index
    %c0_112 = arith.constant 0 : index
    %574 = vector.load %arg2[%573, %c0_112] : memref<64x384xbf16, #tpu.memory_space<vmem>>, vector<8x384xbf16>
    %575 = arith.extf %574 : vector<8x384xbf16> to vector<8x384xf32>
    %576 = vector.extract_strided_slice %542 {offsets = [8, 384], sizes = [8, 384], strides = [1, 1]} : vector<16x768xf32> to vector<8x384xf32>
    %577 = vector.extract_strided_slice %534 {offsets = [8, 0], sizes = [8, 128], strides = [1, 1]} : vector<16x128xf32> to vector<8x128xf32>
    %578 = vector.extract_strided_slice %575 {offsets = [0, 0], sizes = [8, 128], strides = [1, 1]} : vector<8x384xf32> to vector<8x128xf32>
    %579 = vector.extract_strided_slice %576 {offsets = [0, 0], sizes = [8, 128], strides = [1, 1]} : vector<8x384xf32> to vector<8x128xf32>
    %580 = arith.addf %578, %579 : vector<8x128xf32>
    %581 = arith.negf %580 : vector<8x128xf32>
    %582 = math.exp %581 : vector<8x128xf32>
    %cst_113 = arith.constant 1.000000e+00 : f32
    %583 = vector.broadcast %cst_113 : f32 to vector<8x128xf32>
    %584 = arith.addf %583, %582 : vector<8x128xf32>
    %585 = arith.divf %583, %584 : vector<8x128xf32>
    %586 = vector.extract_strided_slice %575 {offsets = [0, 128], sizes = [8, 128], strides = [1, 1]} : vector<8x384xf32> to vector<8x128xf32>
    %587 = vector.extract_strided_slice %576 {offsets = [0, 128], sizes = [8, 128], strides = [1, 1]} : vector<8x384xf32> to vector<8x128xf32>
    %588 = arith.addf %586, %587 : vector<8x128xf32>
    %589 = arith.negf %588 : vector<8x128xf32>
    %590 = math.exp %589 : vector<8x128xf32>
    %cst_114 = arith.constant 1.000000e+00 : f32
    %591 = vector.broadcast %cst_114 : f32 to vector<8x128xf32>
    %592 = arith.addf %591, %590 : vector<8x128xf32>
    %593 = arith.divf %591, %592 : vector<8x128xf32>
    %594 = vector.extract_strided_slice %575 {offsets = [0, 256], sizes = [8, 128], strides = [1, 1]} : vector<8x384xf32> to vector<8x128xf32>
    %595 = vector.extract_strided_slice %576 {offsets = [0, 256], sizes = [8, 128], strides = [1, 1]} : vector<8x384xf32> to vector<8x128xf32>
    %596 = arith.addf %595, %8 : vector<8x128xf32>
    %597 = arith.mulf %585, %596 : vector<8x128xf32>
    %598 = arith.addf %594, %597 : vector<8x128xf32>
    %599 = math.tanh %598 : vector<8x128xf32>
    %600 = arith.subf %577, %599 : vector<8x128xf32>
    %601 = arith.mulf %593, %600 : vector<8x128xf32>
    %602 = arith.addf %599, %601 : vector<8x128xf32>
    %603 = arith.truncf %572 : vector<8x128xf32> to vector<8x128xbf16>
    %604 = arith.index_cast %536 : i32 to index
    %c0_115 = arith.constant 0 : index
    %605 = vector.load %arg6[%604, %c0_115] : memref<64x128xbf16, #tpu.memory_space<vmem>>, vector<8x128xbf16>
    tpu.vector_store %arg6[%604, %c0_115], %603 {strides = array<i32>} : memref<64x128xbf16, #tpu.memory_space<vmem>>, vector<8x128xbf16>,
    %606 = arith.truncf %602 : vector<8x128xf32> to vector<8x128xbf16>
    %607 = arith.index_cast %539 : i32 to index
    %c0_116 = arith.constant 0 : index
    %608 = vector.load %arg7[%607, %c0_116] : memref<64x128xbf16, #tpu.memory_space<vmem>>, vector<8x128xbf16>
    tpu.vector_store %arg7[%607, %c0_116], %606 {strides = array<i32>} : memref<64x128xbf16, #tpu.memory_space<vmem>>, vector<8x128xbf16>,
    %609 = tpu.concatenate %572, %602 in 0 : vector<8x128xf32>, vector<8x128xf32> -> vector<16x128xf32>
    %c8_i32_117 = arith.constant 8 : i32
    %c0_118 = arith.constant 0 : index
    %c0_119 = arith.constant 0 : index
    %610 = vector.load %arg8[%c0_118, %c0_119] : memref<16x128xf32, #tpu.memory_space<vmem>>, vector<16x128xf32>
    tpu.vector_store %arg8[%c0_118, %c0_119], %609 {strides = array<i32>} : memref<16x128xf32, #tpu.memory_space<vmem>>, vector<16x128xf32>,
    return
  }
  func.func @transform_0(%arg0: i32) -> (i32, i32) {
    %c0_i32 = arith.constant 0 : i32
    %c0_i32_0 = arith.constant 0 : i32
    return %arg0, %c0_i32 : i32, i32
  }
  func.func @transform_1(%arg0: i32) -> (i32, i32) {
    %c0_i32 = arith.constant 0 : i32
    %0 = arith.subi %c0_i32, %arg0 : i32
    %c0_i32_0 = arith.constant 0 : i32
    %c0_i32_1 = arith.constant 0 : i32
    return %0, %c0_i32_0 : i32, i32
  }
  func.func @transform_2(%arg0: i32) -> (i32, i32) {
    %c0_i32 = arith.constant 0 : i32
    %c0_i32_0 = arith.constant 0 : i32
    %c0_i32_1 = arith.constant 0 : i32
    return %c0_i32, %c0_i32_0 : i32, i32
  }
  func.func @transform_3(%arg0: i32) -> (i32, i32) {
    %c0_i32 = arith.constant 0 : i32
    %c0_i32_0 = arith.constant 0 : i32
    %c0_i32_1 = arith.constant 0 : i32
    return %c0_i32, %c0_i32_0 : i32, i32
  }
  func.func @transform_4(%arg0: i32) -> (i32, i32) {
    %c0_i32 = arith.constant 0 : i32
    %c0_i32_0 = arith.constant 0 : i32
    %c0_i32_1 = arith.constant 0 : i32
    return %c0_i32, %c0_i32_0 : i32, i32
  }
  func.func @transform_5(%arg0: i32) -> (i32, i32) {
    %c0_i32 = arith.constant 0 : i32
    %c0_i32_0 = arith.constant 0 : i32
    return %arg0, %c0_i32 : i32, i32
  }
  func.func @transform_6(%arg0: i32) -> (i32, i32) {
    %c0_i32 = arith.constant 0 : i32
    %0 = arith.subi %c0_i32, %arg0 : i32
    %c0_i32_0 = arith.constant 0 : i32
    %c0_i32_1 = arith.constant 0 : i32
    return %0, %c0_i32_0 : i32, i32
  }
}

module attributes {stable_mosaic.version = 11 : i64} {
  func.func @kernel(%arg0: i32, %arg1: memref<64x128xbf16, #tpu.memory_space<vmem>>, %arg2: memref<64x128xbf16, #tpu.memory_space<vmem>>, %arg3: memref<128x768xbf16, #tpu.memory_space<vmem>>, %arg4: memref<128x768xbf16, #tpu.memory_space<vmem>>, %arg5: memref<1x768xf32, #tpu.memory_space<vmem>>, %arg6: memref<64x384xbf16, #tpu.memory_space<vmem>>, %arg7: memref<64x384xbf16, #tpu.memory_space<vmem>>) attributes {dimension_semantics = [#tpu.dimension_semantics<parallel>], iteration_bounds = array<i64: 1>, scalar_prefetch = 0 : i64, scratch_operands = 0 : i64, tpu.core_type = #tpu.core_type<tc>, window_params = [{transform_indices = @transform_0, window_bounds = array<i64: 64, 128>}, {transform_indices = @transform_1, window_bounds = array<i64: 64, 128>}, {pipeline_mode = #tpu.pipeline_mode<synchronous>, transform_indices = @transform_2, window_bounds = array<i64: 128, 768>}, {pipeline_mode = #tpu.pipeline_mode<synchronous>, transform_indices = @transform_3, window_bounds = array<i64: 128, 768>}, {pipeline_mode = #tpu.pipeline_mode<synchronous>, transform_indices = @transform_4, window_bounds = array<i64: 1, 768>}, {transform_indices = @transform_5, window_bounds = array<i64: 64, 384>}, {transform_indices = @transform_6, window_bounds = array<i64: 64, 384>}]} {
    %c0 = arith.constant 0 : index
    %c0_0 = arith.constant 0 : index
    %0 = vector.load %arg1[%c0, %c0_0] : memref<64x128xbf16, #tpu.memory_space<vmem>>, vector<64x128xbf16>
    %c0_1 = arith.constant 0 : index
    %c0_2 = arith.constant 0 : index
    %1 = vector.load %arg3[%c0_1, %c0_2] : memref<128x768xbf16, #tpu.memory_space<vmem>>, vector<128x768xbf16>
    %cst = arith.constant dense<0.000000e+00> : vector<64x768xf32>
    %2 = tpu.matmul %0, %1, %cst {dimension_numbers = #tpu.dot_dimension_numbers<[1], [0], [0], [1], [0, 0, 1, 1], [], []>} : vector<64x128xbf16>, vector<128x768xbf16>, vector<64x768xf32> -> vector<64x768xf32>
    %c0_3 = arith.constant 0 : index
    %c0_4 = arith.constant 0 : index
    %3 = vector.load %arg2[%c0_3, %c0_4] : memref<64x128xbf16, #tpu.memory_space<vmem>>, vector<64x128xbf16>
    %c0_5 = arith.constant 0 : index
    %c0_6 = arith.constant 0 : index
    %4 = vector.load %arg4[%c0_5, %c0_6] : memref<128x768xbf16, #tpu.memory_space<vmem>>, vector<128x768xbf16>
    %cst_7 = arith.constant dense<0.000000e+00> : vector<64x768xf32>
    %5 = tpu.matmul %3, %4, %cst_7 {dimension_numbers = #tpu.dot_dimension_numbers<[1], [0], [0], [1], [0, 0, 1, 1], [], []>} : vector<64x128xbf16>, vector<128x768xbf16>, vector<64x768xf32> -> vector<64x768xf32>
    %6 = arith.addf %2, %5 : vector<64x768xf32>
    %c0_8 = arith.constant 0 : index
    %c0_9 = arith.constant 0 : index
    %7 = vector.load %arg5[%c0_8, %c0_9] : memref<1x768xf32, #tpu.memory_space<vmem>>, vector<1x768xf32>
    %8 = vector.broadcast %7 : vector<1x768xf32> to vector<64x768xf32>
    %9 = arith.addf %6, %8 : vector<64x768xf32>
    %10 = vector.extract_strided_slice %9 {offsets = [0, 0], sizes = [64, 384], strides = [1, 1]} : vector<64x768xf32> to vector<64x384xf32>
    %11 = arith.truncf %10 : vector<64x384xf32> to vector<64x384xbf16>
    %c0_10 = arith.constant 0 : index
    %c0_11 = arith.constant 0 : index
    %12 = vector.load %arg6[%c0_10, %c0_11] : memref<64x384xbf16, #tpu.memory_space<vmem>>, vector<64x384xbf16>
    tpu.vector_store %arg6[%c0_10, %c0_11], %11 {strides = array<i32>} : memref<64x384xbf16, #tpu.memory_space<vmem>>, vector<64x384xbf16>,
    %13 = vector.extract_strided_slice %9 {offsets = [0, 384], sizes = [64, 384], strides = [1, 1]} : vector<64x768xf32> to vector<64x384xf32>
    %14 = arith.truncf %13 : vector<64x384xf32> to vector<64x384xbf16>
    %c0_12 = arith.constant 0 : index
    %c0_13 = arith.constant 0 : index
    %15 = vector.load %arg7[%c0_12, %c0_13] : memref<64x384xbf16, #tpu.memory_space<vmem>>, vector<64x384xbf16>
    tpu.vector_store %arg7[%c0_12, %c0_13], %14 {strides = array<i32>} : memref<64x384xbf16, #tpu.memory_space<vmem>>, vector<64x384xbf16>,
    return
  }
  func.func @transform_0(%arg0: i32) -> (i32, i32) {
    %c0_i32 = arith.constant 0 : i32
    %c0_i32_0 = arith.constant 0 : i32
    return %arg0, %c0_i32 : i32, i32
  }
  func.func @transform_1(%arg0: i32) -> (i32, i32) {
    %c0_i32 = arith.constant 0 : i32
    %c0_i32_0 = arith.constant 0 : i32
    return %arg0, %c0_i32 : i32, i32
  }
  func.func @transform_2(%arg0: i32) -> (i32, i32) {
    %c0_i32 = arith.constant 0 : i32
    %c0_i32_0 = arith.constant 0 : i32
    %c0_i32_1 = arith.constant 0 : i32
    return %c0_i32, %c0_i32_0 : i32, i32
  }
  func.func @transform_3(%arg0: i32) -> (i32, i32) {
    %c0_i32 = arith.constant 0 : i32
    %c0_i32_0 = arith.constant 0 : i32
    %c0_i32_1 = arith.constant 0 : i32
    return %c0_i32, %c0_i32_0 : i32, i32
  }
  func.func @transform_4(%arg0: i32) -> (i32, i32) {
    %c0_i32 = arith.constant 0 : i32
    %c0_i32_0 = arith.constant 0 : i32
    %c0_i32_1 = arith.constant 0 : i32
    return %c0_i32, %c0_i32_0 : i32, i32
  }
  func.func @transform_5(%arg0: i32) -> (i32, i32) {
    %c0_i32 = arith.constant 0 : i32
    %c0_i32_0 = arith.constant 0 : i32
    return %arg0, %c0_i32 : i32, i32
  }
  func.func @transform_6(%arg0: i32) -> (i32, i32) {
    %c0_i32 = arith.constant 0 : i32
    %c0_i32_0 = arith.constant 0 : i32
    return %arg0, %c0_i32 : i32, i32
  }
}

</mosaic_0001>

<bundles_post_ra>
// kernel: stacked_gru_encoder.4
= control target key start
LH: loop header
LB: loop body
LE: loop exit
PB: predicated region body
PF: predicated region fallthrough
CT: control target
= control target key end

     0   :  { %10 = vsyncpa [#allocation3], 0  ;;  %s1314_s0 = inlined_call_operand.vmem [shape: bf16[64,128], index: 0, kind: input, shape index: {}]   ;;  %s1315_s1 = inlined_call_operand.hbm [shape: bf16[128,768], index: 1, kind: input, shape index: {}]   ;;  %s1316_s2 = inlined_call_operand.hbm [shape: f32[1,768], index: 2, kind: input, shape index: {}]   ;;  %s1317_s3 = inlined_call_operand.vmem [shape: bf16[64,384], index: 3, kind: output, shape index: {0}]   ;;  %s1318_s4 = inlined_call_operand.vmem [shape: bf16[64,384], index: 4, kind: output, shape index: {1}]  }
   0x1   :  { %11 = vsyncpa [#allocation5], 0  ;;  %s1077_s15 = smov [#allocation2]   ;;  %s1029_s19 = scalar_lea.hbm %s1315_s1, 6144 }
   0x2   :  { %s19_s16 = sshll.u32 %s1077_s15, 4  ;;  %p1030_p0 = scmp.ne.s32.totalorder %s1315_s1, %s1029_s19  ;;  %s20_s16 = int_to_ptr.vmem [resolvable:$true] %s19_s16 }
   0x3   :  { %p1033_p1 = scmp.lt.u32.totalorder %s1029_s19, %s1315_s1 }
   0x5   :  { %p1035_p2 = pnand %p1033_p1, %p1030_p0 }
   0x7   :  { %1038 = shalt.err (!%p1035_p2)
}
   0x8   :  { %s1039_s24 = scalar_lea.vmem %s20_s16, 6144  ;;  %p1044_p4 = scmp.lt.s32.totalorder %s20_s16, %s20_s16 }
   0x9   :  { %p1040_p3 = scmp.ne.s32.totalorder %s20_s16, %s1039_s24  ;;  %p1045_p5 = scmp.lt.s32.totalorder %s1039_s24, %s1039_s24 }
   0xb   :  { %p1046_p6 = por %p1045_p5, %p1044_p4 }
   0xd   :  { %p1047_p7 = pnand %p1046_p6, %p1040_p3 }
   0xf   :  { %1050 = shalt.err (!%p1047_p7)
}
  0x10   :  { %s1078_s25 = smov 384   ;;  %s1079_s26 = smov 24  }
  0x11   :  { %25 = dma.hbm_to_vmem [thread:$0]  %s1315_s1, 6144, %s20_s16, [#allocation3], %s1078_s25, %s1078_s25, %s1079_s26  }
  0x12   :  { %s1080_s29 = smov [#allocation4]   ;;  %s1051_s7 = scalar_lea.hbm %s1316_s2, 96 }
  0x13   :  { %s32_s30 = sshll.u32 %s1080_s29, 4  ;;  %p1052_p8 = scmp.ne.s32.totalorder %s1316_s2, %s1051_s7  ;;  %s33_s30 = int_to_ptr.vmem [resolvable:$true] %s32_s30 }
  0x14   :  { %p1055_p9 = scmp.lt.u32.totalorder %s1051_s7, %s1316_s2 }
  0x16   :  { %p1057_p10 = pnand %p1055_p9, %p1052_p8 }
  0x18   :  { %1060 = shalt.err (!%p1057_p10)
}
  0x19   :  { %s1061_s12 = scalar_lea.vmem %s33_s30, 96  ;;  %p1066_p12 = scmp.lt.s32.totalorder %s33_s30, %s33_s30 }
  0x1a   :  { %p1062_p11 = scmp.ne.s32.totalorder %s33_s30, %s1061_s12  ;;  %p1067_p13 = scmp.lt.s32.totalorder %s1061_s12, %s1061_s12 }
  0x1c   :  { %p1068_p0 = por %p1067_p13, %p1066_p12 }
  0x1e   :  { %p1069_p1 = pnand %p1068_p0, %p1062_p11 }
  0x20   :  { %1072 = shalt.err (!%p1069_p1)
}
  0x21   :  { %35 = dma.hbm_to_vmem [thread:$0]  %s1316_s2, 96, %s33_s30, [#allocation5]  }
  0x22   :  { %1073 = dma.done.wait [#allocation3], 6144  }
  0x23   :  { %1074 = vsyncadd [#allocation3], 4294961152 }
  0x24   :  { %1075 = dma.done.wait [#allocation5], 96  }
  0x25   :  { %1076 = vsyncadd [#allocation5], 4294967200  ;;  %v1081_v0 = vmov 0   ;;  %v953_v1 = vld [vmem:[#allocation2 + $0x4] ss:$24 sps:$4 sm:$0xff]   ;;  %v1008_v39 = vld [vmem:[%s1314_s0 + $0x8] sm:$0xff]   ;;  %v101_v53 = vlaneseq }
  0x26   :  { %427 = vmatprep.mubr.bf16.mxu0 %v1081_v0  ;;  %500 = vmatprep.mubr.bf16.mxu1 %v1081_v0  ;;  %v955_v2 = vld [vmem:[#allocation2 + $0xc] ss:$24 sps:$4 sm:$0xff]   ;;  %v957_v3 = vld [vmem:[#allocation2] ss:$24 sps:$4 sm:$0xff]   ;;  %v961_v6 = vld [vmem:[#allocation2 + $0x3c] ss:$24 sps:$4 sm:$0xff]  }
  0x27   :  { %395 = vmatprep.subr.bf16.mxu0 %v953_v1  ;;  %v958_v4 = vld [vmem:[#allocation2 + $0x8] ss:$24 sps:$4 sm:$0xff]   ;;  %468 = vmatprep.subr.bf16.mxu1 %v955_v2  ;;  %v959_v5 = vld [vmem:[#allocation2 + $0x34] ss:$24 sps:$4 sm:$0xff]   ;;  %v964_v8 = vld [vmem:[#allocation2 + $0x38] ss:$24 sps:$4 sm:$0xff]  }
  0x28   :  { %396 = vmatpush1.bf16.msra.mxu0 %v957_v3  ;;  %469 = vmatpush1.bf16.msra.mxu1 %v958_v4  ;;  %v963_v7 = vld [vmem:[#allocation2 + $0x30] ss:$24 sps:$4 sm:$0xff]   ;;  %v965_v9 = vld [vmem:[#allocation2 + $0x64] ss:$24 sps:$4 sm:$0xff]   ;;  %v969_v11 = vld [vmem:[#allocation2 + $0x60] ss:$24 sps:$4 sm:$0xff]  }
  0x29   :  { %397 = vmatprep.subr.bf16.mxu0 %v959_v5  ;;  %470 = vmatprep.subr.bf16.mxu1 %v961_v6  ;;  %v967_v10 = vld [vmem:[#allocation2 + $0x6c] ss:$24 sps:$4 sm:$0xff]   ;;  %v970_v12 = vld [vmem:[#allocation2 + $0x68] ss:$24 sps:$4 sm:$0xff]   ;;  %v973_v14 = vld [vmem:[#allocation2 + $0x9c] ss:$24 sps:$4 sm:$0xff]  }
  0x2a   :  { %v971_v13 = vld [vmem:[#allocation2 + $0x94] ss:$24 sps:$4 sm:$0xff]   ;;  %v975_v15 = vld [vmem:[#allocation2 + $0x90] ss:$24 sps:$4 sm:$0xff]   ;;  %v977_v17 = vld [vmem:[#allocation2 + $0xc4] ss:$24 sps:$4 sm:$0xff]  }
  0x2b   :  { %v976_v16 = vld [vmem:[#allocation2 + $0x98] ss:$24 sps:$4 sm:$0xff]   ;;  %v979_v18 = vld [vmem:[#allocation2 + $0xcc] ss:$24 sps:$4 sm:$0xff]   ;;  %v982_v20 = vld [vmem:[#allocation2 + $0xc8] ss:$24 sps:$4 sm:$0xff]  }
  0x2c   :  { %398 = vmatpush1.bf16.msra.mxu0 %v963_v7  ;;  %471 = vmatpush1.bf16.msra.mxu1 %v964_v8  ;;  %v981_v19 = vld [vmem:[#allocation2 + $0xc0] ss:$24 sps:$4 sm:$0xff]   ;;  %v983_v21 = vld [vmem:[#allocation2 + $0xf4] ss:$24 sps:$4 sm:$0xff]   ;;  %v987_v23 = vld [vmem:[#allocation2 + $0xf0] ss:$24 sps:$4 sm:$0xff]  }
  0x2d   :  { %399 = vmatprep.subr.bf16.mxu0 %v965_v9  ;;  %472 = vmatprep.subr.bf16.mxu1 %v967_v10  ;;  %v985_v22 = vld [vmem:[#allocation2 + $0xfc] ss:$24 sps:$4 sm:$0xff]   ;;  %v988_v24 = vld [vmem:[#allocation2 + $0xf8] ss:$24 sps:$4 sm:$0xff]   ;;  %v991_v26 = vld [vmem:[#allocation2 + $0x12c] ss:$24 sps:$4 sm:$0xff]  }
  0x2e   :  { %v989_v25 = vld [vmem:[#allocation2 + $0x124] ss:$24 sps:$4 sm:$0xff]   ;;  %v993_v27 = vld [vmem:[#allocation2 + $0x120] ss:$24 sps:$4 sm:$0xff]   ;;  %v995_v29 = vld [vmem:[#allocation2 + $0x154] ss:$24 sps:$4 sm:$0xff]  }
  0x2f   :  { %v994_v28 = vld [vmem:[#allocation2 + $0x128] ss:$24 sps:$4 sm:$0xff]   ;;  %v997_v30 = vld [vmem:[#allocation2 + $0x15c] ss:$24 sps:$4 sm:$0xff]   ;;  %v1000_v32 = vld [vmem:[#allocation2 + $0x158] ss:$24 sps:$4 sm:$0xff]  }
  0x30   :  { %400 = vmatpush1.bf16.msra.mxu0 %v969_v11  ;;  %473 = vmatpush1.bf16.msra.mxu1 %v970_v12  ;;  %v999_v31 = vld [vmem:[#allocation2 + $0x150] ss:$24 sps:$4 sm:$0xff]   ;;  %v1004_v33 = vld [vmem:[#allocation2 + $0x14] ss:$24 sps:$4 sm:$0xff]   ;;  %v1136_v34 = vld [vmem:[%s1314_s0] sm:$0xff]   ;;  %v1160_v54 = vshrl.u32 %v101_v53, 7 }
  0x31   :  { %401 = vmatprep.subr.bf16.mxu0 %v971_v13  ;;  %474 = vmatprep.subr.bf16.mxu1 %v973_v14  ;;  %v1002_v35 = vld [vmem:[#allocation2 + $0x10] ss:$24 sps:$4 sm:$0xff]   ;;  %v1007_v36 = vld [vmem:[#allocation2 + $0x44] ss:$24 sps:$4 sm:$0xff]   ;;  %v1005_v37 = vld [vmem:[#allocation2 + $0x40] ss:$24 sps:$4 sm:$0xff]  }
  0x32   :  { %v1011_v38 = vld [vmem:[#allocation2 + $0x74] ss:$24 sps:$4 sm:$0xff]   ;;  %v1009_v40 = vld [vmem:[#allocation2 + $0x70] ss:$24 sps:$4 sm:$0xff]   ;;  %v1014_v41 = vld [vmem:[#allocation2 + $0xa4] ss:$24 sps:$4 sm:$0xff]  }
  0x33   :  { %v1012_v42 = vld [vmem:[#allocation2 + $0xa0] ss:$24 sps:$4 sm:$0xff]   ;;  %v1018_v43 = vld [vmem:[#allocation2 + $0xd4] ss:$24 sps:$4 sm:$0xff]   ;;  %v1016_v45 = vld [vmem:[#allocation2 + $0xd0] ss:$24 sps:$4 sm:$0xff]  }
  0x34   :  { %402 = vmatpush1.bf16.msra.mxu0 %v975_v15  ;;  %475 = vmatpush1.bf16.msra.mxu1 %v976_v16  ;;  %v1015_v44 = vld [vmem:[%s1314_s0 + $0x10] sm:$0xff]   ;;  %v1021_v46 = vld [vmem:[#allocation2 + $0x104] ss:$24 sps:$4 sm:$0xff]   ;;  %v1019_v47 = vld [vmem:[#allocation2 + $0x100] ss:$24 sps:$4 sm:$0xff]   ;;  %v103_v55 = vsub.s32 0, %v1160_v54 }
  0x35   :  { %403 = vmatprep.subr.bf16.mxu0 %v977_v17  ;;  %476 = vmatprep.subr.bf16.mxu1 %v979_v18  ;;  %v1025_v48 = vld [vmem:[#allocation2 + $0x134] ss:$24 sps:$4 sm:$0xff]   ;;  %v1022_v49 = vld [vmem:[%s1314_s0 + $0x18] sm:$0xff]   ;;  %v1023_v50 = vld [vmem:[#allocation2 + $0x130] ss:$24 sps:$4 sm:$0xff]   ;;  %v111_v56 = vsub.s32 2, %v1160_v54 }
  0x36   :  { %v1028_v51 = vld [vmem:[#allocation2 + $0x164] ss:$24 sps:$4 sm:$0xff]   ;;  %v1026_v52 = vld [vmem:[#allocation2 + $0x160] ss:$24 sps:$4 sm:$0xff]   ;;  %v107_v58 = vsub.s32 1, %v1160_v54 }
  0x37   :  { %v1164_v57 = vld [vmem:[#allocation4] sm:$0x3f] }
  0x38   :  { %404 = vmatpush1.bf16.msra.mxu0 %v981_v19  ;;  %477 = vmatpush1.bf16.msra.mxu1 %v982_v20  ;;  %v1168_v59 = vrot.slane %v1164_v57, %v103_v55  ;;  %v1171_v60 = vrot.slane %v1164_v57, %v111_v56  ;;  %v1174_v61 = vrot.slane %v1164_v57, %v107_v58  ;;  %v115_v55 = vsub.s32 3, %v1160_v54 }
  0x39   :  { %405 = vmatprep.subr.bf16.mxu0 %v983_v21  ;;  %478 = vmatprep.subr.bf16.mxu1 %v985_v22 }
  0x3c   :  { %406 = vmatpush1.bf16.msra.mxu0 %v987_v23  ;;  %479 = vmatpush1.bf16.msra.mxu1 %v988_v24 }
  0x3d   :  { %407 = vmatprep.subr.bf16.mxu0 %v989_v25  ;;  %480 = vmatprep.subr.bf16.mxu1 %v991_v26 }
  0x40   :  { %408 = vmatpush1.bf16.msra.mxu0 %v993_v27  ;;  %481 = vmatpush1.bf16.msra.mxu1 %v994_v28 }
  0x41   :  { %409 = vmatprep.subr.bf16.mxu0 %v995_v29  ;;  %482 = vmatprep.subr.bf16.mxu1 %v997_v30 }
  0x44   :  { %410 = vmatpush1.bf16.msra.mxu0 %v999_v31  ;;  %483 = vmatpush1.bf16.msra.mxu1 %v1000_v32 }
  0x45   :  { %541 = vmatprep.subr.bf16.mxu0 %v1004_v33  ;;  %932 = vmatprep.subr.bf16.mxu1 %v1004_v33 }
  0x47   :  { %428 = vmatmul.mubr.bf16.vlgmr.msra.gmra.mrb[0].mxu0 %v1136_v34  ;;  %501 = vmatmul.mubr.bf16.vlgmr.msra.gmra.mrb[0].mxu1 %v1136_v34 }
  0x48   :  { %542 = vmatpush1.bf16.msra.mxu0 %v1002_v35  ;;  %940 = vmatpush1.bf16.msra.mxu1 %v1002_v35 }
  0x49   :  { %543 = vmatprep.subr.bf16.mxu0 %v1007_v36  ;;  %933 = vmatprep.subr.bf16.mxu1 %v1007_v36 }
  0x4a   :  { %437 = vmatprep.mubr.bf16.mxu0 %v1081_v0  ;;  %510 = vmatprep.mubr.bf16.mxu1 %v1081_v0 }
  0x4c   :  { %544 = vmatpush1.bf16.msra.mxu0 %v1005_v37  ;;  %941 = vmatpush1.bf16.msra.mxu1 %v1005_v37 }
  0x4d   :  { %545 = vmatprep.subr.bf16.mxu0 %v1011_v38  ;;  %934 = vmatprep.subr.bf16.mxu1 %v1011_v38 }
  0x4f   :  { %438 = vmatmul.mubr.bf16.gmra.mrb[4].mxu0 %v1008_v39  ;;  %511 = vmatmul.mubr.bf16.gmra.mrb[4].mxu1 %v1008_v39 }
  0x50   :  { %546 = vmatpush1.bf16.msra.mxu0 %v1009_v40  ;;  %942 = vmatpush1.bf16.msra.mxu1 %v1009_v40 }
  0x51   :  { %547 = vmatprep.subr.bf16.mxu0 %v1014_v41  ;;  %935 = vmatprep.subr.bf16.mxu1 %v1014_v41 }
  0x52   :  { %447 = vmatprep.mubr.bf16.mxu0 %v1081_v0  ;;  %520 = vmatprep.mubr.bf16.mxu1 %v1081_v0 }
  0x54   :  { %548 = vmatpush1.bf16.msra.mxu0 %v1012_v42  ;;  %943 = vmatpush1.bf16.msra.mxu1 %v1012_v42 }
  0x55   :  { %549 = vmatprep.subr.bf16.mxu0 %v1018_v43  ;;  %936 = vmatprep.subr.bf16.mxu1 %v1018_v43 }
  0x57   :  { %448 = vmatmul.mubr.bf16.gmra.mrb[8].mxu0 %v1015_v44  ;;  %521 = vmatmul.mubr.bf16.gmra.mrb[8].mxu1 %v1015_v44 }
  0x58   :  { %550 = vmatpush1.bf16.msra.mxu0 %v1016_v45  ;;  %944 = vmatpush1.bf16.msra.mxu1 %v1016_v45 }
  0x59   :  { %551 = vmatprep.subr.bf16.mxu0 %v1021_v46  ;;  %937 = vmatprep.subr.bf16.mxu1 %v1021_v46 }
  0x5a   :  { %457 = vmatprep.mubr.bf16.mxu0 %v1081_v0  ;;  %530 = vmatprep.mubr.bf16.mxu1 %v1081_v0 }
  0x5c   :  { %552 = vmatpush1.bf16.msra.mxu0 %v1019_v47  ;;  %945 = vmatpush1.bf16.msra.mxu1 %v1019_v47 }
  0x5d   :  { %553 = vmatprep.subr.bf16.mxu0 %v1025_v48  ;;  %938 = vmatprep.subr.bf16.mxu1 %v1025_v48 }
  0x5f   :  { %458 = vmatmul.mubr.bf16.gmra.mrb[12].mxu0 %v1022_v49  ;;  %531 = vmatmul.mubr.bf16.gmra.mrb[12].mxu1 %v1022_v49 }
  0x60   :  { %554 = vmatpush1.bf16.msra.mxu0 %v1023_v50  ;;  %946 = vmatpush1.bf16.msra.mxu1 %v1023_v50 }
  0x61   :  { %555 = vmatprep.subr.bf16.mxu0 %v1028_v51  ;;  %939 = vmatprep.subr.bf16.mxu1 %v1028_v51 }
  0x62   :  { %573 = vmatprep.mubr.bf16.mxu0 %v1081_v0  ;;  %593 = vmatprep.mubr.bf16.mxu1 %v1081_v0 }
  0x64   :  { %556 = vmatpush1.bf16.msra.mxu0 %v1026_v52  ;;  %947 = vmatpush1.bf16.msra.mxu1 %v1026_v52 }
  0x67   :  { %574 = vmatmul.mubr.bf16.vlgmr.msra.gmra.mrb[16].mxu0 %v1136_v34  ;;  %594 = vmatmul.mubr.bf16.vlgmr.msra.gmra.mrb[16].mxu1 %v1015_v44 }
  0x68   :  { %583 = vmatprep.mubr.bf16.mxu0 %v1081_v0  ;;  %603 = vmatprep.mubr.bf16.mxu1 %v1081_v0 }
  0x6f   :  { %584 = vmatmul.mubr.bf16.gmra.mrb[20].mxu0 %v1008_v39  ;;  %604 = vmatmul.mubr.bf16.gmra.mrb[20].mxu1 %v1022_v49 }
 0x11a   :  { %v429_v62 = vpop.f32.mrb[0].mxu0  ;;  %v502_v63 = vpop.f32.mrb[0].mxu1 }
 0x11b   :  { %v430_v0 = vadd.f32 %v429_v62, %v1168_v59  ;;  %v503_v1 = vadd.f32 %v502_v63, %v1171_v60  ;;  %v431_v2 = vpop.f32.mrb[1].mxu0  ;;  %v1178_v3 = vpop.f32.mrb[1].mxu1 }
 0x11c   :  { %v432_v4 = vadd.f32 %v431_v2, %v1174_v61  ;;  %v433_v5 = vpop.f32.mrb[2].mxu0  ;;  %v506_v6 = vpop.f32.mrb[2].mxu1 }
 0x11d   :  { %v901_v7 = vpack.c.bf16 %v503_v1, %v503_v1  ;;  %v434_v8 = vadd.f32 %v433_v5, %v1168_v59  ;;  %v507_v9 = vadd.f32 %v506_v6, %v1171_v60  ;;  %v435_v10 = vpop.f32.mrb[3].mxu0  ;;  %v1183_v11 = vpop.f32.mrb[3].mxu1  ;;  %v123_v5 = vsub.s32 5, %v1160_v54 }
 0x11e   :  { %v900_v12 = vpack.c.bf16 %v432_v4, %v430_v0  ;;  %v436_v13 = vadd.f32 %v435_v10, %v1174_v61  ;;  %v119_v0 = vsub.s32 4, %v1160_v54 }
 0x11f   :  { %695 = vst [vmem:[%s1317_s3 + $0x8] sm:$0xf] %v901_v7  ;;  %v903_v14 = vpack.c.bf16 %v507_v9, %v507_v9 }
 0x120   :  { %694 = vst [vmem:[%s1317_s3] sm:$0xff] %v900_v12  ;;  %v902_v15 = vpack.c.bf16 %v436_v13, %v434_v8 }
 0x121   :  { %697 = vst [vmem:[%s1317_s3 + $0x14] sm:$0xf] %v903_v14  ;;  %v116_v14 = vrot.slane %v1164_v57, %v115_v55 }
 0x122   :  { %696 = vst [vmem:[%s1317_s3 + $0xc] sm:$0xff] %v902_v15  ;;  %v439_v16 = vpop.f32.mrb[4].mxu0  ;;  %v512_v17 = vpop.f32.mrb[4].mxu1 }
 0x123   :  { %v440_v18 = vadd.f32 %v439_v16, %v1168_v59  ;;  %v513_v19 = vadd.f32 %v512_v17, %v1171_v60  ;;  %v441_v20 = vpop.f32.mrb[5].mxu0  ;;  %v1200_v21 = vpop.f32.mrb[5].mxu1  ;;  %v120_v16 = vrot.slane %v1164_v57, %v119_v0  ;;  %v505_v17 = vadd.f32 %v1178_v3, %v116_v14 }
 0x124   :  { %v442_v22 = vadd.f32 %v441_v20, %v1174_v61  ;;  %v443_v23 = vpop.f32.mrb[6].mxu0  ;;  %v516_v24 = vpop.f32.mrb[6].mxu1 }
 0x125   :  { %v905_v25 = vpack.c.bf16 %v513_v19, %v513_v19  ;;  %v444_v26 = vadd.f32 %v443_v23, %v1168_v59  ;;  %v517_v27 = vadd.f32 %v516_v24, %v1171_v60  ;;  %v445_v28 = vpop.f32.mrb[7].mxu0  ;;  %v1205_v29 = vpop.f32.mrb[7].mxu1  ;;  %v509_v24 = vadd.f32 %v1183_v11, %v116_v14 }
 0x126   :  { %v904_v30 = vpack.c.bf16 %v442_v22, %v440_v18  ;;  %v446_v31 = vadd.f32 %v445_v28, %v1174_v61 }
 0x127   :  { %699 = vst [vmem:[%s1317_s3 + $0x20] sm:$0xf] %v905_v25  ;;  %v907_v32 = vpack.c.bf16 %v517_v27, %v517_v27 }
 0x128   :  { %698 = vst [vmem:[%s1317_s3 + $0x18] sm:$0xff] %v904_v30  ;;  %v906_v33 = vpack.c.bf16 %v446_v31, %v444_v26 }
 0x129   :  { %701 = vst [vmem:[%s1317_s3 + $0x2c] sm:$0xf] %v907_v32 }
 0x12a   :  { %700 = vst [vmem:[%s1317_s3 + $0x24] sm:$0xff] %v906_v33  ;;  %v449_v34 = vpop.f32.mrb[8].mxu0  ;;  %v522_v35 = vpop.f32.mrb[8].mxu1 }
 0x12b   :  { %v450_v36 = vadd.f32 %v449_v34, %v1168_v59  ;;  %v523_v37 = vadd.f32 %v522_v35, %v1171_v60  ;;  %v451_v38 = vpop.f32.mrb[9].mxu0  ;;  %v524_v39 = vpop.f32.mrb[9].mxu1 }
 0x12c   :  { %v452_v40 = vadd.f32 %v451_v38, %v1174_v61  ;;  %v453_v41 = vpop.f32.mrb[10].mxu0  ;;  %v526_v42 = vpop.f32.mrb[10].mxu1  ;;  %v525_v18 = vadd.f32 %v524_v39, %v116_v14 }
 0x12d   :  { %v909_v43 = vpack.c.bf16 %v523_v37, %v523_v37  ;;  %v454_v44 = vadd.f32 %v453_v41, %v1168_v59  ;;  %v527_v45 = vadd.f32 %v526_v42, %v1171_v60  ;;  %v455_v46 = vpop.f32.mrb[11].mxu0  ;;  %v528_v47 = vpop.f32.mrb[11].mxu1 }
 0x12e   :  { %v908_v48 = vpack.c.bf16 %v452_v40, %v450_v36  ;;  %v456_v49 = vadd.f32 %v455_v46, %v1174_v61 }
 0x12f   :  { %703 = vst [vmem:[%s1317_s3 + $0x38] sm:$0xf] %v909_v43  ;;  %v911_v50 = vpack.c.bf16 %v527_v45, %v527_v45 }
 0x130   :  { %702 = vst [vmem:[%s1317_s3 + $0x30] sm:$0xff] %v908_v48  ;;  %v910_v51 = vpack.c.bf16 %v456_v49, %v454_v44  ;;  %v515_v44 = vadd.f32 %v1200_v21, %v116_v14 }
 0x131   :  { %705 = vst [vmem:[%s1317_s3 + $0x44] sm:$0xf] %v911_v50  ;;  %v519_v50 = vadd.f32 %v1205_v29, %v116_v14 }
 0x132   :  { %704 = vst [vmem:[%s1317_s3 + $0x3c] sm:$0xff] %v910_v51  ;;  %v459_v52 = vpop.f32.mrb[12].mxu0  ;;  %v532_v53 = vpop.f32.mrb[12].mxu1 }
 0x133   :  { %v460_v56 = vadd.f32 %v459_v52, %v1168_v59  ;;  %v533_v58 = vadd.f32 %v532_v53, %v1171_v60  ;;  %v461_v62 = vpop.f32.mrb[13].mxu0  ;;  %v534_v63 = vpop.f32.mrb[13].mxu1 }
 0x134   :  { %v462_v1 = vadd.f32 %v461_v62, %v1174_v61  ;;  %v463_v2 = vpop.f32.mrb[14].mxu0  ;;  %v536_v4 = vpop.f32.mrb[14].mxu1  ;;  %v535_v45 = vadd.f32 %v534_v63, %v116_v14 }
 0x135   :  { %v913_v6 = vpack.c.bf16 %v533_v58, %v533_v58  ;;  %v464_v7 = vadd.f32 %v463_v2, %v1168_v59  ;;  %v537_v8 = vadd.f32 %v536_v4, %v1171_v60  ;;  %v465_v9 = vpop.f32.mrb[15].mxu0  ;;  %v538_v10 = vpop.f32.mrb[15].mxu1  ;;  %v124_v59 = vrot.slane %v1164_v57, %v123_v5 }
 0x136   :  { %v912_v12 = vpack.c.bf16 %v462_v1, %v460_v56  ;;  %v466_v13 = vadd.f32 %v465_v9, %v1174_v61  ;;  %v529_v57 = vadd.f32 %v528_v47, %v116_v14  ;;  %v539_v51 = vadd.f32 %v538_v10, %v116_v14 }
 0x137   :  { %707 = vst [vmem:[%s1317_s3 + $0x50] sm:$0xf] %v913_v6  ;;  %v915_v15 = vpack.c.bf16 %v537_v8, %v537_v8 }
 0x138   :  { %706 = vst [vmem:[%s1317_s3 + $0x48] sm:$0xff] %v912_v12  ;;  %v914_v54 = vpack.c.bf16 %v466_v13, %v464_v7 }
 0x139   :  { %709 = vst [vmem:[%s1317_s3 + $0x5c] sm:$0xf] %v915_v15 }
 0x13a   :  { %708 = vst [vmem:[%s1317_s3 + $0x54] sm:$0xff] %v914_v54  ;;  %v575_v60 = vpop.f32.mrb[16].mxu0  ;;  %v595_v61 = vpop.f32.mrb[16].mxu1 }
 0x13b   :  { %v576_v19 = vadd.f32 %v575_v60, %v120_v16  ;;  %v596_v20 = vadd.f32 %v595_v61, %v120_v16  ;;  %v577_v22 = vpop.f32.mrb[17].mxu0  ;;  %v597_v23 = vpop.f32.mrb[17].mxu1 }
 0x13c   :  { %v578_v25 = vadd.f32 %v577_v22, %v124_v59  ;;  %v598_v26 = vadd.f32 %v597_v23, %v124_v59  ;;  %v579_v27 = vpop.f32.mrb[18].mxu0  ;;  %v599_v28 = vpop.f32.mrb[18].mxu1 }
 0x13d   :  { %v916_v30 = vpack.c.bf16 %v576_v19, %v505_v17  ;;  %v924_v31 = vpack.c.bf16 %v596_v20, %v525_v18  ;;  %v580_v32 = vadd.f32 %v579_v27, %v120_v16  ;;  %v600_v33 = vadd.f32 %v599_v28, %v120_v16  ;;  %v581_v34 = vpop.f32.mrb[19].mxu0  ;;  %v601_v35 = vpop.f32.mrb[19].mxu1 }
 0x13e   :  { %v917_v36 = vpack.c.bf16 %v578_v25, %v578_v25  ;;  %v925_v3 = vpack.c.bf16 %v598_v26, %v598_v26  ;;  %v582_v37 = vadd.f32 %v581_v34, %v124_v59  ;;  %v602_v38 = vadd.f32 %v601_v35, %v124_v59 }
 0x13f   :  { %790 = vst [vmem:[%s1318_s4] sm:$0xff] %v916_v30  ;;  %798 = vst [vmem:[%s1318_s4 + $0x30] sm:$0xff] %v924_v31  ;;  %v918_v11 = vpack.c.bf16 %v580_v32, %v509_v24  ;;  %v926_v39 = vpack.c.bf16 %v600_v33, %v529_v57 }
 0x140   :  { %791 = vst [vmem:[%s1318_s4 + $0x8] sm:$0xf] %v917_v36  ;;  %799 = vst [vmem:[%s1318_s4 + $0x38] sm:$0xf] %v925_v3  ;;  %v919_v40 = vpack.c.bf16 %v582_v37, %v582_v37  ;;  %v927_v41 = vpack.c.bf16 %v602_v38, %v602_v38 }
 0x141   :  { %792 = vst [vmem:[%s1318_s4 + $0xc] sm:$0xff] %v918_v11  ;;  %800 = vst [vmem:[%s1318_s4 + $0x3c] sm:$0xff] %v926_v39 }
 0x142   :  { %793 = vst [vmem:[%s1318_s4 + $0x14] sm:$0xf] %v919_v40  ;;  %801 = vst [vmem:[%s1318_s4 + $0x44] sm:$0xf] %v927_v41  ;;  %v585_v42 = vpop.f32.mrb[20].mxu0  ;;  %v605_v43 = vpop.f32.mrb[20].mxu1 }
 0x143   :  { %v586_v46 = vadd.f32 %v585_v42, %v120_v16  ;;  %v606_v47 = vadd.f32 %v605_v43, %v120_v16  ;;  %v587_v48 = vpop.f32.mrb[21].mxu0  ;;  %v607_v49 = vpop.f32.mrb[21].mxu1 }
 0x144   :  { %v588_v52 = vadd.f32 %v587_v48, %v124_v59  ;;  %v608_v53 = vadd.f32 %v607_v49, %v124_v59  ;;  %v589_v55 = vpop.f32.mrb[22].mxu0  ;;  %v609_v56 = vpop.f32.mrb[22].mxu1 }
 0x145   :  { %v920_v58 = vpack.c.bf16 %v586_v46, %v515_v44  ;;  %v928_v62 = vpack.c.bf16 %v606_v47, %v535_v45  ;;  %v590_v0 = vadd.f32 %v589_v55, %v120_v16  ;;  %v610_v1 = vadd.f32 %v609_v56, %v120_v16  ;;  %v591_v2 = vpop.f32.mrb[23].mxu0  ;;  %v611_v4 = vpop.f32.mrb[23].mxu1 }
 0x146   :  { %v921_v5 = vpack.c.bf16 %v588_v52, %v588_v52  ;;  %v929_v21 = vpack.c.bf16 %v608_v53, %v608_v53  ;;  %v592_v63 = vadd.f32 %v591_v2, %v124_v59  ;;  %v612_v6 = vadd.f32 %v611_v4, %v124_v59 }
 0x147   :  { %794 = vst [vmem:[%s1318_s4 + $0x18] sm:$0xff] %v920_v58  ;;  %802 = vst [vmem:[%s1318_s4 + $0x48] sm:$0xff] %v928_v62  ;;  %v922_v29 = vpack.c.bf16 %v590_v0, %v519_v50  ;;  %v930_v7 = vpack.c.bf16 %v610_v1, %v539_v51 }
 0x148   :  { %795 = vst [vmem:[%s1318_s4 + $0x20] sm:$0xf] %v921_v5  ;;  %803 = vst [vmem:[%s1318_s4 + $0x50] sm:$0xf] %v929_v21  ;;  %v923_v8 = vpack.c.bf16 %v592_v63, %v592_v63  ;;  %v931_v9 = vpack.c.bf16 %v612_v6, %v612_v6 }
 0x149   :  { %796 = vst [vmem:[%s1318_s4 + $0x24] sm:$0xff] %v922_v29  ;;  %804 = vst [vmem:[%s1318_s4 + $0x54] sm:$0xff] %v930_v7 }
 0x14a   :  { %797 = vst [vmem:[%s1318_s4 + $0x2c] sm:$0xf] %v923_v8  ;;  %805 = vst [vmem:[%s1318_s4 + $0x5c] sm:$0xf] %v931_v9 }
 0x14b   :  { %814 = vsyncpa [#allocation3], 1 }
 0x14c   :  { %815 = vsyncpa [#allocation5], 1 }

// kernel: stacked_gru_encoder.6
= control target key start
LH: loop header
LB: loop body
LE: loop exit
PB: predicated region body
PF: predicated region fallthrough
CT: control target
= control target key end

     0   :  { %v1750_v1 = vmov 0   ;;  %s2336_s3 = inlined_call_operand.vmem [shape: bf16[128,768], index: 3, kind: input, shape index: {}]   ;;  %s2337_s1 = inlined_call_operand.vmem [shape: bf16[64,128], index: 1, kind: input, shape index: {}]   ;;  %s2338_s2 = inlined_call_operand.vmem [shape: bf16[128,768], index: 2, kind: input, shape index: {}]   ;;  %s2339_s0 = inlined_call_operand.vmem [shape: bf16[64,128], index: 0, kind: input, shape index: {}]   ;;  %s2340_s4 = inlined_call_operand.vmem [shape: f32[1,768], index: 4, kind: input, shape index: {}]   ;;  %s2341_s5 = inlined_call_operand.vmem [shape: bf16[64,384], index: 5, kind: output, shape index: {0}]   ;;  %s2342_s6 = inlined_call_operand.vmem [shape: bf16[64,384], index: 6, kind: output, shape index: {1}]  }
   0x1   :  { %v1598_v0 = vld [vmem:[%s2336_s3 + $0x4] ss:$24 sps:$4 sm:$0xff]   ;;  %431 = vmatprep.mubr.bf16.mxu1 %v1750_v1  ;;  %577 = vmatprep.mubr.bf16.mxu0 %v1750_v1  ;;  %v1600_v2 = vld [vmem:[%s2336_s3 + $0x14] ss:$24 sps:$4 sm:$0xff]   ;;  %v1602_v3 = vld [vmem:[%s2336_s3] ss:$24 sps:$4 sm:$0xff]  }
   0x2   :  { %399 = vmatprep.subr.bf16.mxu1 %v1598_v0  ;;  %v1603_v4 = vld [vmem:[%s2336_s3 + $0x10] ss:$24 sps:$4 sm:$0xff]   ;;  %545 = vmatprep.subr.bf16.mxu0 %v1600_v2  ;;  %v1604_v5 = vld [vmem:[%s2336_s3 + $0x34] ss:$24 sps:$4 sm:$0xff]   ;;  %v1606_v6 = vld [vmem:[%s2336_s3 + $0x44] ss:$24 sps:$4 sm:$0xff]  }
   0x3   :  { %400 = vmatpush1.bf16.msra.mxu1 %v1602_v3  ;;  %546 = vmatpush1.bf16.msra.mxu0 %v1603_v4  ;;  %v1608_v7 = vld [vmem:[%s2336_s3 + $0x30] ss:$24 sps:$4 sm:$0xff]   ;;  %v1609_v8 = vld [vmem:[%s2336_s3 + $0x40] ss:$24 sps:$4 sm:$0xff]   ;;  %v1610_v9 = vld [vmem:[%s2336_s3 + $0x64] ss:$24 sps:$4 sm:$0xff]  }
   0x4   :  { %401 = vmatprep.subr.bf16.mxu1 %v1604_v5  ;;  %547 = vmatprep.subr.bf16.mxu0 %v1606_v6  ;;  %v1612_v10 = vld [vmem:[%s2336_s3 + $0x74] ss:$24 sps:$4 sm:$0xff]   ;;  %v1614_v11 = vld [vmem:[%s2336_s3 + $0x60] ss:$24 sps:$4 sm:$0xff]   ;;  %v1615_v12 = vld [vmem:[%s2336_s3 + $0x70] ss:$24 sps:$4 sm:$0xff]  }
   0x5   :  { %v1616_v13 = vld [vmem:[%s2336_s3 + $0x94] ss:$24 sps:$4 sm:$0xff]   ;;  %v1618_v14 = vld [vmem:[%s2336_s3 + $0xa4] ss:$24 sps:$4 sm:$0xff]   ;;  %v1620_v15 = vld [vmem:[%s2336_s3 + $0x90] ss:$24 sps:$4 sm:$0xff]  }
   0x6   :  { %v1621_v16 = vld [vmem:[%s2336_s3 + $0xa0] ss:$24 sps:$4 sm:$0xff]   ;;  %v1622_v17 = vld [vmem:[%s2336_s3 + $0xc4] ss:$24 sps:$4 sm:$0xff]   ;;  %v1624_v18 = vld [vmem:[%s2336_s3 + $0xd4] ss:$24 sps:$4 sm:$0xff]  }
   0x7   :  { %402 = vmatpush1.bf16.msra.mxu1 %v1608_v7  ;;  %548 = vmatpush1.bf16.msra.mxu0 %v1609_v8  ;;  %v1626_v19 = vld [vmem:[%s2336_s3 + $0xc0] ss:$24 sps:$4 sm:$0xff]   ;;  %v1627_v20 = vld [vmem:[%s2336_s3 + $0xd0] ss:$24 sps:$4 sm:$0xff]   ;;  %v1628_v21 = vld [vmem:[%s2336_s3 + $0xf4] ss:$24 sps:$4 sm:$0xff]  }
   0x8   :  { %403 = vmatprep.subr.bf16.mxu1 %v1610_v9  ;;  %549 = vmatprep.subr.bf16.mxu0 %v1612_v10  ;;  %v1630_v22 = vld [vmem:[%s2336_s3 + $0x104] ss:$24 sps:$4 sm:$0xff]   ;;  %v1632_v23 = vld [vmem:[%s2336_s3 + $0xf0] ss:$24 sps:$4 sm:$0xff]   ;;  %v1633_v24 = vld [vmem:[%s2336_s3 + $0x100] ss:$24 sps:$4 sm:$0xff]  }
   0x9   :  { %v1634_v25 = vld [vmem:[%s2336_s3 + $0x124] ss:$24 sps:$4 sm:$0xff]   ;;  %v1636_v26 = vld [vmem:[%s2336_s3 + $0x134] ss:$24 sps:$4 sm:$0xff]   ;;  %v1638_v27 = vld [vmem:[%s2336_s3 + $0x120] ss:$24 sps:$4 sm:$0xff]  }
   0xa   :  { %v1639_v28 = vld [vmem:[%s2336_s3 + $0x130] ss:$24 sps:$4 sm:$0xff]   ;;  %v1640_v29 = vld [vmem:[%s2336_s3 + $0x154] ss:$24 sps:$4 sm:$0xff]   ;;  %v1642_v30 = vld [vmem:[%s2336_s3 + $0x164] ss:$24 sps:$4 sm:$0xff]  }
   0xb   :  { %404 = vmatpush1.bf16.msra.mxu1 %v1614_v11  ;;  %550 = vmatpush1.bf16.msra.mxu0 %v1615_v12  ;;  %v1644_v31 = vld [vmem:[%s2336_s3 + $0x150] ss:$24 sps:$4 sm:$0xff]   ;;  %v1645_v32 = vld [vmem:[%s2336_s3 + $0x160] ss:$24 sps:$4 sm:$0xff]   ;;  %v1649_v33 = vld [vmem:[%s2336_s3 + $0xc] ss:$24 sps:$4 sm:$0xff]  }
   0xc   :  { %405 = vmatprep.subr.bf16.mxu1 %v1616_v13  ;;  %551 = vmatprep.subr.bf16.mxu0 %v1618_v14  ;;  %v1652_v34 = vld [vmem:[%s2338_s2 + $0x4] ss:$24 sps:$4 sm:$0xff]   ;;  %v1647_v36 = vld [vmem:[%s2336_s3 + $0x8] ss:$24 sps:$4 sm:$0xff]   ;;  %v1658_v39 = vld [vmem:[%s2338_s2 + $0x34] ss:$24 sps:$4 sm:$0xff]  }
   0xd   :  { %v1893_v35 = vld [vmem:[%s2337_s1] sm:$0xff]   ;;  %v1655_v38 = vld [vmem:[%s2336_s3 + $0x3c] ss:$24 sps:$4 sm:$0xff]   ;;  %v1653_v40 = vld [vmem:[%s2336_s3 + $0x38] ss:$24 sps:$4 sm:$0xff]  }
   0xe   :  { %v1650_v37 = vld [vmem:[%s2338_s2] ss:$24 sps:$4 sm:$0xff]   ;;  %v1656_v41 = vld [vmem:[%s2338_s2 + $0x30] ss:$24 sps:$4 sm:$0xff]   ;;  %v1662_v42 = vld [vmem:[%s2336_s3 + $0x6c] ss:$24 sps:$4 sm:$0xff]  }
   0xf   :  { %406 = vmatpush1.bf16.msra.mxu1 %v1620_v15  ;;  %552 = vmatpush1.bf16.msra.mxu0 %v1621_v16  ;;  %v1665_v43 = vld [vmem:[%s2338_s2 + $0x64] ss:$24 sps:$4 sm:$0xff]   ;;  %v1926_v44 = vld [vmem:[%s2337_s1 + $0x8] sm:$0xff]   ;;  %v1663_v46 = vld [vmem:[%s2338_s2 + $0x60] ss:$24 sps:$4 sm:$0xff]  }
  0x10   :  { %407 = vmatprep.subr.bf16.mxu1 %v1622_v17  ;;  %553 = vmatprep.subr.bf16.mxu0 %v1624_v18  ;;  %v1660_v45 = vld [vmem:[%s2336_s3 + $0x68] ss:$24 sps:$4 sm:$0xff]   ;;  %v1668_v47 = vld [vmem:[%s2336_s3 + $0x9c] ss:$24 sps:$4 sm:$0xff]   ;;  %v1666_v49 = vld [vmem:[%s2336_s3 + $0x98] ss:$24 sps:$4 sm:$0xff]  }
  0x11   :  { %v1671_v48 = vld [vmem:[%s2338_s2 + $0x94] ss:$24 sps:$4 sm:$0xff]   ;;  %v1669_v50 = vld [vmem:[%s2338_s2 + $0x90] ss:$24 sps:$4 sm:$0xff]   ;;  %v1678_v52 = vld [vmem:[%s2338_s2 + $0xc4] ss:$24 sps:$4 sm:$0xff]  }
  0x12   :  { %v1675_v51 = vld [vmem:[%s2336_s3 + $0xcc] ss:$24 sps:$4 sm:$0xff]   ;;  %v1959_v53 = vld [vmem:[%s2337_s1 + $0x10] sm:$0xff]   ;;  %v1673_v54 = vld [vmem:[%s2336_s3 + $0xc8] ss:$24 sps:$4 sm:$0xff]  }
  0x13   :  { %408 = vmatpush1.bf16.msra.mxu1 %v1626_v19  ;;  %554 = vmatpush1.bf16.msra.mxu0 %v1627_v20  ;;  %v1676_v55 = vld [vmem:[%s2338_s2 + $0xc0] ss:$24 sps:$4 sm:$0xff]   ;;  %v1681_v56 = vld [vmem:[%s2336_s3 + $0xfc] ss:$24 sps:$4 sm:$0xff]   ;;  %v1682_v59 = vld [vmem:[%s2338_s2 + $0xf0] ss:$24 sps:$4 sm:$0xff]  }
  0x14   :  { %409 = vmatprep.subr.bf16.mxu1 %v1628_v21  ;;  %555 = vmatprep.subr.bf16.mxu0 %v1630_v22  ;;  %v1684_v57 = vld [vmem:[%s2338_s2 + $0xf4] ss:$24 sps:$4 sm:$0xff]   ;;  %v1679_v58 = vld [vmem:[%s2336_s3 + $0xf8] ss:$24 sps:$4 sm:$0xff]   ;;  %v1691_v61 = vld [vmem:[%s2338_s2 + $0x124] ss:$24 sps:$4 sm:$0xff]  }
  0x15   :  { %v1688_v60 = vld [vmem:[%s2336_s3 + $0x12c] ss:$24 sps:$4 sm:$0xff]   ;;  %v1992_v62 = vld [vmem:[%s2337_s1 + $0x18] sm:$0xff]   ;;  %v1686_v63 = vld [vmem:[%s2336_s3 + $0x128] ss:$24 sps:$4 sm:$0xff]  }
  0x16   :  { %v1689_v0 = vld [vmem:[%s2338_s2 + $0x120] ss:$24 sps:$4 sm:$0xff]   ;;  %v1694_v2 = vld [vmem:[%s2336_s3 + $0x15c] ss:$24 sps:$4 sm:$0xff]   ;;  %v1695_v5 = vld [vmem:[%s2338_s2 + $0x150] ss:$24 sps:$4 sm:$0xff]  }
  0x17   :  { %410 = vmatpush1.bf16.msra.mxu1 %v1632_v23  ;;  %556 = vmatpush1.bf16.msra.mxu0 %v1633_v24  ;;  %v1697_v3 = vld [vmem:[%s2338_s2 + $0x154] ss:$24 sps:$4 sm:$0xff]   ;;  %v1692_v4 = vld [vmem:[%s2336_s3 + $0x158] ss:$24 sps:$4 sm:$0xff]   ;;  %v2025_v8 = vld [vmem:[%s2339_s0] sm:$0xff]  }
  0x18   :  { %411 = vmatprep.subr.bf16.mxu1 %v1634_v25  ;;  %557 = vmatprep.subr.bf16.mxu0 %v1636_v26  ;;  %v1701_v6 = vld [vmem:[%s2338_s2 + $0xc] ss:$24 sps:$4 sm:$0xff]   ;;  %v1699_v9 = vld [vmem:[%s2338_s2 + $0x8] ss:$24 sps:$4 sm:$0xff]   ;;  %v1707_v11 = vld [vmem:[%s2338_s2 + $0x3c] ss:$24 sps:$4 sm:$0xff]  }
  0x19   :  { %v1704_v7 = vld [vmem:[%s2338_s2 + $0x14] ss:$24 sps:$4 sm:$0xff]   ;;  %v1702_v10 = vld [vmem:[%s2338_s2 + $0x10] ss:$24 sps:$4 sm:$0xff]   ;;  %v1710_v12 = vld [vmem:[%s2338_s2 + $0x44] ss:$24 sps:$4 sm:$0xff]  }
  0x1a   :  { %v1705_v13 = vld [vmem:[%s2338_s2 + $0x38] ss:$24 sps:$4 sm:$0xff]   ;;  %v1714_v15 = vld [vmem:[%s2338_s2 + $0x6c] ss:$24 sps:$4 sm:$0xff]   ;;  %v1712_v18 = vld [vmem:[%s2338_s2 + $0x68] ss:$24 sps:$4 sm:$0xff]  }
  0x1b   :  { %412 = vmatpush1.bf16.msra.mxu1 %v1638_v27  ;;  %558 = vmatpush1.bf16.msra.mxu0 %v1639_v28  ;;  %v1708_v14 = vld [vmem:[%s2338_s2 + $0x40] ss:$24 sps:$4 sm:$0xff]   ;;  %v1717_v16 = vld [vmem:[%s2338_s2 + $0x74] ss:$24 sps:$4 sm:$0xff]   ;;  %v1715_v19 = vld [vmem:[%s2338_s2 + $0x70] ss:$24 sps:$4 sm:$0xff]  }
  0x1c   :  { %413 = vmatprep.subr.bf16.mxu1 %v1640_v29  ;;  %559 = vmatprep.subr.bf16.mxu0 %v1642_v30  ;;  %v2058_v17 = vld [vmem:[%s2339_s0 + $0x8] sm:$0xff]   ;;  %v1720_v20 = vld [vmem:[%s2338_s2 + $0x9c] ss:$24 sps:$4 sm:$0xff]   ;;  %v1718_v22 = vld [vmem:[%s2338_s2 + $0x98] ss:$24 sps:$4 sm:$0xff]  }
  0x1d   :  { %v1723_v21 = vld [vmem:[%s2338_s2 + $0xa4] ss:$24 sps:$4 sm:$0xff]   ;;  %v1721_v23 = vld [vmem:[%s2338_s2 + $0xa0] ss:$24 sps:$4 sm:$0xff]   ;;  %v1730_v25 = vld [vmem:[%s2338_s2 + $0xd4] ss:$24 sps:$4 sm:$0xff]  }
  0x1e   :  { %v1727_v24 = vld [vmem:[%s2338_s2 + $0xcc] ss:$24 sps:$4 sm:$0xff]   ;;  %v1724_v26 = vld [vmem:[%s2339_s0 + $0x10] sm:$0xff]   ;;  %v1725_v27 = vld [vmem:[%s2338_s2 + $0xc8] ss:$24 sps:$4 sm:$0xff]  }
  0x1f   :  { %414 = vmatpush1.bf16.msra.mxu1 %v1644_v31  ;;  %560 = vmatpush1.bf16.msra.mxu0 %v1645_v32  ;;  %v1728_v28 = vld [vmem:[%s2338_s2 + $0xd0] ss:$24 sps:$4 sm:$0xff]   ;;  %v1733_v29 = vld [vmem:[%s2338_s2 + $0xfc] ss:$24 sps:$4 sm:$0xff]   ;;  %v1734_v32 = vld [vmem:[%s2338_s2 + $0x100] ss:$24 sps:$4 sm:$0xff]  }
  0x20   :  { %472 = vmatprep.subr.bf16.mxu1 %v1649_v33  ;;  %882 = vmatprep.subr.bf16.mxu0 %v1652_v34  ;;  %v1736_v30 = vld [vmem:[%s2338_s2 + $0x104] ss:$24 sps:$4 sm:$0xff]   ;;  %v1731_v31 = vld [vmem:[%s2338_s2 + $0xf8] ss:$24 sps:$4 sm:$0xff]   ;;  %v1743_v34 = vld [vmem:[%s2338_s2 + $0x134] ss:$24 sps:$4 sm:$0xff]  }
  0x21   :  { %v1740_v33 = vld [vmem:[%s2338_s2 + $0x12c] ss:$24 sps:$4 sm:$0xff]  }
  0x22   :  { %432 = vmatmul.mubr.bf16.vlgmr.msra.gmra.mrb[0].mxu1 %v1893_v35  ;;  %578 = vmatmul.mubr.bf16.vlgmr.msra.gmra.mrb[0].mxu0 %v1893_v35 }
  0x23   :  { %473 = vmatpush1.bf16.msra.mxu1 %v1647_v36  ;;  %883 = vmatpush1.bf16.msra.mxu0 %v1650_v37  ;;  %v1738_v36 = vld [vmem:[%s2338_s2 + $0x128] ss:$24 sps:$4 sm:$0xff]  }
  0x24   :  { %474 = vmatprep.subr.bf16.mxu1 %v1655_v38  ;;  %884 = vmatprep.subr.bf16.mxu0 %v1658_v39  ;;  %v1741_v37 = vld [vmem:[%s2338_s2 + $0x130] ss:$24 sps:$4 sm:$0xff]   ;;  %v1746_v38 = vld [vmem:[%s2338_s2 + $0x15c] ss:$24 sps:$4 sm:$0xff]  }
  0x25   :  { %441 = vmatprep.mubr.bf16.mxu1 %v1750_v1  ;;  %587 = vmatprep.mubr.bf16.mxu0 %v1750_v1  ;;  %v1749_v39 = vld [vmem:[%s2338_s2 + $0x164] ss:$24 sps:$4 sm:$0xff]  }
  0x27   :  { %475 = vmatpush1.bf16.msra.mxu1 %v1653_v40  ;;  %885 = vmatpush1.bf16.msra.mxu0 %v1656_v41  ;;  %v1744_v40 = vld [vmem:[%s2338_s2 + $0x158] ss:$24 sps:$4 sm:$0xff]  }
  0x28   :  { %476 = vmatprep.subr.bf16.mxu1 %v1662_v42  ;;  %886 = vmatprep.subr.bf16.mxu0 %v1665_v43  ;;  %v1747_v41 = vld [vmem:[%s2338_s2 + $0x160] ss:$24 sps:$4 sm:$0xff]  }
  0x2a   :  { %442 = vmatmul.mubr.bf16.gmra.mrb[4].mxu1 %v1926_v44  ;;  %588 = vmatmul.mubr.bf16.gmra.mrb[4].mxu0 %v1926_v44 }
  0x2b   :  { %477 = vmatpush1.bf16.msra.mxu1 %v1660_v45  ;;  %887 = vmatpush1.bf16.msra.mxu0 %v1663_v46 }
  0x2c   :  { %478 = vmatprep.subr.bf16.mxu1 %v1668_v47  ;;  %888 = vmatprep.subr.bf16.mxu0 %v1671_v48 }
  0x2d   :  { %451 = vmatprep.mubr.bf16.mxu1 %v1750_v1  ;;  %597 = vmatprep.mubr.bf16.mxu0 %v1750_v1 }
  0x2f   :  { %479 = vmatpush1.bf16.msra.mxu1 %v1666_v49  ;;  %889 = vmatpush1.bf16.msra.mxu0 %v1669_v50 }
  0x30   :  { %480 = vmatprep.subr.bf16.mxu1 %v1675_v51  ;;  %890 = vmatprep.subr.bf16.mxu0 %v1678_v52 }
  0x32   :  { %452 = vmatmul.mubr.bf16.gmra.mrb[8].mxu1 %v1959_v53  ;;  %598 = vmatmul.mubr.bf16.gmra.mrb[8].mxu0 %v1959_v53 }
  0x33   :  { %481 = vmatpush1.bf16.msra.mxu1 %v1673_v54  ;;  %891 = vmatpush1.bf16.msra.mxu0 %v1676_v55  ;;  %v1103_v54 = vlaneseq }
  0x34   :  { %482 = vmatprep.subr.bf16.mxu1 %v1681_v56  ;;  %892 = vmatprep.subr.bf16.mxu0 %v1684_v57 }
  0x35   :  { %461 = vmatprep.mubr.bf16.mxu1 %v1750_v1  ;;  %607 = vmatprep.mubr.bf16.mxu0 %v1750_v1  ;;  %v2152_v55 = vshrl.u32 %v1103_v54, 7 }
  0x37   :  { %483 = vmatpush1.bf16.msra.mxu1 %v1679_v58  ;;  %893 = vmatpush1.bf16.msra.mxu0 %v1682_v59  ;;  %v1105_v59 = vsub.s32 0, %v2152_v55 }
  0x38   :  { %484 = vmatprep.subr.bf16.mxu1 %v1688_v60  ;;  %894 = vmatprep.subr.bf16.mxu0 %v1691_v61  ;;  %v2164_v60 = vld [vmem:[%s2340_s4] sm:$0x3f]  ;;  %v1109_v61 = vsub.s32 1, %v2152_v55 }
  0x3a   :  { %462 = vmatmul.mubr.bf16.gmra.mrb[12].mxu1 %v1992_v62  ;;  %608 = vmatmul.mubr.bf16.gmra.mrb[12].mxu0 %v1992_v62 }
  0x3b   :  { %485 = vmatpush1.bf16.msra.mxu1 %v1686_v63  ;;  %895 = vmatpush1.bf16.msra.mxu0 %v1689_v0  ;;  %v2171_v0 = vrot.slane %v2164_v60, %v1109_v61 }
  0x3c   :  { %486 = vmatprep.subr.bf16.mxu1 %v1694_v2  ;;  %896 = vmatprep.subr.bf16.mxu0 %v1697_v3 }
  0x3d   :  { %504 = vmatprep.mubr.bf16.mxu1 %v1750_v1  ;;  %914 = vmatprep.mubr.bf16.mxu0 %v1750_v1 }
  0x3f   :  { %487 = vmatpush1.bf16.msra.mxu1 %v1692_v4  ;;  %897 = vmatpush1.bf16.msra.mxu0 %v1695_v5 }
  0x40   :  { %955 = vmatprep.subr.bf16.mxu1 %v1701_v6  ;;  %1028 = vmatprep.subr.bf16.mxu0 %v1704_v7 }
  0x42   :  { %505 = vmatmul.mubr.bf16.vlgmr.msra.gmra.mrb[16].mxu1 %v1893_v35  ;;  %915 = vmatmul.mubr.bf16.vlgmr.msra.gmra.mrb[16].mxu0 %v2025_v8  ;;  %v1737_v35 = vld [vmem:[%s2339_s0 + $0x18] sm:$0xff]  }
  0x43   :  { %956 = vmatpush1.bf16.msra.mxu1 %v1699_v9  ;;  %1029 = vmatpush1.bf16.msra.mxu0 %v1702_v10 }
  0x44   :  { %957 = vmatprep.subr.bf16.mxu1 %v1707_v11  ;;  %1030 = vmatprep.subr.bf16.mxu0 %v1710_v12 }
  0x45   :  { %514 = vmatprep.mubr.bf16.mxu1 %v1750_v1  ;;  %924 = vmatprep.mubr.bf16.mxu0 %v1750_v1 }
  0x47   :  { %958 = vmatpush1.bf16.msra.mxu1 %v1705_v13  ;;  %1031 = vmatpush1.bf16.msra.mxu0 %v1708_v14 }
  0x48   :  { %959 = vmatprep.subr.bf16.mxu1 %v1714_v15  ;;  %1032 = vmatprep.subr.bf16.mxu0 %v1717_v16 }
  0x4a   :  { %515 = vmatmul.mubr.bf16.gmra.mrb[20].mxu1 %v1926_v44  ;;  %925 = vmatmul.mubr.bf16.gmra.mrb[20].mxu0 %v2058_v17 }
  0x4b   :  { %960 = vmatpush1.bf16.msra.mxu1 %v1712_v18  ;;  %1033 = vmatpush1.bf16.msra.mxu0 %v1715_v19 }
  0x4c   :  { %961 = vmatprep.subr.bf16.mxu1 %v1720_v20  ;;  %1034 = vmatprep.subr.bf16.mxu0 %v1723_v21 }
  0x4d   :  { %524 = vmatprep.mubr.bf16.mxu1 %v1750_v1  ;;  %934 = vmatprep.mubr.bf16.mxu0 %v1750_v1 }
  0x4f   :  { %962 = vmatpush1.bf16.msra.mxu1 %v1718_v22  ;;  %1035 = vmatpush1.bf16.msra.mxu0 %v1721_v23 }
  0x50   :  { %963 = vmatprep.subr.bf16.mxu1 %v1727_v24  ;;  %1036 = vmatprep.subr.bf16.mxu0 %v1730_v25 }
  0x52   :  { %525 = vmatmul.mubr.bf16.gmra.mrb[24].mxu1 %v1959_v53  ;;  %935 = vmatmul.mubr.bf16.gmra.mrb[24].mxu0 %v1724_v26 }
  0x53   :  { %964 = vmatpush1.bf16.msra.mxu1 %v1725_v27  ;;  %1037 = vmatpush1.bf16.msra.mxu0 %v1728_v28 }
  0x54   :  { %965 = vmatprep.subr.bf16.mxu1 %v1733_v29  ;;  %1038 = vmatprep.subr.bf16.mxu0 %v1736_v30 }
  0x55   :  { %534 = vmatprep.mubr.bf16.mxu1 %v1750_v1  ;;  %944 = vmatprep.mubr.bf16.mxu0 %v1750_v1 }
  0x57   :  { %966 = vmatpush1.bf16.msra.mxu1 %v1731_v31  ;;  %1039 = vmatpush1.bf16.msra.mxu0 %v1734_v32 }
  0x58   :  { %967 = vmatprep.subr.bf16.mxu1 %v1740_v33  ;;  %1040 = vmatprep.subr.bf16.mxu0 %v1743_v34 }
  0x5a   :  { %535 = vmatmul.mubr.bf16.gmra.mrb[28].mxu1 %v1992_v62  ;;  %945 = vmatmul.mubr.bf16.gmra.mrb[28].mxu0 %v1737_v35  ;;  %v2168_v62 = vrot.slane %v2164_v60, %v1105_v59 }
  0x5b   :  { %968 = vmatpush1.bf16.msra.mxu1 %v1738_v36  ;;  %1041 = vmatpush1.bf16.msra.mxu0 %v1741_v37 }
  0x5c   :  { %969 = vmatprep.subr.bf16.mxu1 %v1746_v38  ;;  %1042 = vmatprep.subr.bf16.mxu0 %v1749_v39 }
  0x5d   :  { %987 = vmatprep.mubr.bf16.mxu1 %v1750_v1  ;;  %1060 = vmatprep.mubr.bf16.mxu0 %v1750_v1 }
  0x5f   :  { %970 = vmatpush1.bf16.msra.mxu1 %v1744_v40  ;;  %1043 = vmatpush1.bf16.msra.mxu0 %v1747_v41 }
  0x62   :  { %988 = vmatmul.mubr.bf16.vlgmr.msra.gmra.mrb[16].mxu1 %v2025_v8  ;;  %1061 = vmatmul.mubr.bf16.vlgmr.msra.gmra.mrb[0].mxu0 %v2025_v8 }
  0x63   :  { %997 = vmatprep.mubr.bf16.mxu1 %v1750_v1  ;;  %1070 = vmatprep.mubr.bf16.mxu0 %v1750_v1 }
  0x6a   :  { %998 = vmatmul.mubr.bf16.gmra.mrb[20].mxu1 %v2058_v17  ;;  %1071 = vmatmul.mubr.bf16.gmra.mrb[4].mxu0 %v2058_v17 }
  0x6b   :  { %1007 = vmatprep.mubr.bf16.mxu1 %v1750_v1  ;;  %1080 = vmatprep.mubr.bf16.mxu0 %v1750_v1 }
  0x72   :  { %1008 = vmatmul.mubr.bf16.gmra.mrb[24].mxu1 %v1724_v26  ;;  %1081 = vmatmul.mubr.bf16.gmra.mrb[8].mxu0 %v1724_v26 }
  0x73   :  { %1017 = vmatprep.mubr.bf16.mxu1 %v1750_v1  ;;  %1090 = vmatprep.mubr.bf16.mxu0 %v1750_v1 }
  0x7a   :  { %1018 = vmatmul.mubr.bf16.gmra.mrb[28].mxu1 %v1737_v35  ;;  %1091 = vmatmul.mubr.bf16.gmra.mrb[12].mxu0 %v1737_v35 }
  0xf5   :  { %v433_v42 = vpop.f32.mrb[0].mxu1 }
  0xf6   :  { %v435_v43 = vpop.f32.mrb[1].mxu1 }
  0xf7   :  { %v437_v44 = vpop.f32.mrb[2].mxu1 }
  0xf8   :  { %v439_v45 = vpop.f32.mrb[3].mxu1 }
  0xfd   :  { %v443_v46 = vpop.f32.mrb[4].mxu1 }
  0xfe   :  { %v445_v47 = vpop.f32.mrb[5].mxu1 }
  0xff   :  { %v447_v48 = vpop.f32.mrb[6].mxu1 }
 0x100   :  { %v449_v49 = vpop.f32.mrb[7].mxu1 }
 0x105   :  { %v453_v50 = vpop.f32.mrb[8].mxu1 }
 0x106   :  { %v455_v51 = vpop.f32.mrb[9].mxu1 }
 0x107   :  { %v457_v52 = vpop.f32.mrb[10].mxu1 }
 0x108   :  { %v459_v53 = vpop.f32.mrb[11].mxu1 }
 0x10d   :  { %v463_v56 = vpop.f32.mrb[12].mxu1 }
 0x10e   :  { %v2154_v57 = vpop.f32.mrb[13].mxu1 }
 0x10f   :  { %v2156_v1 = vpop.f32.mrb[14].mxu1 }
 0x110   :  { %v2158_v58 = vpop.f32.mrb[15].mxu1 }
 0x115   :  { %v916_v63 = vpop.f32.mrb[16].mxu0 }
 0x116   :  { %v917_v2 = vadd.f32 %v916_v63, %v433_v42  ;;  %v918_v3 = vpop.f32.mrb[17].mxu0 }
 0x117   :  { %v919_v4 = vadd.f32 %v918_v3, %v435_v43  ;;  %v920_v5 = vpop.f32.mrb[18].mxu0 }
 0x118   :  { %v1133_v6 = vadd.f32 %v2168_v62, %v917_v2  ;;  %v921_v7 = vadd.f32 %v920_v5, %v437_v44  ;;  %v922_v8 = vpop.f32.mrb[19].mxu0 }
 0x119   :  { %v1134_v9 = vadd.f32 %v2171_v0, %v919_v4  ;;  %v923_v10 = vadd.f32 %v922_v8, %v439_v45 }
 0x11a   :  { %v1139_v11 = vadd.f32 %v2168_v62, %v921_v7 }
 0x11b   :  { %v1517_v12 = vpack.c.bf16 %v1134_v9, %v1133_v6  ;;  %v1140_v13 = vadd.f32 %v2171_v0, %v923_v10 }
 0x11d   :  { %1261 = vst [vmem:[%s2341_s5] sm:$0xff] %v1517_v12  ;;  %v1519_v14 = vpack.c.bf16 %v1140_v13, %v1139_v11  ;;  %v926_v15 = vpop.f32.mrb[20].mxu0 }
 0x11e   :  { %v927_v16 = vadd.f32 %v926_v15, %v443_v46  ;;  %v928_v17 = vpop.f32.mrb[21].mxu0  ;;  %v1113_v46 = vsub.s32 2, %v2152_v55 }
 0x11f   :  { %1263 = vst [vmem:[%s2341_s5 + $0xc] sm:$0xff] %v1519_v14  ;;  %v929_v18 = vadd.f32 %v928_v17, %v445_v47  ;;  %v930_v19 = vpop.f32.mrb[22].mxu0  ;;  %v1121_v47 = vsub.s32 4, %v2152_v55 }
 0x120   :  { %v1145_v20 = vadd.f32 %v2168_v62, %v927_v16  ;;  %v931_v21 = vadd.f32 %v930_v19, %v447_v48  ;;  %v932_v22 = vpop.f32.mrb[23].mxu0  ;;  %v2214_v63 = vrot.slane %v2164_v60, %v1113_v46 }
 0x121   :  { %v1146_v23 = vadd.f32 %v2171_v0, %v929_v18  ;;  %v933_v24 = vadd.f32 %v932_v22, %v449_v49 }
 0x122   :  { %v1151_v25 = vadd.f32 %v2168_v62, %v931_v21 }
 0x123   :  { %v1521_v26 = vpack.c.bf16 %v1146_v23, %v1145_v20  ;;  %v1152_v27 = vadd.f32 %v2171_v0, %v933_v24 }
 0x125   :  { %1265 = vst [vmem:[%s2341_s5 + $0x18] sm:$0xff] %v1521_v26  ;;  %v1523_v28 = vpack.c.bf16 %v1152_v27, %v1151_v25  ;;  %v936_v29 = vpop.f32.mrb[24].mxu0 }
 0x126   :  { %v937_v30 = vadd.f32 %v936_v29, %v453_v50  ;;  %v938_v31 = vpop.f32.mrb[25].mxu0  ;;  %v1117_v50 = vsub.s32 3, %v2152_v55 }
 0x127   :  { %1267 = vst [vmem:[%s2341_s5 + $0x24] sm:$0xff] %v1523_v28  ;;  %v939_v32 = vadd.f32 %v938_v31, %v455_v51  ;;  %v940_v33 = vpop.f32.mrb[26].mxu0  ;;  %v1125_v51 = vsub.s32 5, %v2152_v55 }
 0x128   :  { %v1157_v34 = vadd.f32 %v2168_v62, %v937_v30  ;;  %v941_v35 = vadd.f32 %v940_v33, %v457_v52  ;;  %v942_v36 = vpop.f32.mrb[27].mxu0  ;;  %v2221_v3 = vrot.slane %v2164_v60, %v1117_v50 }
 0x129   :  { %v1158_v37 = vadd.f32 %v2171_v0, %v939_v32  ;;  %v943_v38 = vadd.f32 %v942_v36, %v459_v53 }
 0x12a   :  { %v1163_v39 = vadd.f32 %v2168_v62, %v941_v35 }
 0x12b   :  { %v1525_v40 = vpack.c.bf16 %v1158_v37, %v1157_v34  ;;  %v1164_v41 = vadd.f32 %v2171_v0, %v943_v38 }
 0x12d   :  { %1269 = vst [vmem:[%s2341_s5 + $0x30] sm:$0xff] %v1525_v40  ;;  %v1527_v42 = vpack.c.bf16 %v1164_v41, %v1163_v39  ;;  %v946_v43 = vpop.f32.mrb[28].mxu0 }
 0x12e   :  { %v947_v44 = vadd.f32 %v946_v43, %v463_v56  ;;  %v948_v45 = vpop.f32.mrb[29].mxu0 }
 0x12f   :  { %1271 = vst [vmem:[%s2341_s5 + $0x3c] sm:$0xff] %v1527_v42  ;;  %v949_v48 = vadd.f32 %v948_v45, %v2154_v57  ;;  %v950_v49 = vpop.f32.mrb[30].mxu0  ;;  %v2217_v57 = vrot.slane %v2164_v60, %v1121_v47 }
 0x130   :  { %v1169_v52 = vadd.f32 %v2168_v62, %v947_v44  ;;  %v951_v53 = vadd.f32 %v950_v49, %v2156_v1  ;;  %v952_v54 = vpop.f32.mrb[31].mxu0  ;;  %v2224_v1 = vrot.slane %v2164_v60, %v1125_v51 }
 0x131   :  { %v1170_v56 = vadd.f32 %v2171_v0, %v949_v48  ;;  %v953_v59 = vadd.f32 %v952_v54, %v2158_v58 }
 0x132   :  { %v1175_v61 = vadd.f32 %v2168_v62, %v951_v53 }
 0x133   :  { %v1529_v2 = vpack.c.bf16 %v1170_v56, %v1169_v52  ;;  %v1176_v55 = vadd.f32 %v2171_v0, %v953_v59 }
 0x135   :  { %1273 = vst [vmem:[%s2341_s5 + $0x48] sm:$0xff] %v1529_v2  ;;  %v1531_v58 = vpack.c.bf16 %v1176_v55, %v1175_v61  ;;  %v989_v62 = vpop.f32.mrb[16].mxu1  ;;  %v1062_v4 = vpop.f32.mrb[0].mxu0 }
 0x136   :  { %v1135_v5 = vadd.f32 %v2214_v63, %v989_v62  ;;  %v1137_v6 = vadd.f32 %v2217_v57, %v1062_v4  ;;  %v991_v7 = vpop.f32.mrb[17].mxu1  ;;  %v1064_v8 = vpop.f32.mrb[1].mxu0 }
 0x137   :  { %1275 = vst [vmem:[%s2341_s5 + $0x54] sm:$0xff] %v1531_v58  ;;  %v1136_v60 = vadd.f32 %v2221_v3, %v991_v7  ;;  %v1138_v0 = vadd.f32 %v2224_v1, %v1064_v8  ;;  %v993_v9 = vpop.f32.mrb[18].mxu1  ;;  %v1066_v10 = vpop.f32.mrb[2].mxu0 }
 0x138   :  { %v1518_v11 = vpack.c.bf16 %v1135_v5, %v1135_v5  ;;  %v1141_v12 = vadd.f32 %v2214_v63, %v993_v9  ;;  %v1143_v13 = vadd.f32 %v2217_v57, %v1066_v10  ;;  %v995_v14 = vpop.f32.mrb[19].mxu1  ;;  %v1068_v15 = vpop.f32.mrb[3].mxu0 }
 0x139   :  { %v1533_v16 = vpack.c.bf16 %v1137_v6, %v1136_v60  ;;  %v1534_v17 = vpack.c.bf16 %v1138_v0, %v1138_v0  ;;  %v1142_v18 = vadd.f32 %v2221_v3, %v995_v14  ;;  %v1144_v19 = vadd.f32 %v2224_v1, %v1068_v15 }
 0x13a   :  { %1262 = vst [vmem:[%s2341_s5 + $0x8] sm:$0xf] %v1518_v11  ;;  %v1520_v20 = vpack.c.bf16 %v1141_v12, %v1141_v12 }
 0x13b   :  { %1357 = vst [vmem:[%s2342_s6] sm:$0xff] %v1533_v16  ;;  %1358 = vst [vmem:[%s2342_s6 + $0x8] sm:$0xf] %v1534_v17  ;;  %v1535_v21 = vpack.c.bf16 %v1143_v13, %v1142_v18  ;;  %v1536_v22 = vpack.c.bf16 %v1144_v19, %v1144_v19 }
 0x13c   :  { %1264 = vst [vmem:[%s2341_s5 + $0x14] sm:$0xf] %v1520_v20 }
 0x13d   :  { %1359 = vst [vmem:[%s2342_s6 + $0xc] sm:$0xff] %v1535_v21  ;;  %1360 = vst [vmem:[%s2342_s6 + $0x14] sm:$0xf] %v1536_v22  ;;  %v999_v23 = vpop.f32.mrb[20].mxu1  ;;  %v1072_v24 = vpop.f32.mrb[4].mxu0 }
 0x13e   :  { %v1147_v25 = vadd.f32 %v2214_v63, %v999_v23  ;;  %v1149_v26 = vadd.f32 %v2217_v57, %v1072_v24  ;;  %v1001_v27 = vpop.f32.mrb[21].mxu1  ;;  %v1074_v28 = vpop.f32.mrb[5].mxu0 }
 0x13f   :  { %v1148_v29 = vadd.f32 %v2221_v3, %v1001_v27  ;;  %v1150_v30 = vadd.f32 %v2224_v1, %v1074_v28  ;;  %v1003_v31 = vpop.f32.mrb[22].mxu1  ;;  %v1076_v32 = vpop.f32.mrb[6].mxu0 }
 0x140   :  { %v1522_v33 = vpack.c.bf16 %v1147_v25, %v1147_v25  ;;  %v1153_v34 = vadd.f32 %v2214_v63, %v1003_v31  ;;  %v1155_v35 = vadd.f32 %v2217_v57, %v1076_v32  ;;  %v1005_v36 = vpop.f32.mrb[23].mxu1  ;;  %v1078_v37 = vpop.f32.mrb[7].mxu0 }
 0x141   :  { %v1537_v38 = vpack.c.bf16 %v1149_v26, %v1148_v29  ;;  %v1538_v39 = vpack.c.bf16 %v1150_v30, %v1150_v30  ;;  %v1154_v40 = vadd.f32 %v2221_v3, %v1005_v36  ;;  %v1156_v41 = vadd.f32 %v2224_v1, %v1078_v37 }
 0x142   :  { %1266 = vst [vmem:[%s2341_s5 + $0x20] sm:$0xf] %v1522_v33  ;;  %v1524_v42 = vpack.c.bf16 %v1153_v34, %v1153_v34 }
 0x143   :  { %1361 = vst [vmem:[%s2342_s6 + $0x18] sm:$0xff] %v1537_v38  ;;  %1362 = vst [vmem:[%s2342_s6 + $0x20] sm:$0xf] %v1538_v39  ;;  %v1539_v43 = vpack.c.bf16 %v1155_v35, %v1154_v40  ;;  %v1540_v44 = vpack.c.bf16 %v1156_v41, %v1156_v41 }
 0x144   :  { %1268 = vst [vmem:[%s2341_s5 + $0x2c] sm:$0xf] %v1524_v42 }
 0x145   :  { %1363 = vst [vmem:[%s2342_s6 + $0x24] sm:$0xff] %v1539_v43  ;;  %1364 = vst [vmem:[%s2342_s6 + $0x2c] sm:$0xf] %v1540_v44  ;;  %v1009_v45 = vpop.f32.mrb[24].mxu1  ;;  %v1082_v46 = vpop.f32.mrb[8].mxu0 }
 0x146   :  { %v1159_v47 = vadd.f32 %v2214_v63, %v1009_v45  ;;  %v1161_v48 = vadd.f32 %v2217_v57, %v1082_v46  ;;  %v1011_v49 = vpop.f32.mrb[25].mxu1  ;;  %v1084_v50 = vpop.f32.mrb[9].mxu0 }
 0x147   :  { %v1160_v51 = vadd.f32 %v2221_v3, %v1011_v49  ;;  %v1162_v52 = vadd.f32 %v2224_v1, %v1084_v50  ;;  %v1013_v53 = vpop.f32.mrb[26].mxu1  ;;  %v1086_v54 = vpop.f32.mrb[10].mxu0 }
 0x148   :  { %v1526_v56 = vpack.c.bf16 %v1159_v47, %v1159_v47  ;;  %v1165_v59 = vadd.f32 %v2214_v63, %v1013_v53  ;;  %v1167_v61 = vadd.f32 %v2217_v57, %v1086_v54  ;;  %v1015_v2 = vpop.f32.mrb[27].mxu1  ;;  %v1088_v55 = vpop.f32.mrb[11].mxu0 }
 0x149   :  { %v1541_v58 = vpack.c.bf16 %v1161_v48, %v1160_v51  ;;  %v1542_v62 = vpack.c.bf16 %v1162_v52, %v1162_v52  ;;  %v1166_v4 = vadd.f32 %v2221_v3, %v1015_v2  ;;  %v1168_v5 = vadd.f32 %v2224_v1, %v1088_v55 }
 0x14a   :  { %1270 = vst [vmem:[%s2341_s5 + $0x38] sm:$0xf] %v1526_v56  ;;  %v1528_v6 = vpack.c.bf16 %v1165_v59, %v1165_v59 }
 0x14b   :  { %1365 = vst [vmem:[%s2342_s6 + $0x30] sm:$0xff] %v1541_v58  ;;  %1366 = vst [vmem:[%s2342_s6 + $0x38] sm:$0xf] %v1542_v62  ;;  %v1543_v7 = vpack.c.bf16 %v1167_v61, %v1166_v4  ;;  %v1544_v8 = vpack.c.bf16 %v1168_v5, %v1168_v5 }
 0x14c   :  { %1272 = vst [vmem:[%s2341_s5 + $0x44] sm:$0xf] %v1528_v6 }
 0x14d   :  { %1367 = vst [vmem:[%s2342_s6 + $0x3c] sm:$0xff] %v1543_v7  ;;  %1368 = vst [vmem:[%s2342_s6 + $0x44] sm:$0xf] %v1544_v8  ;;  %v1019_v60 = vpop.f32.mrb[28].mxu1  ;;  %v1092_v0 = vpop.f32.mrb[12].mxu0 }
 0x14e   :  { %v1171_v9 = vadd.f32 %v2214_v63, %v1019_v60  ;;  %v1173_v10 = vadd.f32 %v2217_v57, %v1092_v0  ;;  %v1021_v11 = vpop.f32.mrb[29].mxu1  ;;  %v1094_v12 = vpop.f32.mrb[13].mxu0 }
 0x14f   :  { %v1172_v13 = vadd.f32 %v2221_v3, %v1021_v11  ;;  %v1174_v14 = vadd.f32 %v2224_v1, %v1094_v12  ;;  %v1023_v15 = vpop.f32.mrb[30].mxu1  ;;  %v1096_v16 = vpop.f32.mrb[14].mxu0 }
 0x150   :  { %v1530_v17 = vpack.c.bf16 %v1171_v9, %v1171_v9  ;;  %v1177_v18 = vadd.f32 %v2214_v63, %v1023_v15  ;;  %v1179_v19 = vadd.f32 %v2217_v57, %v1096_v16  ;;  %v1025_v20 = vpop.f32.mrb[31].mxu1  ;;  %v1098_v21 = vpop.f32.mrb[15].mxu0 }
 0x151   :  { %v1545_v22 = vpack.c.bf16 %v1173_v10, %v1172_v13  ;;  %v1546_v23 = vpack.c.bf16 %v1174_v14, %v1174_v14  ;;  %v1178_v24 = vadd.f32 %v2221_v3, %v1025_v20  ;;  %v1180_v25 = vadd.f32 %v2224_v1, %v1098_v21 }
 0x152   :  { %1274 = vst [vmem:[%s2341_s5 + $0x50] sm:$0xf] %v1530_v17  ;;  %v1532_v26 = vpack.c.bf16 %v1177_v18, %v1177_v18 }
 0x153   :  { %1369 = vst [vmem:[%s2342_s6 + $0x48] sm:$0xff] %v1545_v22  ;;  %1370 = vst [vmem:[%s2342_s6 + $0x50] sm:$0xf] %v1546_v23  ;;  %v1547_v63 = vpack.c.bf16 %v1179_v19, %v1178_v24  ;;  %v1548_v57 = vpack.c.bf16 %v1180_v25, %v1180_v25 }
 0x154   :  { %1276 = vst [vmem:[%s2341_s5 + $0x5c] sm:$0xf] %v1532_v26 }
 0x155   :  { %1371 = vst [vmem:[%s2342_s6 + $0x54] sm:$0xff] %v1547_v63  ;;  %1372 = vst [vmem:[%s2342_s6 + $0x5c] sm:$0xf] %v1548_v57 }

// kernel: stacked_gru_encoder.5
= control target key start
LH: loop header
LB: loop body
LE: loop exit
PB: predicated region body
PF: predicated region fallthrough
CT: control target
= control target key end

     0   :  { %v6216_v1 = vmov 0   ;;  %v4775_v37 = vmov 0.0|0.0   ;;  %s6209_s2 = inlined_call_operand.vmem [shape: bf16[128,768], index: 2, kind: input, shape index: {}]   ;;  %s6210_s0 = inlined_call_operand.vmem [shape: bf16[64,384], index: 0, kind: input, shape index: {}]   ;;  %s6211_s1 = inlined_call_operand.vmem [shape: bf16[64,384], index: 1, kind: input, shape index: {}]   ;;  %s6212_s3 = inlined_call_operand.vmem [shape: f32[1,128], index: 3, kind: input, shape index: {}]   ;;  %s6213_s4 = inlined_call_operand.vmem [shape: f32[1,128], index: 4, kind: input, shape index: {}]   ;;  %s6214_s5 = inlined_call_operand.vmem [shape: bf16[64,128], index: 5, kind: output, shape index: {0}]   ;;  %s6215_s6 = inlined_call_operand.vmem [shape: bf16[64,128], index: 6, kind: output, shape index: {1}]  }
   0x1   :  { %v4814_v0 = vld [vmem:[%s6209_s2 + $0x4] ss:$24 sps:$4 sm:$0xff]   ;;  %405 = vmatprep.mubr.bf16.mxu0 %v6216_v1  ;;  %446 = vmatprep.mubr.bf16.mxu1 %v6216_v1  ;;  %v4821_v2 = vld [vmem:[%s6209_s2] ss:$24 sps:$4 sm:$0xff]   ;;  %v4827_v3 = vld [vmem:[%s6209_s2 + $0x34] ss:$24 sps:$4 sm:$0xff]  }
   0x2   :  { %373 = vmatprep.subr.bf16.mxu0 %v4814_v0  ;;  %v4832_v4 = vld [vmem:[%s6209_s2 + $0x30] ss:$24 sps:$4 sm:$0xff]   ;;  %v4838_v5 = vld [vmem:[%s6209_s2 + $0xc] ss:$24 sps:$4 sm:$0xff]   ;;  %v4856_v8 = vld [vmem:[%s6209_s2 + $0x3c] ss:$24 sps:$4 sm:$0xff]  }
   0x3   :  { %374 = vmatpush1.bf16.msra.mxu0 %v4821_v2  ;;  %v4843_v6 = vld [vmem:[%s6209_s2 + $0x8] ss:$24 sps:$4 sm:$0xff]   ;;  %v4849_v7 = vld [vmem:[%s6209_s2 + $0x64] ss:$24 sps:$4 sm:$0xff]   ;;  %414 = vmatprep.subr.bf16.mxu1 %v4838_v5  ;;  %v4861_v9 = vld [vmem:[%s6209_s2 + $0x38] ss:$24 sps:$4 sm:$0xff]  }
   0x4   :  { %375 = vmatprep.subr.bf16.mxu0 %v4827_v3  ;;  %415 = vmatpush1.bf16.msra.mxu1 %v4843_v6  ;;  %v4867_v10 = vld [vmem:[%s6209_s2 + $0x60] ss:$24 sps:$4 sm:$0xff]   ;;  %v4872_v11 = vld [vmem:[%s6209_s2 + $0x94] ss:$24 sps:$4 sm:$0xff]   ;;  %v4891_v14 = vld [vmem:[%s6209_s2 + $0x90] ss:$24 sps:$4 sm:$0xff]  }
   0x5   :  { %416 = vmatprep.subr.bf16.mxu1 %v4856_v8  ;;  %v4879_v12 = vld [vmem:[%s6209_s2 + $0x6c] ss:$24 sps:$4 sm:$0xff]   ;;  %v4885_v13 = vld [vmem:[%s6209_s2 + $0x68] ss:$24 sps:$4 sm:$0xff]   ;;  %v4897_v15 = vld [vmem:[%s6209_s2 + $0x9c] ss:$24 sps:$4 sm:$0xff]  }
   0x6   :  { %v4903_v16 = vld [vmem:[%s6209_s2 + $0xc4] ss:$24 sps:$4 sm:$0xff]   ;;  %v4909_v17 = vld [vmem:[%s6209_s2 + $0x98] ss:$24 sps:$4 sm:$0xff]   ;;  %v4927_v20 = vld [vmem:[%s6209_s2 + $0xf4] ss:$24 sps:$4 sm:$0xff]  }
   0x7   :  { %376 = vmatpush1.bf16.msra.mxu0 %v4832_v4  ;;  %v4915_v18 = vld [vmem:[%s6209_s2 + $0xc0] ss:$24 sps:$4 sm:$0xff]   ;;  %v4921_v19 = vld [vmem:[%s6209_s2 + $0xcc] ss:$24 sps:$4 sm:$0xff]   ;;  %v4939_v22 = vld [vmem:[%s6209_s2 + $0xf0] ss:$24 sps:$4 sm:$0xff]  }
   0x8   :  { %377 = vmatprep.subr.bf16.mxu0 %v4849_v7  ;;  %417 = vmatpush1.bf16.msra.mxu1 %v4861_v9  ;;  %v4933_v21 = vld [vmem:[%s6209_s2 + $0xc8] ss:$24 sps:$4 sm:$0xff]   ;;  %v4945_v23 = vld [vmem:[%s6209_s2 + $0xfc] ss:$24 sps:$4 sm:$0xff]   ;;  %v4957_v25 = vld [vmem:[%s6209_s2 + $0xf8] ss:$24 sps:$4 sm:$0xff]  }
   0x9   :  { %418 = vmatprep.subr.bf16.mxu1 %v4879_v12  ;;  %v4951_v24 = vld [vmem:[%s6209_s2 + $0x124] ss:$24 sps:$4 sm:$0xff]   ;;  %v4963_v26 = vld [vmem:[%s6209_s2 + $0x120] ss:$24 sps:$4 sm:$0xff]   ;;  %v4975_v28 = vld [vmem:[%s6209_s2 + $0x154] ss:$24 sps:$4 sm:$0xff]  }
   0xa   :  { %v4969_v27 = vld [vmem:[%s6209_s2 + $0x12c] ss:$24 sps:$4 sm:$0xff]   ;;  %v4981_v29 = vld [vmem:[%s6209_s2 + $0x128] ss:$24 sps:$4 sm:$0xff]   ;;  %v4993_v31 = vld [vmem:[%s6209_s2 + $0x15c] ss:$24 sps:$4 sm:$0xff]  }
   0xb   :  { %378 = vmatpush1.bf16.msra.mxu0 %v4867_v10  ;;  %6232 = vst [vmem:[#allocation3_spill] sm:$0xff] %v4969_v27  ;;  %6233 = vst [vmem:[#allocation4_spill] sm:$0xff] %v4981_v29  ;;  %v4987_v30 = vld [vmem:[%s6209_s2 + $0x150] ss:$24 sps:$4 sm:$0xff]   ;;  %v4999_v32 = vld [vmem:[%s6209_s2 + $0x14] ss:$24 sps:$4 sm:$0xff]  }
   0xc   :  { %379 = vmatprep.subr.bf16.mxu0 %v4872_v11  ;;  %419 = vmatpush1.bf16.msra.mxu1 %v4885_v13  ;;  %6234 = vst [vmem:[#allocation5_spill] sm:$0xff] %v4993_v31  ;;  %v5005_v33 = vld [vmem:[%s6209_s2 + $0x158] ss:$24 sps:$4 sm:$0xff]   ;;  %v5017_v35 = vld [vmem:[%s6209_s2 + $0x44] ss:$24 sps:$4 sm:$0xff]  }
   0xd   :  { %420 = vmatprep.subr.bf16.mxu1 %v4897_v15  ;;  %6235 = vst [vmem:[#allocation6_spill] sm:$0xff] %v5005_v33  ;;  %v5011_v34 = vld [vmem:[%s6209_s2 + $0x10] ss:$24 sps:$4 sm:$0xff]   ;;  %v5023_v36 = vld [vmem:[%s6209_s2 + $0x40] ss:$24 sps:$4 sm:$0xff]  }
   0xe   :  { %v5029_v38 = vld [vmem:[%s6209_s2 + $0x74] ss:$24 sps:$4 sm:$0xff]   ;;  %v5038_v39 = vld [vmem:[%s6209_s2 + $0x70] ss:$24 sps:$4 sm:$0xff]   ;;  %v5043_v40 = vld [vmem:[%s6209_s2 + $0xa4] ss:$24 sps:$4 sm:$0xff]  }
   0xf   :  { %380 = vmatpush1.bf16.msra.mxu0 %v4891_v14  ;;  %v5053_v41 = vld [vmem:[%s6209_s2 + $0xa0] ss:$24 sps:$4 sm:$0xff]   ;;  %v5058_v42 = vld [vmem:[%s6209_s2 + $0xd4] ss:$24 sps:$4 sm:$0xff]   ;;  %v5067_v43 = vld [vmem:[%s6209_s2 + $0xd0] ss:$24 sps:$4 sm:$0xff]  }
  0x10   :  { %381 = vmatprep.subr.bf16.mxu0 %v4903_v16  ;;  %421 = vmatpush1.bf16.msra.mxu1 %v4909_v17  ;;  %v5072_v44 = vld [vmem:[%s6209_s2 + $0x104] ss:$24 sps:$4 sm:$0xff]   ;;  %v5081_v45 = vld [vmem:[%s6209_s2 + $0x100] ss:$24 sps:$4 sm:$0xff]   ;;  %v5086_v46 = vld [vmem:[%s6209_s2 + $0x134] ss:$24 sps:$4 sm:$0xff]  }
  0x11   :  { %422 = vmatprep.subr.bf16.mxu1 %v4921_v19  ;;  %v5095_v47 = vld [vmem:[%s6209_s2 + $0x130] ss:$24 sps:$4 sm:$0xff]   ;;  %v5100_v48 = vld [vmem:[%s6209_s2 + $0x164] ss:$24 sps:$4 sm:$0xff]   ;;  %v5109_v49 = vld [vmem:[%s6209_s2 + $0x160] ss:$24 sps:$4 sm:$0xff]  }
  0x12   :  { %v499_v50 = vld [vmem:[%s6210_s0] sm:$0xff]  ;;  %v3986_v53 = vld [vmem:[%s6211_s1 + $0x54] sm:$0xff] }
  0x13   :  { %382 = vmatpush1.bf16.msra.mxu0 %v4915_v18  ;;  %v501_v51 = vunpack.c.l.bf16 %v499_v50  ;;  %v530_v60 = vunpack.c.l.bf16 %v3986_v53  ;;  %v502_v62 = vunpack.c.h.bf16 %v499_v50  ;;  %v500_v50 = vld [vmem:[%s6210_s0 + $0x8] sm:$0xf] }
  0x14   :  { %383 = vmatprep.subr.bf16.mxu0 %v4927_v20  ;;  %423 = vmatpush1.bf16.msra.mxu1 %v4933_v21 }
  0x15   :  { %424 = vmatprep.subr.bf16.mxu1 %v4945_v23 }
  0x17   :  { %384 = vmatpush1.bf16.msra.mxu0 %v4939_v22 }
  0x18   :  { %385 = vmatprep.subr.bf16.mxu0 %v4951_v24  ;;  %425 = vmatpush1.bf16.msra.mxu1 %v4957_v25 }
  0x19   :  { %426 = vmatprep.subr.bf16.mxu1 %v4969_v27 }
  0x1b   :  { %386 = vmatpush1.bf16.msra.mxu0 %v4963_v26 }
  0x1c   :  { %387 = vmatprep.subr.bf16.mxu0 %v4975_v28  ;;  %427 = vmatpush1.bf16.msra.mxu1 %v4981_v29 }
  0x1d   :  { %428 = vmatprep.subr.bf16.mxu1 %v4993_v31 }
  0x1f   :  { %388 = vmatpush1.bf16.msra.mxu0 %v4987_v30 }
  0x20   :  { %455 = vmatprep.subr.bf16.mxu0 %v4999_v32  ;;  %429 = vmatpush1.bf16.msra.mxu1 %v5005_v33 }
  0x21   :  { %848 = vmatprep.subr.bf16.mxu1 %v4814_v0 }
  0x22   :  { %406 = vmatmul.mubr.bf16.vlgmr.msra.gmra.mrb[0].mxu0 %v4775_v37 }
  0x23   :  { %456 = vmatpush1.bf16.msra.mxu0 %v5011_v34  ;;  %487 = vmatprep.mubr.bf16.mxu0 %v6216_v1 }
  0x24   :  { %457 = vmatprep.subr.bf16.mxu0 %v5017_v35  ;;  %447 = vmatmul.mubr.bf16.vlgmr.msra.gmra.mrb[0].mxu1 %v4775_v37 }
  0x25   :  { %849 = vmatpush1.bf16.msra.mxu1 %v4821_v2  ;;  %880 = vmatprep.mubr.bf16.mxu1 %v6216_v1 }
  0x26   :  { %850 = vmatprep.subr.bf16.mxu1 %v4827_v3 }
  0x27   :  { %458 = vmatpush1.bf16.msra.mxu0 %v5023_v36 }
  0x28   :  { %459 = vmatprep.subr.bf16.mxu0 %v5029_v38 }
  0x29   :  { %851 = vmatpush1.bf16.msra.mxu1 %v4832_v4 }
  0x2a   :  { %852 = vmatprep.subr.bf16.mxu1 %v4849_v7 }
  0x2b   :  { %460 = vmatpush1.bf16.msra.mxu0 %v5038_v39 }
  0x2c   :  { %461 = vmatprep.subr.bf16.mxu0 %v5043_v40 }
  0x2d   :  { %853 = vmatpush1.bf16.msra.mxu1 %v4867_v10 }
  0x2e   :  { %854 = vmatprep.subr.bf16.mxu1 %v4872_v11 }
  0x2f   :  { %462 = vmatpush1.bf16.msra.mxu0 %v5053_v41 }
  0x30   :  { %463 = vmatprep.subr.bf16.mxu0 %v5058_v42 }
  0x31   :  { %855 = vmatpush1.bf16.msra.mxu1 %v4891_v14 }
  0x32   :  { %856 = vmatprep.subr.bf16.mxu1 %v4903_v16 }
  0x33   :  { %464 = vmatpush1.bf16.msra.mxu0 %v5067_v43 }
  0x34   :  { %465 = vmatprep.subr.bf16.mxu0 %v5072_v44 }
  0x35   :  { %857 = vmatpush1.bf16.msra.mxu1 %v4915_v18 }
  0x36   :  { %858 = vmatprep.subr.bf16.mxu1 %v4927_v20 }
  0x37   :  { %466 = vmatpush1.bf16.msra.mxu0 %v5081_v45 }
  0x38   :  { %467 = vmatprep.subr.bf16.mxu0 %v5086_v46 }
  0x39   :  { %859 = vmatpush1.bf16.msra.mxu1 %v4939_v22 }
  0x3a   :  { %860 = vmatprep.subr.bf16.mxu1 %v4951_v24 }
  0x3b   :  { %468 = vmatpush1.bf16.msra.mxu0 %v5095_v47 }
  0x3c   :  { %469 = vmatprep.subr.bf16.mxu0 %v5100_v48 }
  0x3d   :  { %861 = vmatpush1.bf16.msra.mxu1 %v4963_v26 }
  0x3e   :  { %862 = vmatprep.subr.bf16.mxu1 %v4975_v28 }
  0x3f   :  { %470 = vmatpush1.bf16.msra.mxu0 %v5109_v49 }
  0x40   :  { %889 = vmatprep.subr.bf16.mxu0 %v4838_v5 }
  0x41   :  { %863 = vmatpush1.bf16.msra.mxu1 %v4987_v30 }
  0x42   :  { %488 = vmatmul.mubr.bf16.vlgmr.msra.gmra.mrb[4].mxu0 %v4775_v37  ;;  %930 = vmatprep.subr.bf16.mxu1 %v4999_v32 }
  0x43   :  { %890 = vmatpush1.bf16.msra.mxu0 %v4843_v6  ;;  %921 = vmatprep.mubr.bf16.mxu0 %v6216_v1 }
  0x44   :  { %891 = vmatprep.subr.bf16.mxu0 %v4856_v8 }
  0x47   :  { %892 = vmatpush1.bf16.msra.mxu0 %v4861_v9 }
  0x48   :  { %893 = vmatprep.subr.bf16.mxu0 %v4879_v12 }
  0x4b   :  { %894 = vmatpush1.bf16.msra.mxu0 %v4885_v13 }
  0x4c   :  { %895 = vmatprep.subr.bf16.mxu0 %v4897_v15 }
  0x4f   :  { %896 = vmatpush1.bf16.msra.mxu0 %v4909_v17 }
  0x50   :  { %897 = vmatprep.subr.bf16.mxu0 %v4921_v19 }
  0x53   :  { %898 = vmatpush1.bf16.msra.mxu0 %v4933_v21 }
  0x54   :  { %899 = vmatprep.subr.bf16.mxu0 %v4945_v23 }
  0x57   :  { %900 = vmatpush1.bf16.msra.mxu0 %v4957_v25 }
  0x58   :  { %901 = vmatprep.subr.bf16.mxu0 %v4969_v27 }
  0x5b   :  { %902 = vmatpush1.bf16.msra.mxu0 %v4981_v29 }
  0x5c   :  { %903 = vmatprep.subr.bf16.mxu0 %v4993_v31 }
  0x5f   :  { %904 = vmatpush1.bf16.msra.mxu0 %v5005_v33 }
  0x60   :  { %1324 = vmatprep.subr.bf16.mxu0 %v4814_v0 }
  0xf5   :  { %v407_v52 = vpop.f32.mrb[0].mxu0 }
  0xf6   :  { %v504_v54 = vadd.f32 %v501_v51, %v407_v52  ;;  %v409_v55 = vpop.f32.mrb[1].mxu0 }
  0xf7   :  { %v411_v56 = vpop.f32.mrb[2].mxu0  ;;  %v448_v59 = vpop.f32.mrb[0].mxu1  ;;  %v511_v1 = vadd.f32 %v502_v62, %v409_v55 }
  0xf8   :  { %v3984_v57 = vmul.f32 -1.442695, %v504_v54  ;;  %v412_v58 = vpop.f32.mrb[3].mxu0  ;;  %v450_v61 = vpop.f32.mrb[1].mxu1  ;;  %v5147_v54 = vld [vmem:[%s6212_s3] ss:$0 sm:$0xff]  ;;  %v503_v56 = vunpack.c.l.bf16 %v500_v50 }
  0xf9   :  { %v451_v63 = vpop.f32.mrb[2].mxu1  ;;  %v3985_v31 = vmul.f32 -1.442695, %v511_v1  ;;  %v518_v1 = vadd.f32 %v5147_v54, %v448_v59  ;;  %v5156_v61 = vld [vmem:[%s6213_s4] ss:$0 sm:$0xff] }
  0xfa   :  { %4612 = vpow2.f32 %v3984_v57  ;;  %v452_v0 = vpop.f32.mrb[3].mxu1  ;;  %v531_v57 = vunpack.c.h.bf16 %v3986_v53  ;;  %v3987_v53 = vld [vmem:[%s6211_s1 + $0x5c] sm:$0xf] }
  0xfb   :  { %v533_v37 = vadd.f32 %v530_v60, %v452_v0  ;;  %v532_v50 = vunpack.c.l.bf16 %v3987_v53  ;;  %v6236_v53 = vmov 0  }
  0xfd   :  { %v3988_v33 = vmul.f32 -1.442695, %v533_v37 }
  0xff   :  { %4614 = vpow2.f32 %v3988_v33 }
 0x100   :  { %4616 = vpow2.f32 %v3985_v31 }
 0x104   :  { %v4613_v29 = vpop.eup %4612 }
 0x105   :  { %v508_v27 = vadd.f32 1.0, %v4613_v29 }
 0x107   :  { %4618 = vrcp.f32 %v508_v27 }
 0x109   :  { %v4615_v51 = vpop.eup %4614 }
 0x10a   :  { %v537_v52 = vadd.f32 1.0, %v4615_v51  ;;  %v4617_v55 = vpop.eup %4616 }
 0x10b   :  { %v515_v31 = vadd.f32 1.0, %v4617_v55 }
 0x10c   :  { %4620 = vrcp.f32 %v537_v52 }
 0x111   :  { %v4619_v33 = vpop.eup %4618 }
 0x112   :  { %v519_v29 = vmul.f32 %v4619_v33, %v518_v1 }
 0x114   :  { %v520_v27 = vadd.f32 %v519_v29, %v503_v56 }
 0x115   :  { %v489_v58 = vpop.f32.mrb[4].mxu0 }
 0x116   :  { %4622 = vtanh.f32 %v520_v27  ;;  %v490_v60 = vpop.f32.mrb[5].mxu0  ;;  %v4621_v63 = vpop.eup %4620 }
 0x117   :  { %v491_v62 = vpop.f32.mrb[6].mxu0  ;;  %4624 = vrcp.f32 %v515_v31 }
 0x118   :  { %v540_v0 = vadd.f32 %v531_v57, %v491_v62  ;;  %v493_v37 = vpop.f32.mrb[7].mxu0 }
 0x119   :  { %v547_v59 = vadd.f32 %v5156_v61, %v493_v37 }
 0x11a   :  { %v3989_v51 = vmul.f32 -1.442695, %v540_v0 }
 0x11b   :  { %v548_v52 = vmul.f32 %v4621_v63, %v547_v59 }
 0x11c   :  { %4626 = vpow2.f32 %v3989_v51 }
 0x11d   :  { %v549_v56 = vadd.f32 %v548_v52, %v532_v50 }
 0x11f   :  { %4628 = vtanh.f32 %v549_v56 }
 0x120   :  { %v4623_v55 = vpop.eup %4622 }
 0x121   :  { %v522_v1 = vsub.f32 0.0, %v4623_v55  ;;  %v4625_v33 = vpop.eup %4624 }
 0x123   :  { %v523_v29 = vmul.f32 %v4625_v33, %v522_v1 }
 0x125   :  { %v5162_v27 = vadd.f32 %v4623_v55, %v523_v29 }
 0x126   :  { %v4627_v31 = vpop.eup %4626 }
 0x127   :  { %v544_v57 = vadd.f32 1.0, %v4627_v31  ;;  %v554_v58 = vpack.c.bf16 %v5162_v27, %v5162_v27 }
 0x129   :  { %4630 = vrcp.f32 %v544_v57  ;;  %555 = vst [vmem:[%s6214_s5] sm:$0xf] %v554_v58  ;;  %v4629_v60 = vpop.eup %4628 }
 0x12a   :  { %v551_v62 = vsub.f32 0.0, %v4629_v60 }
 0x133   :  { %v4631_v63 = vpop.eup %4630 }
 0x134   :  { %v552_v0 = vmul.f32 %v4631_v63, %v551_v62 }
 0x136   :  { %v5169_v37 = vadd.f32 %v4629_v60, %v552_v0 }
 0x138   :  { %v556_v59 = vpack.c.bf16 %v5169_v37, %v5169_v37  ;;  %v559_v51 = vpack.c.bf16 %v5169_v37, %v5162_v27 }
 0x13a   :  { %3990 = vst [vmem:[%s6215_s6 + $0x1c] sm:$0xf] %v556_v59  ;;  %881 = vmatmul.mubr.bf16.vlgmr.msra.gmra.mrb[4].mxu1 %v559_v51  ;;  %922 = vmatmul.mubr.bf16.vlgmr.msra.gmra.mrb[8].mxu0 %v559_v51 }
 0x13b   :  { %931 = vmatpush1.bf16.msra.mxu1 %v5011_v34  ;;  %962 = vmatprep.mubr.bf16.mxu1 %v6236_v53 }
 0x13c   :  { %932 = vmatprep.subr.bf16.mxu1 %v5017_v35  ;;  %1325 = vmatpush1.bf16.msra.mxu0 %v4821_v2  ;;  %v6237_v2 = vld [vmem:[#allocation3_spill] sm:$0xff] }
 0x13d   :  { %1326 = vmatprep.subr.bf16.mxu0 %v4827_v3  ;;  %1356 = vmatprep.mubr.bf16.mxu0 %v6236_v53  ;;  %v6238_v3 = vld [vmem:[#allocation4_spill] sm:$0xff] }
 0x13f   :  { %933 = vmatpush1.bf16.msra.mxu1 %v5023_v36 }
 0x140   :  { %934 = vmatprep.subr.bf16.mxu1 %v5029_v38  ;;  %1327 = vmatpush1.bf16.msra.mxu0 %v4832_v4  ;;  %v6239_v4 = vld [vmem:[#allocation5_spill] sm:$0xff] }
 0x141   :  { %1328 = vmatprep.subr.bf16.mxu0 %v4849_v7 }
 0x143   :  { %935 = vmatpush1.bf16.msra.mxu1 %v5038_v39 }
 0x144   :  { %936 = vmatprep.subr.bf16.mxu1 %v5043_v40  ;;  %1329 = vmatpush1.bf16.msra.mxu0 %v4867_v10 }
 0x145   :  { %1330 = vmatprep.subr.bf16.mxu0 %v4872_v11 }
 0x147   :  { %937 = vmatpush1.bf16.msra.mxu1 %v5053_v41 }
 0x148   :  { %938 = vmatprep.subr.bf16.mxu1 %v5058_v42  ;;  %1331 = vmatpush1.bf16.msra.mxu0 %v4891_v14 }
 0x149   :  { %1332 = vmatprep.subr.bf16.mxu0 %v4903_v16 }
 0x14b   :  { %939 = vmatpush1.bf16.msra.mxu1 %v5067_v43 }
 0x14c   :  { %940 = vmatprep.subr.bf16.mxu1 %v5072_v44  ;;  %1333 = vmatpush1.bf16.msra.mxu0 %v4915_v18 }
 0x14d   :  { %1334 = vmatprep.subr.bf16.mxu0 %v4927_v20 }
 0x14f   :  { %941 = vmatpush1.bf16.msra.mxu1 %v5081_v45 }
 0x150   :  { %942 = vmatprep.subr.bf16.mxu1 %v5086_v46  ;;  %1335 = vmatpush1.bf16.msra.mxu0 %v4939_v22 }
 0x151   :  { %1336 = vmatprep.subr.bf16.mxu0 %v4951_v24 }
 0x153   :  { %943 = vmatpush1.bf16.msra.mxu1 %v5095_v47 }
 0x154   :  { %944 = vmatprep.subr.bf16.mxu1 %v5100_v48  ;;  %1337 = vmatpush1.bf16.msra.mxu0 %v4963_v26 }
 0x155   :  { %1338 = vmatprep.subr.bf16.mxu0 %v4975_v28 }
 0x157   :  { %945 = vmatpush1.bf16.msra.mxu1 %v5109_v49 }
 0x158   :  { %1365 = vmatprep.subr.bf16.mxu1 %v4838_v5  ;;  %1339 = vmatpush1.bf16.msra.mxu0 %v4987_v30  ;;  %v6240_v5 = vld [vmem:[#allocation6_spill] sm:$0xff] }
 0x159   :  { %1406 = vmatprep.subr.bf16.mxu0 %v4999_v32  ;;  %v5237_v32 = vld [vmem:[%s6210_s0 + $0x14] ss:$12 sps:$4 sm:$0xff]  }
 0x15a   :  { %963 = vmatmul.mubr.bf16.vlgmr.msra.gmra.mrb[8].mxu1 %v559_v51  ;;  %v978_v50 = vunpack.c.l.bf16 %v5237_v32 }
 0x15b   :  { %1366 = vmatpush1.bf16.msra.mxu1 %v4843_v6  ;;  %1397 = vmatprep.mubr.bf16.mxu1 %v6236_v53  ;;  %v4039_v6 = vld [vmem:[%s6210_s0 + $0xc] sm:$0xff] }
 0x15c   :  { %1367 = vmatprep.subr.bf16.mxu1 %v4856_v8  ;;  %v976_v7 = vunpack.c.l.bf16 %v4039_v6  ;;  %v4043_v8 = vld [vmem:[%s6211_s1 + $0x48] sm:$0xff] }
 0x15d   :  { %v1005_v11 = vunpack.c.l.bf16 %v4043_v8  ;;  %v1006_v31 = vunpack.c.h.bf16 %v4043_v8 }
 0x15f   :  { %1368 = vmatpush1.bf16.msra.mxu1 %v4861_v9 }
 0x160   :  { %1369 = vmatprep.subr.bf16.mxu1 %v4879_v12 }
 0x163   :  { %1370 = vmatpush1.bf16.msra.mxu1 %v4885_v13 }
 0x164   :  { %1371 = vmatprep.subr.bf16.mxu1 %v4897_v15 }
 0x167   :  { %1372 = vmatpush1.bf16.msra.mxu1 %v4909_v17 }
 0x168   :  { %1373 = vmatprep.subr.bf16.mxu1 %v4921_v19 }
 0x16b   :  { %1374 = vmatpush1.bf16.msra.mxu1 %v4933_v21  ;;  %v977_v21 = vunpack.c.h.bf16 %v4039_v6 }
 0x16c   :  { %1375 = vmatprep.subr.bf16.mxu1 %v4945_v23 }
 0x16f   :  { %1376 = vmatpush1.bf16.msra.mxu1 %v4957_v25 }
 0x170   :  { %1377 = vmatprep.subr.bf16.mxu1 %v6237_v2  ;;  %v5245_v2 = vld [vmem:[%s6211_s1 + $0x44] ss:$12 sps:$4 sm:$0xff]  }
 0x173   :  { %1378 = vmatpush1.bf16.msra.mxu1 %v6238_v3 }
 0x174   :  { %1379 = vmatprep.subr.bf16.mxu1 %v6239_v4  ;;  %v1007_v4 = vunpack.c.h.bf16 %v5245_v2 }
 0x177   :  { %1380 = vmatpush1.bf16.msra.mxu1 %v6240_v5 }
 0x20d   :  { %v882_v9 = vpop.f32.mrb[4].mxu1  ;;  %v923_v10 = vpop.f32.mrb[8].mxu0 }
 0x20e   :  { %v979_v12 = vadd.f32 %v976_v7, %v882_v9  ;;  %v884_v13 = vpop.f32.mrb[5].mxu1  ;;  %v925_v14 = vpop.f32.mrb[9].mxu0  ;;  %v993_v55 = vadd.f32 %v5147_v54, %v923_v10 }
 0x20f   :  { %v886_v15 = vpop.f32.mrb[6].mxu1  ;;  %v926_v16 = vpop.f32.mrb[10].mxu0  ;;  %v986_v23 = vadd.f32 %v977_v21, %v884_v13  ;;  %v5388_v21 = vld [vmem:[%s6209_s2 + $0xc0] ss:$24 sps:$4 sm:$0xff]  }
 0x210   :  { %v4041_v17 = vmul.f32 -1.442695, %v979_v12  ;;  %v887_v18 = vpop.f32.mrb[7].mxu1  ;;  %v927_v19 = vpop.f32.mrb[11].mxu0 }
 0x211   :  { %v1008_v20 = vadd.f32 %v1005_v11, %v927_v19  ;;  %v4042_v24 = vmul.f32 -1.442695, %v986_v23  ;;  %v5399_v23 = vld [vmem:[%s6209_s2 + $0xc8] ss:$24 sps:$4 sm:$0xff]  }
 0x212   :  { %4632 = vpow2.f32 %v4041_v17  ;;  %6244 = vst [vmem:[#allocation6_spill] sm:$0xff] %v5399_v23 }
 0x213   :  { %v4045_v22 = vmul.f32 -1.442695, %v1008_v20  ;;  %v5383_v20 = vld [vmem:[%s6209_s2 + $0xc4] ss:$24 sps:$4 sm:$0xff]  }
 0x215   :  { %4634 = vpow2.f32 %v4045_v22  ;;  %v5393_v22 = vld [vmem:[%s6209_s2 + $0xcc] ss:$24 sps:$4 sm:$0xff]  }
 0x216   :  { %4636 = vpow2.f32 %v4042_v24  ;;  %6243 = vst [vmem:[#allocation5_spill] sm:$0xff] %v5393_v22  ;;  %v5404_v24 = vld [vmem:[%s6209_s2 + $0xf4] ss:$24 sps:$4 sm:$0xff]  }
 0x21c   :  { %v4633_v25 = vpop.eup %4632 }
 0x21d   :  { %v983_v26 = vadd.f32 1.0, %v4633_v25  ;;  %v5411_v25 = vld [vmem:[%s6209_s2 + $0xf0] ss:$24 sps:$4 sm:$0xff]  }
 0x21f   :  { %4638 = vrcp.f32 %v983_v26  ;;  %v4635_v28 = vpop.eup %4634  ;;  %v5416_v26 = vld [vmem:[%s6209_s2 + $0xfc] ss:$24 sps:$4 sm:$0xff]  }
 0x220   :  { %v1012_v30 = vadd.f32 1.0, %v4635_v28  ;;  %v4637_v52 = vpop.eup %4636  ;;  %6245 = vst [vmem:[#allocation7_spill] sm:$0xff] %v5416_v26  ;;  %v5423_v28 = vld [vmem:[%s6209_s2 + $0xf8] ss:$24 sps:$4 sm:$0xff]  }
 0x221   :  { %v990_v29 = vadd.f32 1.0, %v4637_v52  ;;  %6246 = vst [vmem:[#allocation8_spill] sm:$0xff] %v5423_v28  ;;  %v5434_v52 = vld [vmem:[%s6209_s2 + $0x12c] ss:$24 sps:$4 sm:$0xff]  }
 0x222   :  { %4640 = vrcp.f32 %v1012_v30  ;;  %v5428_v30 = vld [vmem:[%s6209_s2 + $0x124] ss:$24 sps:$4 sm:$0xff]   ;;  %6247 = vst [vmem:[#allocation9_spill] sm:$0xff] %v5434_v52 }
 0x229   :  { %v4639_v56 = vpop.eup %4638 }
 0x22a   :  { %v994_v1 = vmul.f32 %v4639_v56, %v993_v55  ;;  %v5447_v55 = vld [vmem:[%s6209_s2 + $0x128] ss:$24 sps:$4 sm:$0xff]   ;;  %v5452_v56 = vld [vmem:[%s6209_s2 + $0x154] ss:$24 sps:$4 sm:$0xff]  }
 0x22b   :  { %6248 = vst [vmem:[#allocation10_spill] sm:$0xff] %v5447_v55 }
 0x22c   :  { %v995_v33 = vadd.f32 %v994_v1, %v978_v50  ;;  %v4641_v59 = vpop.eup %4640  ;;  %v5440_v50 = vld [vmem:[%s6209_s2 + $0x120] ss:$24 sps:$4 sm:$0xff]   ;;  %v5458_v1 = vld [vmem:[%s6209_s2 + $0x15c] ss:$24 sps:$4 sm:$0xff]  }
 0x22d   :  { %v964_v57 = vpop.f32.mrb[8].mxu1  ;;  %6249 = vst [vmem:[#allocation11_spill] sm:$0xff] %v5458_v1 }
 0x22e   :  { %4642 = vtanh.f32 %v995_v33  ;;  %v965_v58 = vpop.f32.mrb[9].mxu1  ;;  %v5464_v33 = vld [vmem:[%s6209_s2 + $0x150] ss:$24 sps:$4 sm:$0xff]   ;;  %v4097_v57 = vld [vmem:[%s6210_s0 + $0x18] sm:$0xff] }
 0x22f   :  { %v966_v60 = vpop.f32.mrb[10].mxu1  ;;  %4644 = vrcp.f32 %v990_v29  ;;  %v5471_v29 = vld [vmem:[%s6209_s2 + $0x158] ss:$24 sps:$4 sm:$0xff]   ;;  %v1452_v58 = vunpack.c.l.bf16 %v4097_v57 }
 0x230   :  { %v1015_v62 = vadd.f32 %v1006_v31, %v966_v60  ;;  %v968_v63 = vpop.f32.mrb[11].mxu1  ;;  %6250 = vst [vmem:[#allocation12_spill] sm:$0xff] %v5471_v29  ;;  %v5476_v31 = vld [vmem:[%s6209_s2 + $0x14] ss:$24 sps:$4 sm:$0xff]   ;;  %v4101_v60 = vld [vmem:[%s6211_s1 + $0x3c] sm:$0xff] }
 0x231   :  { %v1022_v0 = vadd.f32 %v5156_v61, %v968_v63 }
 0x232   :  { %v4046_v51 = vmul.f32 -1.442695, %v1015_v62 }
 0x233   :  { %v1023_v3 = vmul.f32 %v4641_v59, %v1022_v0  ;;  %v1481_v0 = vunpack.c.l.bf16 %v4101_v60 }
 0x234   :  { %4646 = vpow2.f32 %v4046_v51 }
 0x235   :  { %v1024_v6 = vadd.f32 %v1023_v3, %v1007_v4 }
 0x237   :  { %4648 = vtanh.f32 %v1024_v6 }
 0x238   :  { %v4643_v5 = vpop.eup %4642 }
 0x239   :  { %v997_v7 = vsub.f32 %v5162_v27, %v4643_v5  ;;  %v4645_v8 = vpop.eup %4644 }
 0x23b   :  { %v998_v9 = vmul.f32 %v4645_v8, %v997_v7 }
 0x23d   :  { %v5249_v10 = vadd.f32 %v4643_v5, %v998_v9 }
 0x23e   :  { %v4647_v11 = vpop.eup %4646 }
 0x23f   :  { %v1019_v12 = vadd.f32 1.0, %v4647_v11  ;;  %v1029_v13 = vpack.c.bf16 %v5249_v10, %v5249_v10  ;;  %v1453_v11 = vunpack.c.h.bf16 %v4097_v57 }
 0x241   :  { %4650 = vrcp.f32 %v1019_v12  ;;  %4047 = vst [vmem:[%s6214_s5 + $0x4] sm:$0xf] %v1029_v13  ;;  %v4649_v14 = vpop.eup %4648 }
 0x242   :  { %v1026_v15 = vsub.f32 %v5169_v37, %v4649_v14  ;;  %v5375_v37 = vld [vmem:[%s6209_s2 + $0x98] ss:$24 sps:$4 sm:$0xff]  }
 0x243   :  { %6242 = vst [vmem:[#allocation4_spill] sm:$0xff] %v5375_v37 }
 0x24b   :  { %v4651_v16 = vpop.eup %4650 }
 0x24c   :  { %v1027_v27 = vmul.f32 %v4651_v16, %v1026_v15 }
 0x24e   :  { %v5257_v17 = vadd.f32 %v4649_v14, %v1027_v27 }
 0x250   :  { %v1032_v18 = vpack.c.bf16 %v5257_v17, %v5257_v17  ;;  %v1035_v19 = vpack.c.bf16 %v5257_v17, %v5249_v10 }
 0x252   :  { %4048 = vst [vmem:[%s6215_s6 + $0x18] sm:$0xf] %v1032_v18  ;;  %1357 = vmatmul.mubr.bf16.vlgmr.msra.gmra.mrb[12].mxu0 %v1035_v19  ;;  %1398 = vmatmul.mubr.bf16.vlgmr.msra.gmra.mrb[12].mxu1 %v1035_v19 }
 0x253   :  { %1407 = vmatpush1.bf16.msra.mxu0 %v5011_v34  ;;  %1438 = vmatprep.mubr.bf16.mxu0 %v6236_v53  ;;  %v5287_v34 = vld [vmem:[%s6209_s2 + $0x4] ss:$24 sps:$4 sm:$0xff]  }
 0x254   :  { %1408 = vmatprep.subr.bf16.mxu0 %v5017_v35  ;;  %1832 = vmatprep.mubr.bf16.mxu1 %v6236_v53  ;;  %v5292_v35 = vld [vmem:[%s6209_s2] ss:$24 sps:$4 sm:$0xff]  }
 0x255   :  { %1800 = vmatprep.subr.bf16.mxu1 %v5287_v34 }
 0x256   :  { %1801 = vmatpush1.bf16.msra.mxu1 %v5292_v35 }
 0x257   :  { %1409 = vmatpush1.bf16.msra.mxu0 %v5023_v36  ;;  %v5297_v36 = vld [vmem:[%s6209_s2 + $0xc] ss:$24 sps:$4 sm:$0xff]  }
 0x258   :  { %1410 = vmatprep.subr.bf16.mxu0 %v5029_v38  ;;  %v5303_v38 = vld [vmem:[%s6209_s2 + $0x8] ss:$24 sps:$4 sm:$0xff]  }
 0x25b   :  { %1411 = vmatpush1.bf16.msra.mxu0 %v5038_v39  ;;  %v5311_v39 = vld [vmem:[%s6209_s2 + $0x34] ss:$24 sps:$4 sm:$0xff]  }
 0x25c   :  { %1412 = vmatprep.subr.bf16.mxu0 %v5043_v40  ;;  %v5316_v40 = vld [vmem:[%s6209_s2 + $0x30] ss:$24 sps:$4 sm:$0xff]   ;;  %1802 = vmatprep.subr.bf16.mxu1 %v5311_v39 }
 0x25d   :  { %1803 = vmatpush1.bf16.msra.mxu1 %v5316_v40 }
 0x25f   :  { %1413 = vmatpush1.bf16.msra.mxu0 %v5053_v41  ;;  %v5321_v41 = vld [vmem:[%s6209_s2 + $0x3c] ss:$24 sps:$4 sm:$0xff]  }
 0x260   :  { %1414 = vmatprep.subr.bf16.mxu0 %v5058_v42  ;;  %v5327_v42 = vld [vmem:[%s6209_s2 + $0x38] ss:$24 sps:$4 sm:$0xff]  }
 0x263   :  { %1415 = vmatpush1.bf16.msra.mxu0 %v5067_v43  ;;  %v5335_v43 = vld [vmem:[%s6209_s2 + $0x64] ss:$24 sps:$4 sm:$0xff]  }
 0x264   :  { %1416 = vmatprep.subr.bf16.mxu0 %v5072_v44  ;;  %v5340_v44 = vld [vmem:[%s6209_s2 + $0x60] ss:$24 sps:$4 sm:$0xff]   ;;  %1804 = vmatprep.subr.bf16.mxu1 %v5335_v43 }
 0x265   :  { %1805 = vmatpush1.bf16.msra.mxu1 %v5340_v44 }
 0x267   :  { %1417 = vmatpush1.bf16.msra.mxu0 %v5081_v45  ;;  %v5345_v45 = vld [vmem:[%s6209_s2 + $0x6c] ss:$24 sps:$4 sm:$0xff]  }
 0x268   :  { %1418 = vmatprep.subr.bf16.mxu0 %v5086_v46  ;;  %v5351_v46 = vld [vmem:[%s6209_s2 + $0x68] ss:$24 sps:$4 sm:$0xff]  }
 0x26b   :  { %1419 = vmatpush1.bf16.msra.mxu0 %v5095_v47  ;;  %v5359_v47 = vld [vmem:[%s6209_s2 + $0x94] ss:$24 sps:$4 sm:$0xff]  }
 0x26c   :  { %1420 = vmatprep.subr.bf16.mxu0 %v5100_v48  ;;  %v5364_v48 = vld [vmem:[%s6209_s2 + $0x90] ss:$24 sps:$4 sm:$0xff]   ;;  %1806 = vmatprep.subr.bf16.mxu1 %v5359_v47 }
 0x26d   :  { %1807 = vmatpush1.bf16.msra.mxu1 %v5364_v48 }
 0x26e   :  { %1808 = vmatprep.subr.bf16.mxu1 %v5383_v20 }
 0x26f   :  { %1421 = vmatpush1.bf16.msra.mxu0 %v5109_v49  ;;  %v5369_v49 = vld [vmem:[%s6209_s2 + $0x9c] ss:$24 sps:$4 sm:$0xff]  }
 0x270   :  { %1841 = vmatprep.subr.bf16.mxu0 %v5297_v36  ;;  %6241 = vst [vmem:[#allocation3_spill] sm:$0xff] %v5369_v49 }
 0x271   :  { %1809 = vmatpush1.bf16.msra.mxu1 %v5388_v21 }
 0x272   :  { %1439 = vmatmul.mubr.bf16.vlgmr.msra.gmra.mrb[16].mxu0 %v1035_v19  ;;  %1810 = vmatprep.subr.bf16.mxu1 %v5404_v24 }
 0x273   :  { %1873 = vmatprep.mubr.bf16.mxu0 %v6236_v53  ;;  %1842 = vmatpush1.bf16.msra.mxu0 %v5303_v38 }
 0x274   :  { %1843 = vmatprep.subr.bf16.mxu0 %v5321_v41 }
 0x275   :  { %1811 = vmatpush1.bf16.msra.mxu1 %v5411_v25 }
 0x276   :  { %1812 = vmatprep.subr.bf16.mxu1 %v5428_v30 }
 0x277   :  { %1844 = vmatpush1.bf16.msra.mxu0 %v5327_v42 }
 0x278   :  { %1845 = vmatprep.subr.bf16.mxu0 %v5345_v45 }
 0x279   :  { %1813 = vmatpush1.bf16.msra.mxu1 %v5440_v50 }
 0x27a   :  { %1814 = vmatprep.subr.bf16.mxu1 %v5452_v56 }
 0x27b   :  { %1846 = vmatpush1.bf16.msra.mxu0 %v5351_v46 }
 0x27c   :  { %1847 = vmatprep.subr.bf16.mxu0 %v5369_v49 }
 0x27d   :  { %1815 = vmatpush1.bf16.msra.mxu1 %v5464_v33 }
 0x27e   :  { %1882 = vmatprep.subr.bf16.mxu1 %v5476_v31 }
 0x27f   :  { %1848 = vmatpush1.bf16.msra.mxu0 %v5375_v37 }
 0x280   :  { %1849 = vmatprep.subr.bf16.mxu0 %v5393_v22 }
 0x283   :  { %1850 = vmatpush1.bf16.msra.mxu0 %v5399_v23 }
 0x284   :  { %1851 = vmatprep.subr.bf16.mxu0 %v5416_v26 }
 0x287   :  { %1852 = vmatpush1.bf16.msra.mxu0 %v5423_v28 }
 0x288   :  { %1853 = vmatprep.subr.bf16.mxu0 %v5434_v52 }
 0x28b   :  { %1854 = vmatpush1.bf16.msra.mxu0 %v5447_v55 }
 0x28c   :  { %1855 = vmatprep.subr.bf16.mxu0 %v5458_v1 }
 0x28f   :  { %1856 = vmatpush1.bf16.msra.mxu0 %v5471_v29 }
 0x290   :  { %2276 = vmatprep.subr.bf16.mxu0 %v5287_v34 }
 0x325   :  { %v1358_v62 = vpop.f32.mrb[12].mxu0  ;;  %v1399_v63 = vpop.f32.mrb[12].mxu1 }
 0x326   :  { %v1455_v59 = vadd.f32 %v1452_v58, %v1358_v62  ;;  %v1360_v51 = vpop.f32.mrb[13].mxu0  ;;  %v1401_v3 = vpop.f32.mrb[13].mxu1  ;;  %v1454_v58 = vunpack.c.h.bf16 %v5237_v32  ;;  %v1469_v62 = vadd.f32 %v5147_v54, %v1399_v63  ;;  %v1483_v63 = vunpack.c.l.bf16 %v5245_v2 }
 0x327   :  { %v1362_v4 = vpop.f32.mrb[14].mxu0  ;;  %v1402_v5 = vpop.f32.mrb[14].mxu1  ;;  %v1462_v13 = vadd.f32 %v1453_v11, %v1360_v51 }
 0x328   :  { %v4099_v6 = vmul.f32 -1.442695, %v1455_v59  ;;  %v1363_v7 = vpop.f32.mrb[15].mxu0  ;;  %v1403_v8 = vpop.f32.mrb[15].mxu1  ;;  %v1482_v4 = vunpack.c.h.bf16 %v4101_v60 }
 0x329   :  { %v1484_v9 = vadd.f32 %v1481_v0, %v1403_v8  ;;  %v4100_v14 = vmul.f32 -1.442695, %v1462_v13 }
 0x32a   :  { %4652 = vpow2.f32 %v4099_v6 }
 0x32b   :  { %v4103_v12 = vmul.f32 -1.442695, %v1484_v9 }
 0x32d   :  { %4654 = vpow2.f32 %v4103_v12 }
 0x32e   :  { %4656 = vpow2.f32 %v4100_v14 }
 0x334   :  { %v4653_v15 = vpop.eup %4652 }
 0x335   :  { %v1459_v16 = vadd.f32 1.0, %v4653_v15 }
 0x337   :  { %4658 = vrcp.f32 %v1459_v16  ;;  %v4655_v27 = vpop.eup %4654 }
 0x338   :  { %v1488_v18 = vadd.f32 1.0, %v4655_v27  ;;  %v4657_v19 = vpop.eup %4656 }
 0x339   :  { %v1466_v57 = vadd.f32 1.0, %v4657_v19 }
 0x33a   :  { %4660 = vrcp.f32 %v1488_v18 }
 0x341   :  { %v4659_v59 = vpop.eup %4658 }
 0x342   :  { %v1470_v0 = vmul.f32 %v4659_v59, %v1469_v62 }
 0x344   :  { %v1471_v3 = vadd.f32 %v1470_v0, %v1454_v58  ;;  %v4661_v11 = vpop.eup %4660 }
 0x345   :  { %v1440_v51 = vpop.f32.mrb[16].mxu0 }
 0x346   :  { %4662 = vtanh.f32 %v1471_v3  ;;  %v1441_v5 = vpop.f32.mrb[17].mxu0  ;;  %v5507_v3 = vld [vmem:[%s6209_s2 + $0x10] ss:$24 sps:$4 sm:$0xff]   ;;  %v5516_v51 = vld [vmem:[%s6209_s2 + $0x44] ss:$24 sps:$4 sm:$0xff]  }
 0x347   :  { %v1442_v6 = vpop.f32.mrb[18].mxu0  ;;  %4664 = vrcp.f32 %v1466_v57  ;;  %v5532_v5 = vld [vmem:[%s6209_s2 + $0x74] ss:$24 sps:$4 sm:$0xff]  }
 0x348   :  { %v1491_v7 = vadd.f32 %v1482_v4, %v1442_v6  ;;  %v1444_v8 = vpop.f32.mrb[19].mxu0  ;;  %v5541_v6 = vld [vmem:[%s6209_s2 + $0x70] ss:$24 sps:$4 sm:$0xff]  }
 0x349   :  { %v1498_v9 = vadd.f32 %v5156_v61, %v1444_v8  ;;  %v5555_v8 = vld [vmem:[%s6209_s2 + $0xa0] ss:$24 sps:$4 sm:$0xff]  }
 0x34a   :  { %v4104_v12 = vmul.f32 -1.442695, %v1491_v7  ;;  %v5547_v7 = vld [vmem:[%s6209_s2 + $0xa4] ss:$24 sps:$4 sm:$0xff]  }
 0x34b   :  { %v1499_v32 = vmul.f32 %v4661_v11, %v1498_v9  ;;  %v5561_v9 = vld [vmem:[%s6209_s2 + $0xd4] ss:$24 sps:$4 sm:$0xff]   ;;  %v5569_v11 = vld [vmem:[%s6209_s2 + $0xd0] ss:$24 sps:$4 sm:$0xff]  }
 0x34c   :  { %4666 = vpow2.f32 %v4104_v12  ;;  %v5575_v12 = vld [vmem:[%s6209_s2 + $0x104] ss:$24 sps:$4 sm:$0xff]  }
 0x34d   :  { %v1500_v14 = vadd.f32 %v1499_v32, %v1483_v63  ;;  %v5583_v32 = vld [vmem:[%s6209_s2 + $0x100] ss:$24 sps:$4 sm:$0xff]   ;;  %v5589_v63 = vld [vmem:[%s6209_s2 + $0x134] ss:$24 sps:$4 sm:$0xff]  }
 0x34f   :  { %4668 = vtanh.f32 %v1500_v14  ;;  %v5603_v14 = vld [vmem:[%s6209_s2 + $0x164] ss:$24 sps:$4 sm:$0xff]  }
 0x350   :  { %v4663_v13 = vpop.eup %4662 }
 0x351   :  { %v1473_v15 = vsub.f32 %v5249_v10, %v4663_v13  ;;  %v4665_v60 = vpop.eup %4664 }
 0x353   :  { %v1474_v16 = vmul.f32 %v4665_v60, %v1473_v15  ;;  %v5611_v15 = vld [vmem:[%s6209_s2 + $0x160] ss:$24 sps:$4 sm:$0xff]   ;;  %v4155_v60 = vld [vmem:[%s6210_s0 + $0x24] sm:$0xff] }
 0x355   :  { %v5494_v27 = vadd.f32 %v4663_v13, %v1474_v16  ;;  %v5597_v13 = vld [vmem:[%s6209_s2 + $0x130] ss:$24 sps:$4 sm:$0xff]   ;;  %v1928_v16 = vunpack.c.l.bf16 %v4155_v60 }
 0x356   :  { %v4667_v18 = vpop.eup %4666 }
 0x357   :  { %v1495_v19 = vadd.f32 1.0, %v4667_v18  ;;  %v1505_v58 = vpack.c.bf16 %v5494_v27, %v5494_v27  ;;  %v4159_v18 = vld [vmem:[%s6211_s1 + $0x30] sm:$0xff] }
 0x359   :  { %4670 = vrcp.f32 %v1495_v19  ;;  %4105 = vst [vmem:[%s6214_s5 + $0x8] sm:$0xf] %v1505_v58  ;;  %v4669_v2 = vpop.eup %4668 }
 0x35a   :  { %v1502_v62 = vsub.f32 %v5257_v17, %v4669_v2  ;;  %v5525_v17 = vld [vmem:[%s6209_s2 + $0x40] ss:$24 sps:$4 sm:$0xff]  }
 0x363   :  { %v4671_v59 = vpop.eup %4670 }
 0x364   :  { %v1503_v10 = vmul.f32 %v4671_v59, %v1502_v62 }
 0x366   :  { %v5502_v0 = vadd.f32 %v4669_v2, %v1503_v10  ;;  %v1957_v2 = vunpack.c.l.bf16 %v4159_v18 }
 0x368   :  { %v1508_v57 = vpack.c.bf16 %v5502_v0, %v5502_v0  ;;  %v1511_v4 = vpack.c.bf16 %v5502_v0, %v5494_v27 }
 0x36a   :  { %4106 = vst [vmem:[%s6215_s6 + $0x14] sm:$0xf] %v1508_v57  ;;  %1833 = vmatmul.mubr.bf16.vlgmr.msra.gmra.mrb[16].mxu1 %v1511_v4  ;;  %1874 = vmatmul.mubr.bf16.vlgmr.msra.gmra.mrb[20].mxu0 %v1511_v4 }
 0x36b   :  { %1883 = vmatpush1.bf16.msra.mxu1 %v5507_v3  ;;  %1914 = vmatprep.mubr.bf16.mxu1 %v6236_v53 }
 0x36c   :  { %1884 = vmatprep.subr.bf16.mxu1 %v5516_v51  ;;  %2277 = vmatpush1.bf16.msra.mxu0 %v5292_v35 }
 0x36d   :  { %2278 = vmatprep.subr.bf16.mxu0 %v5311_v39  ;;  %2308 = vmatprep.mubr.bf16.mxu0 %v6236_v53 }
 0x36f   :  { %1885 = vmatpush1.bf16.msra.mxu1 %v5525_v17 }
 0x370   :  { %1886 = vmatprep.subr.bf16.mxu1 %v5532_v5  ;;  %2279 = vmatpush1.bf16.msra.mxu0 %v5316_v40 }
 0x371   :  { %2280 = vmatprep.subr.bf16.mxu0 %v5335_v43 }
 0x373   :  { %1887 = vmatpush1.bf16.msra.mxu1 %v5541_v6 }
 0x374   :  { %1888 = vmatprep.subr.bf16.mxu1 %v5547_v7  ;;  %2281 = vmatpush1.bf16.msra.mxu0 %v5340_v44 }
 0x375   :  { %2282 = vmatprep.subr.bf16.mxu0 %v5359_v47 }
 0x377   :  { %1889 = vmatpush1.bf16.msra.mxu1 %v5555_v8 }
 0x378   :  { %1890 = vmatprep.subr.bf16.mxu1 %v5561_v9  ;;  %2283 = vmatpush1.bf16.msra.mxu0 %v5364_v48 }
 0x379   :  { %2284 = vmatprep.subr.bf16.mxu0 %v5383_v20 }
 0x37b   :  { %1891 = vmatpush1.bf16.msra.mxu1 %v5569_v11 }
 0x37c   :  { %1892 = vmatprep.subr.bf16.mxu1 %v5575_v12  ;;  %2285 = vmatpush1.bf16.msra.mxu0 %v5388_v21 }
 0x37d   :  { %2286 = vmatprep.subr.bf16.mxu0 %v5404_v24 }
 0x37f   :  { %1893 = vmatpush1.bf16.msra.mxu1 %v5583_v32 }
 0x380   :  { %1894 = vmatprep.subr.bf16.mxu1 %v5589_v63  ;;  %2287 = vmatpush1.bf16.msra.mxu0 %v5411_v25 }
 0x381   :  { %2288 = vmatprep.subr.bf16.mxu0 %v5428_v30 }
 0x383   :  { %1895 = vmatpush1.bf16.msra.mxu1 %v5597_v13 }
 0x384   :  { %1896 = vmatprep.subr.bf16.mxu1 %v5603_v14  ;;  %2289 = vmatpush1.bf16.msra.mxu0 %v5440_v50 }
 0x385   :  { %2290 = vmatprep.subr.bf16.mxu0 %v5452_v56 }
 0x387   :  { %1897 = vmatpush1.bf16.msra.mxu1 %v5611_v15 }
 0x388   :  { %2317 = vmatprep.subr.bf16.mxu1 %v5297_v36  ;;  %2291 = vmatpush1.bf16.msra.mxu0 %v5464_v33 }
 0x389   :  { %2358 = vmatprep.subr.bf16.mxu0 %v5476_v31 }
 0x38a   :  { %1915 = vmatmul.mubr.bf16.vlgmr.msra.gmra.mrb[20].mxu1 %v1511_v4 }
 0x38b   :  { %2318 = vmatpush1.bf16.msra.mxu1 %v5303_v38  ;;  %2349 = vmatprep.mubr.bf16.mxu1 %v6236_v53 }
 0x38c   :  { %2319 = vmatprep.subr.bf16.mxu1 %v5321_v41 }
 0x38f   :  { %2320 = vmatpush1.bf16.msra.mxu1 %v5327_v42 }
 0x390   :  { %2321 = vmatprep.subr.bf16.mxu1 %v5345_v45 }
 0x393   :  { %2322 = vmatpush1.bf16.msra.mxu1 %v5351_v46 }
 0x394   :  { %2323 = vmatprep.subr.bf16.mxu1 %v5369_v49 }
 0x397   :  { %2324 = vmatpush1.bf16.msra.mxu1 %v5375_v37 }
 0x398   :  { %2325 = vmatprep.subr.bf16.mxu1 %v5393_v22 }
 0x39b   :  { %2326 = vmatpush1.bf16.msra.mxu1 %v5399_v23 }
 0x39c   :  { %2327 = vmatprep.subr.bf16.mxu1 %v5416_v26 }
 0x39f   :  { %2328 = vmatpush1.bf16.msra.mxu1 %v5423_v28 }
 0x3a0   :  { %2329 = vmatprep.subr.bf16.mxu1 %v5434_v52  ;;  %v1929_v52 = vunpack.c.h.bf16 %v4155_v60 }
 0x3a3   :  { %2330 = vmatpush1.bf16.msra.mxu1 %v5447_v55 }
 0x3a4   :  { %2331 = vmatprep.subr.bf16.mxu1 %v5458_v1 }
 0x3a7   :  { %2332 = vmatpush1.bf16.msra.mxu1 %v5471_v29 }
 0x3a8   :  { %2750 = vmatprep.subr.bf16.mxu1 %v5287_v34 }
 0x43d   :  { %v1834_v19 = vpop.f32.mrb[16].mxu1  ;;  %v1875_v58 = vpop.f32.mrb[20].mxu0 }
 0x43e   :  { %v1931_v62 = vadd.f32 %v1928_v16, %v1834_v19  ;;  %v1836_v59 = vpop.f32.mrb[17].mxu1  ;;  %v1877_v10 = vpop.f32.mrb[21].mxu0  ;;  %v5646_v19 = vld [vmem:[%s6210_s0 + $0x2c] ss:$12 sps:$4 sm:$0xff]  }
 0x43f   :  { %v1838_v57 = vpop.f32.mrb[18].mxu1  ;;  %v1878_v4 = vpop.f32.mrb[22].mxu0  ;;  %v1938_v26 = vadd.f32 %v1929_v52, %v1836_v59 }
 0x440   :  { %v4157_v29 = vmul.f32 -1.442695, %v1931_v62  ;;  %v1839_v1 = vpop.f32.mrb[19].mxu1  ;;  %v1879_v34 = vpop.f32.mrb[23].mxu0 }
 0x441   :  { %v1960_v55 = vadd.f32 %v1957_v2, %v1879_v34  ;;  %v4158_v23 = vmul.f32 -1.442695, %v1938_v26  ;;  %v1930_v2 = vunpack.c.l.bf16 %v5646_v19 }
 0x442   :  { %4672 = vpow2.f32 %v4157_v29  ;;  %v1945_v29 = vadd.f32 %v5147_v54, %v1875_v58  ;;  %v5654_v54 = vld [vmem:[%s6211_s1 + $0x2c] ss:$12 sps:$4 sm:$0xff]  }
 0x443   :  { %v4161_v28 = vmul.f32 -1.442695, %v1960_v55 }
 0x445   :  { %4674 = vpow2.f32 %v4161_v28 }
 0x446   :  { %4676 = vpow2.f32 %v4158_v23 }
 0x44c   :  { %v4673_v22 = vpop.eup %4672 }
 0x44d   :  { %v1935_v37 = vadd.f32 1.0, %v4673_v22  ;;  %v1958_v22 = vunpack.c.h.bf16 %v4159_v18  ;;  %v1959_v18 = vunpack.c.h.bf16 %v5654_v54 }
 0x44f   :  { %4678 = vrcp.f32 %v1935_v37  ;;  %v4675_v49 = vpop.eup %4674 }
 0x450   :  { %v1964_v16 = vadd.f32 1.0, %v4675_v49  ;;  %v4677_v1 = vpop.eup %4676 }
 0x451   :  { %v1942_v55 = vadd.f32 1.0, %v4677_v1 }
 0x452   :  { %4680 = vrcp.f32 %v1964_v16 }
 0x459   :  { %v4679_v52 = vpop.eup %4678 }
 0x45a   :  { %v1946_v28 = vmul.f32 %v4679_v52, %v1945_v29 }
 0x45c   :  { %v1947_v26 = vadd.f32 %v1946_v28, %v1930_v2  ;;  %v4681_v10 = vpop.eup %4680 }
 0x45d   :  { %v1916_v23 = vpop.f32.mrb[20].mxu1 }
 0x45e   :  { %4682 = vtanh.f32 %v1947_v26  ;;  %v1917_v37 = vpop.f32.mrb[21].mxu1 }
 0x45f   :  { %v1918_v49 = vpop.f32.mrb[22].mxu1  ;;  %4684 = vrcp.f32 %v1942_v55 }
 0x460   :  { %v1967_v60 = vadd.f32 %v1958_v22, %v1918_v49  ;;  %v1920_v62 = vpop.f32.mrb[23].mxu1 }
 0x461   :  { %v1974_v59 = vadd.f32 %v5156_v61, %v1920_v62 }
 0x462   :  { %v4162_v57 = vmul.f32 -1.442695, %v1967_v60 }
 0x463   :  { %v1975_v58 = vmul.f32 %v4681_v10, %v1974_v59 }
 0x464   :  { %4686 = vpow2.f32 %v4162_v57 }
 0x465   :  { %v1976_v34 = vadd.f32 %v1975_v58, %v1959_v18 }
 0x467   :  { %4688 = vtanh.f32 %v1976_v34 }
 0x468   :  { %v4683_v4 = vpop.eup %4682 }
 0x469   :  { %v1949_v16 = vsub.f32 %v5494_v27, %v4683_v4  ;;  %v4685_v1 = vpop.eup %4684 }
 0x46b   :  { %v1950_v2 = vmul.f32 %v4685_v1, %v1949_v16 }
 0x46d   :  { %v5658_v29 = vadd.f32 %v4683_v4, %v1950_v2  ;;  %v2405_v2 = vunpack.c.h.bf16 %v5646_v19 }
 0x46e   :  { %v4687_v61 = vpop.eup %4686 }
 0x46f   :  { %v1971_v52 = vadd.f32 1.0, %v4687_v61  ;;  %v1981_v28 = vpack.c.bf16 %v5658_v29, %v5658_v29  ;;  %v5735_v61 = vld [vmem:[%s6212_s3] ss:$0 sm:$0xff] }
 0x471   :  { %4690 = vrcp.f32 %v1971_v52  ;;  %4163 = vst [vmem:[%s6214_s5 + $0xc] sm:$0xf] %v1981_v28  ;;  %v4689_v26 = vpop.eup %4688 }
 0x472   :  { %v1978_v55 = vsub.f32 %v5502_v0, %v4689_v26 }
 0x47b   :  { %v4691_v22 = vpop.eup %4690 }
 0x47c   :  { %v1979_v27 = vmul.f32 %v4691_v22, %v1978_v55 }
 0x47e   :  { %v5666_v23 = vadd.f32 %v4689_v26, %v1979_v27 }
 0x480   :  { %v1984_v37 = vpack.c.bf16 %v5666_v23, %v5666_v23  ;;  %v1987_v49 = vpack.c.bf16 %v5666_v23, %v5658_v29 }
 0x482   :  { %4164 = vst [vmem:[%s6215_s6 + $0x10] sm:$0xf] %v1984_v37  ;;  %2309 = vmatmul.mubr.bf16.vlgmr.msra.gmra.mrb[24].mxu0 %v1987_v49  ;;  %2350 = vmatmul.mubr.bf16.vlgmr.msra.gmra.mrb[24].mxu1 %v1987_v49 }
 0x483   :  { %2359 = vmatpush1.bf16.msra.mxu0 %v5507_v3  ;;  %2390 = vmatprep.mubr.bf16.mxu0 %v6236_v53 }
 0x484   :  { %2360 = vmatprep.subr.bf16.mxu0 %v5516_v51  ;;  %2751 = vmatpush1.bf16.msra.mxu1 %v5292_v35  ;;  %v6251_v35 = vld [vmem:[#allocation3_spill] sm:$0xff] }
 0x485   :  { %2752 = vmatprep.subr.bf16.mxu1 %v5311_v39  ;;  %2782 = vmatprep.mubr.bf16.mxu1 %v6236_v53  ;;  %v6253_v39 = vld [vmem:[#allocation5_spill] sm:$0xff] }
 0x487   :  { %2361 = vmatpush1.bf16.msra.mxu0 %v5525_v17 }
 0x488   :  { %2362 = vmatprep.subr.bf16.mxu0 %v5532_v5  ;;  %2753 = vmatpush1.bf16.msra.mxu1 %v5316_v40  ;;  %v6254_v40 = vld [vmem:[#allocation6_spill] sm:$0xff] }
 0x489   :  { %2754 = vmatprep.subr.bf16.mxu1 %v5335_v43  ;;  %v6255_v43 = vld [vmem:[#allocation7_spill] sm:$0xff] }
 0x48b   :  { %2363 = vmatpush1.bf16.msra.mxu0 %v5541_v6 }
 0x48c   :  { %2364 = vmatprep.subr.bf16.mxu0 %v5547_v7  ;;  %2755 = vmatpush1.bf16.msra.mxu1 %v5340_v44  ;;  %v6257_v44 = vld [vmem:[#allocation9_spill] sm:$0xff] }
 0x48d   :  { %2756 = vmatprep.subr.bf16.mxu1 %v5359_v47 }
 0x48f   :  { %2365 = vmatpush1.bf16.msra.mxu0 %v5555_v8 }
 0x490   :  { %2366 = vmatprep.subr.bf16.mxu0 %v5561_v9  ;;  %2757 = vmatpush1.bf16.msra.mxu1 %v5364_v48  ;;  %v4217_v48 = vld [vmem:[%s6211_s1 + $0x24] sm:$0xff] }
 0x491   :  { %2758 = vmatprep.subr.bf16.mxu1 %v5383_v20  ;;  %v2432_v27 = vunpack.c.h.bf16 %v4217_v48 }
 0x493   :  { %2367 = vmatpush1.bf16.msra.mxu0 %v5569_v11 }
 0x494   :  { %2368 = vmatprep.subr.bf16.mxu0 %v5575_v12  ;;  %2759 = vmatpush1.bf16.msra.mxu1 %v5388_v21 }
 0x495   :  { %2760 = vmatprep.subr.bf16.mxu1 %v5404_v24  ;;  %v2431_v24 = vunpack.c.l.bf16 %v4217_v48 }
 0x497   :  { %2369 = vmatpush1.bf16.msra.mxu0 %v5583_v32 }
 0x498   :  { %2370 = vmatprep.subr.bf16.mxu0 %v5589_v63  ;;  %2761 = vmatpush1.bf16.msra.mxu1 %v5411_v25 }
 0x499   :  { %2762 = vmatprep.subr.bf16.mxu1 %v5428_v30 }
 0x49b   :  { %2371 = vmatpush1.bf16.msra.mxu0 %v5597_v13 }
 0x49c   :  { %2372 = vmatprep.subr.bf16.mxu0 %v5603_v14  ;;  %2763 = vmatpush1.bf16.msra.mxu1 %v5440_v50 }
 0x49d   :  { %2764 = vmatprep.subr.bf16.mxu1 %v5452_v56 }
 0x49f   :  { %2373 = vmatpush1.bf16.msra.mxu0 %v5611_v15 }
 0x4a0   :  { %2791 = vmatprep.subr.bf16.mxu0 %v5297_v36  ;;  %2765 = vmatpush1.bf16.msra.mxu1 %v5464_v33  ;;  %v6252_v36 = vld [vmem:[#allocation4_spill] sm:$0xff] }
 0x4a1   :  { %2832 = vmatprep.subr.bf16.mxu1 %v5476_v31 }
 0x4a2   :  { %2391 = vmatmul.mubr.bf16.vlgmr.msra.gmra.mrb[28].mxu0 %v1987_v49 }
 0x4a3   :  { %2792 = vmatpush1.bf16.msra.mxu0 %v5303_v38  ;;  %2823 = vmatprep.mubr.bf16.mxu0 %v6236_v53  ;;  %v6256_v38 = vld [vmem:[#allocation8_spill] sm:$0xff] }
 0x4a4   :  { %2793 = vmatprep.subr.bf16.mxu0 %v5321_v41  ;;  %v6258_v41 = vld [vmem:[#allocation10_spill] sm:$0xff] }
 0x4a7   :  { %2794 = vmatpush1.bf16.msra.mxu0 %v5327_v42  ;;  %v6259_v42 = vld [vmem:[#allocation11_spill] sm:$0xff] }
 0x4a8   :  { %2795 = vmatprep.subr.bf16.mxu0 %v5345_v45  ;;  %v6260_v45 = vld [vmem:[#allocation12_spill] sm:$0xff] }
 0x4ab   :  { %2796 = vmatpush1.bf16.msra.mxu0 %v5351_v46  ;;  %v4213_v46 = vld [vmem:[%s6210_s0 + $0x30] sm:$0xff] }
 0x4ac   :  { %2797 = vmatprep.subr.bf16.mxu0 %v6251_v35  ;;  %v2403_v47 = vunpack.c.l.bf16 %v4213_v46  ;;  %v2404_v59 = vunpack.c.h.bf16 %v4213_v46 }
 0x4af   :  { %2798 = vmatpush1.bf16.msra.mxu0 %v6252_v36 }
 0x4b0   :  { %2799 = vmatprep.subr.bf16.mxu0 %v6253_v39  ;;  %v5741_v39 = vld [vmem:[%s6213_s4] ss:$0 sm:$0xff] }
 0x4b3   :  { %2800 = vmatpush1.bf16.msra.mxu0 %v6254_v40 }
 0x4b4   :  { %2801 = vmatprep.subr.bf16.mxu0 %v6255_v43 }
 0x4b7   :  { %2802 = vmatpush1.bf16.msra.mxu0 %v6256_v38 }
 0x4b8   :  { %2803 = vmatprep.subr.bf16.mxu0 %v6257_v44 }
 0x4bb   :  { %2804 = vmatpush1.bf16.msra.mxu0 %v6258_v41  ;;  %v2433_v41 = vunpack.c.l.bf16 %v5654_v54 }
 0x4bc   :  { %2805 = vmatprep.subr.bf16.mxu0 %v6259_v42 }
 0x4bf   :  { %2806 = vmatpush1.bf16.msra.mxu0 %v6260_v45 }
 0x555   :  { %v2310_v20 = vpop.f32.mrb[24].mxu0  ;;  %v2351_v21 = vpop.f32.mrb[24].mxu1 }
 0x556   :  { %v2406_v25 = vadd.f32 %v2403_v47, %v2310_v20  ;;  %v2312_v30 = vpop.f32.mrb[25].mxu0  ;;  %v2353_v50 = vpop.f32.mrb[25].mxu1  ;;  %v2420_v52 = vadd.f32 %v5735_v61, %v2351_v21 }
 0x557   :  { %v2314_v56 = vpop.f32.mrb[26].mxu0  ;;  %v2354_v33 = vpop.f32.mrb[26].mxu1  ;;  %v2413_v57 = vadd.f32 %v2404_v59, %v2312_v30  ;;  %v5896_v59 = vld [vmem:[%s6209_s2 + $0xc8] ss:$24 sps:$4 sm:$0xff]  }
 0x558   :  { %v4215_v31 = vmul.f32 -1.442695, %v2406_v25  ;;  %v2315_v0 = vpop.f32.mrb[27].mxu0  ;;  %v2355_v60 = vpop.f32.mrb[27].mxu1 }
 0x559   :  { %v2434_v62 = vadd.f32 %v2431_v24, %v2355_v60  ;;  %v4216_v58 = vmul.f32 -1.442695, %v2413_v57  ;;  %v5880_v0 = vld [vmem:[%s6209_s2 + $0xc4] ss:$24 sps:$4 sm:$0xff]   ;;  %v5885_v60 = vld [vmem:[%s6209_s2 + $0xc0] ss:$24 sps:$4 sm:$0xff]  }
 0x55a   :  { %4692 = vpow2.f32 %v4215_v31  ;;  %v5908_v57 = vld [vmem:[%s6209_s2 + $0xf0] ss:$24 sps:$4 sm:$0xff]  }
 0x55b   :  { %v4219_v10 = vmul.f32 -1.442695, %v2434_v62  ;;  %v5890_v62 = vld [vmem:[%s6209_s2 + $0xcc] ss:$24 sps:$4 sm:$0xff]  }
 0x55d   :  { %4694 = vpow2.f32 %v4219_v10  ;;  %v5901_v10 = vld [vmem:[%s6209_s2 + $0xf4] ss:$24 sps:$4 sm:$0xff]  }
 0x55e   :  { %4696 = vpow2.f32 %v4216_v58  ;;  %v5913_v58 = vld [vmem:[%s6209_s2 + $0xfc] ss:$24 sps:$4 sm:$0xff]  }
 0x564   :  { %v4693_v18 = vpop.eup %4692 }
 0x565   :  { %v2410_v4 = vadd.f32 1.0, %v4693_v18  ;;  %v5920_v18 = vld [vmem:[%s6209_s2 + $0xf8] ss:$24 sps:$4 sm:$0xff]  }
 0x567   :  { %4698 = vrcp.f32 %v2410_v4  ;;  %v4695_v34 = vpop.eup %4694  ;;  %v5925_v4 = vld [vmem:[%s6209_s2 + $0x124] ss:$24 sps:$4 sm:$0xff]  }
 0x568   :  { %v2438_v16 = vadd.f32 1.0, %v4695_v34  ;;  %v4697_v1 = vpop.eup %4696  ;;  %v5931_v34 = vld [vmem:[%s6209_s2 + $0x12c] ss:$24 sps:$4 sm:$0xff]  }
 0x569   :  { %v2417_v22 = vadd.f32 1.0, %v4697_v1  ;;  %v5944_v1 = vld [vmem:[%s6209_s2 + $0x128] ss:$24 sps:$4 sm:$0xff]  }
 0x56a   :  { %4700 = vrcp.f32 %v2438_v16  ;;  %v5937_v16 = vld [vmem:[%s6209_s2 + $0x120] ss:$24 sps:$4 sm:$0xff]  }
 0x571   :  { %v4699_v28 = vpop.eup %4698 }
 0x572   :  { %v2421_v26 = vmul.f32 %v4699_v28, %v2420_v52  ;;  %v5955_v52 = vld [vmem:[%s6209_s2 + $0x15c] ss:$24 sps:$4 sm:$0xff]   ;;  %v5961_v28 = vld [vmem:[%s6209_s2 + $0x150] ss:$24 sps:$4 sm:$0xff]  }
 0x574   :  { %v2422_v55 = vadd.f32 %v2421_v26, %v2405_v2  ;;  %v4701_v43 = vpop.eup %4700  ;;  %v5949_v2 = vld [vmem:[%s6209_s2 + $0x154] ss:$24 sps:$4 sm:$0xff]   ;;  %v5968_v26 = vld [vmem:[%s6209_s2 + $0x158] ss:$24 sps:$4 sm:$0xff]  }
 0x575   :  { %v2392_v37 = vpop.f32.mrb[28].mxu0 }
 0x576   :  { %4702 = vtanh.f32 %v2422_v55  ;;  %v2393_v49 = vpop.f32.mrb[29].mxu0  ;;  %v5973_v55 = vld [vmem:[%s6209_s2 + $0x14] ss:$24 sps:$4 sm:$0xff]   ;;  %v4275_v37 = vld [vmem:[%s6211_s1 + $0x18] sm:$0xff] }
 0x577   :  { %v2394_v35 = vpop.f32.mrb[30].mxu0  ;;  %4704 = vrcp.f32 %v2417_v22  ;;  %v4271_v22 = vld [vmem:[%s6210_s0 + $0x3c] sm:$0xff] }
 0x578   :  { %v2441_v36 = vadd.f32 %v2432_v27, %v2394_v35  ;;  %v2396_v19 = vpop.f32.mrb[31].mxu0  ;;  %v2877_v27 = vunpack.c.l.bf16 %v4271_v22 }
 0x579   :  { %v2448_v40 = vadd.f32 %v5741_v39, %v2396_v19 }
 0x57a   :  { %v4220_v38 = vmul.f32 -1.442695, %v2441_v36  ;;  %v2905_v36 = vunpack.c.l.bf16 %v4275_v37 }
 0x57b   :  { %v2449_v44 = vmul.f32 %v4701_v43, %v2448_v40 }
 0x57c   :  { %4706 = vpow2.f32 %v4220_v38 }
 0x57d   :  { %v2450_v45 = vadd.f32 %v2449_v44, %v2433_v41 }
 0x57f   :  { %4708 = vtanh.f32 %v2450_v45 }
 0x580   :  { %v4703_v42 = vpop.eup %4702 }
 0x581   :  { %v2424_v46 = vsub.f32 %v5658_v29, %v4703_v42  ;;  %v4705_v47 = vpop.eup %4704 }
 0x583   :  { %v2425_v48 = vmul.f32 %v4705_v47, %v2424_v46  ;;  %v2878_v47 = vunpack.c.h.bf16 %v4271_v22 }
 0x585   :  { %v5746_v20 = vadd.f32 %v4703_v42, %v2425_v48 }
 0x586   :  { %v4707_v21 = vpop.eup %4706 }
 0x587   :  { %v2445_v24 = vadd.f32 1.0, %v4707_v21  ;;  %v2455_v25 = vpack.c.bf16 %v5746_v20, %v5746_v20 }
 0x589   :  { %4710 = vrcp.f32 %v2445_v24  ;;  %4221 = vst [vmem:[%s6214_s5 + $0x10] sm:$0xf] %v2455_v25  ;;  %v4709_v54 = vpop.eup %4708 }
 0x58a   :  { %v2452_v30 = vsub.f32 %v5666_v23, %v4709_v54  ;;  %v5872_v23 = vld [vmem:[%s6209_s2 + $0x98] ss:$24 sps:$4 sm:$0xff]  }
 0x593   :  { %v4711_v50 = vpop.eup %4710 }
 0x594   :  { %v2453_v29 = vmul.f32 %v4711_v50, %v2452_v30 }
 0x596   :  { %v5754_v56 = vadd.f32 %v4709_v54, %v2453_v29  ;;  %v5989_v29 = vld [vmem:[%s6210_s0 + $0x44] ss:$12 sps:$4 sm:$0xff]  }
 0x598   :  { %v2458_v33 = vpack.c.bf16 %v5754_v56, %v5754_v56  ;;  %v2461_v31 = vpack.c.bf16 %v5754_v56, %v5746_v20 }
 0x59a   :  { %4222 = vst [vmem:[%s6215_s6 + $0xc] sm:$0xf] %v2458_v33  ;;  %2783 = vmatmul.mubr.bf16.vlgmr.msra.gmra.mrb[28].mxu1 %v2461_v31  ;;  %2824 = vmatmul.mubr.bf16.vlgmr.msra.gmra.mrb[32].mxu0 %v2461_v31 }
 0x59b   :  { %2833 = vmatpush1.bf16.msra.mxu1 %v5507_v3  ;;  %2864 = vmatprep.mubr.bf16.mxu1 %v6236_v53  ;;  %v5784_v3 = vld [vmem:[%s6209_s2 + $0x4] ss:$24 sps:$4 sm:$0xff]  }
 0x59c   :  { %2834 = vmatprep.subr.bf16.mxu1 %v5516_v51  ;;  %3256 = vmatprep.mubr.bf16.mxu0 %v6236_v53  ;;  %v5789_v51 = vld [vmem:[%s6209_s2] ss:$24 sps:$4 sm:$0xff]  }
 0x59d   :  { %3224 = vmatprep.subr.bf16.mxu0 %v5784_v3 }
 0x59e   :  { %3225 = vmatpush1.bf16.msra.mxu0 %v5789_v51 }
 0x59f   :  { %2835 = vmatpush1.bf16.msra.mxu1 %v5525_v17  ;;  %v5794_v17 = vld [vmem:[%s6209_s2 + $0xc] ss:$24 sps:$4 sm:$0xff]  }
 0x5a0   :  { %2836 = vmatprep.subr.bf16.mxu1 %v5532_v5  ;;  %v5800_v5 = vld [vmem:[%s6209_s2 + $0x8] ss:$24 sps:$4 sm:$0xff]  }
 0x5a3   :  { %2837 = vmatpush1.bf16.msra.mxu1 %v5541_v6  ;;  %v5808_v6 = vld [vmem:[%s6209_s2 + $0x34] ss:$24 sps:$4 sm:$0xff]  }
 0x5a4   :  { %2838 = vmatprep.subr.bf16.mxu1 %v5547_v7  ;;  %v5813_v7 = vld [vmem:[%s6209_s2 + $0x30] ss:$24 sps:$4 sm:$0xff]   ;;  %3226 = vmatprep.subr.bf16.mxu0 %v5808_v6 }
 0x5a5   :  { %3227 = vmatpush1.bf16.msra.mxu0 %v5813_v7 }
 0x5a7   :  { %2839 = vmatpush1.bf16.msra.mxu1 %v5555_v8  ;;  %v5818_v8 = vld [vmem:[%s6209_s2 + $0x3c] ss:$24 sps:$4 sm:$0xff]  }
 0x5a8   :  { %2840 = vmatprep.subr.bf16.mxu1 %v5561_v9  ;;  %v5824_v9 = vld [vmem:[%s6209_s2 + $0x38] ss:$24 sps:$4 sm:$0xff]  }
 0x5ab   :  { %2841 = vmatpush1.bf16.msra.mxu1 %v5569_v11  ;;  %v5832_v11 = vld [vmem:[%s6209_s2 + $0x64] ss:$24 sps:$4 sm:$0xff]  }
 0x5ac   :  { %2842 = vmatprep.subr.bf16.mxu1 %v5575_v12  ;;  %v5837_v12 = vld [vmem:[%s6209_s2 + $0x60] ss:$24 sps:$4 sm:$0xff]   ;;  %3228 = vmatprep.subr.bf16.mxu0 %v5832_v11 }
 0x5ad   :  { %3229 = vmatpush1.bf16.msra.mxu0 %v5837_v12 }
 0x5af   :  { %2843 = vmatpush1.bf16.msra.mxu1 %v5583_v32  ;;  %v5842_v32 = vld [vmem:[%s6209_s2 + $0x6c] ss:$24 sps:$4 sm:$0xff]  }
 0x5b0   :  { %2844 = vmatprep.subr.bf16.mxu1 %v5589_v63  ;;  %v5848_v63 = vld [vmem:[%s6209_s2 + $0x68] ss:$24 sps:$4 sm:$0xff]  }
 0x5b3   :  { %2845 = vmatpush1.bf16.msra.mxu1 %v5597_v13  ;;  %v5856_v13 = vld [vmem:[%s6209_s2 + $0x94] ss:$24 sps:$4 sm:$0xff]  }
 0x5b4   :  { %2846 = vmatprep.subr.bf16.mxu1 %v5603_v14  ;;  %v5861_v14 = vld [vmem:[%s6209_s2 + $0x90] ss:$24 sps:$4 sm:$0xff]   ;;  %3230 = vmatprep.subr.bf16.mxu0 %v5856_v13 }
 0x5b5   :  { %3231 = vmatpush1.bf16.msra.mxu0 %v5861_v14 }
 0x5b6   :  { %3232 = vmatprep.subr.bf16.mxu0 %v5880_v0 }
 0x5b7   :  { %2847 = vmatpush1.bf16.msra.mxu1 %v5611_v15  ;;  %v5866_v15 = vld [vmem:[%s6209_s2 + $0x9c] ss:$24 sps:$4 sm:$0xff]  }
 0x5b8   :  { %3265 = vmatprep.subr.bf16.mxu1 %v5794_v17 }
 0x5b9   :  { %3233 = vmatpush1.bf16.msra.mxu0 %v5885_v60 }
 0x5ba   :  { %2865 = vmatmul.mubr.bf16.vlgmr.msra.gmra.mrb[32].mxu1 %v2461_v31  ;;  %3234 = vmatprep.subr.bf16.mxu0 %v5901_v10  ;;  %v2879_v31 = vunpack.c.l.bf16 %v5989_v29 }
 0x5bb   :  { %3297 = vmatprep.mubr.bf16.mxu1 %v6236_v53  ;;  %3266 = vmatpush1.bf16.msra.mxu1 %v5800_v5 }
 0x5bc   :  { %3267 = vmatprep.subr.bf16.mxu1 %v5818_v8 }
 0x5bd   :  { %3235 = vmatpush1.bf16.msra.mxu0 %v5908_v57 }
 0x5be   :  { %3236 = vmatprep.subr.bf16.mxu0 %v5925_v4 }
 0x5bf   :  { %3268 = vmatpush1.bf16.msra.mxu1 %v5824_v9 }
 0x5c0   :  { %3269 = vmatprep.subr.bf16.mxu1 %v5842_v32 }
 0x5c1   :  { %3237 = vmatpush1.bf16.msra.mxu0 %v5937_v16 }
 0x5c2   :  { %3238 = vmatprep.subr.bf16.mxu0 %v5949_v2 }
 0x5c3   :  { %3270 = vmatpush1.bf16.msra.mxu1 %v5848_v63 }
 0x5c4   :  { %3271 = vmatprep.subr.bf16.mxu1 %v5866_v15 }
 0x5c5   :  { %3239 = vmatpush1.bf16.msra.mxu0 %v5961_v28 }
 0x5c6   :  { %3306 = vmatprep.subr.bf16.mxu0 %v5973_v55 }
 0x5c7   :  { %3272 = vmatpush1.bf16.msra.mxu1 %v5872_v23 }
 0x5c8   :  { %3273 = vmatprep.subr.bf16.mxu1 %v5890_v62 }
 0x5cb   :  { %3274 = vmatpush1.bf16.msra.mxu1 %v5896_v59 }
 0x5cc   :  { %3275 = vmatprep.subr.bf16.mxu1 %v5913_v58 }
 0x5cf   :  { %3276 = vmatpush1.bf16.msra.mxu1 %v5920_v18 }
 0x5d0   :  { %3277 = vmatprep.subr.bf16.mxu1 %v5931_v34 }
 0x5d3   :  { %3278 = vmatpush1.bf16.msra.mxu1 %v5944_v1 }
 0x5d4   :  { %3279 = vmatprep.subr.bf16.mxu1 %v5955_v52 }
 0x5d7   :  { %3280 = vmatpush1.bf16.msra.mxu1 %v5968_v26 }
 0x5d8   :  { %3698 = vmatprep.subr.bf16.mxu1 %v5784_v3 }
 0x66d   :  { %v2784_v49 = vpop.f32.mrb[28].mxu1  ;;  %v2825_v35 = vpop.f32.mrb[32].mxu0 }
 0x66e   :  { %v2880_v19 = vadd.f32 %v2877_v27, %v2784_v49  ;;  %v2786_v40 = vpop.f32.mrb[29].mxu1  ;;  %v2827_v43 = vpop.f32.mrb[33].mxu0  ;;  %v2894_v3 = vadd.f32 %v5735_v61, %v2825_v35  ;;  %v5997_v35 = vld [vmem:[%s6211_s1 + $0x14] ss:$12 sps:$4 sm:$0xff]  }
 0x66f   :  { %v2788_v38 = vpop.f32.mrb[30].mxu1  ;;  %v2828_v44 = vpop.f32.mrb[34].mxu0  ;;  %v2887_v21 = vadd.f32 %v2878_v47, %v2786_v40 }
 0x670   :  { %v4273_v41 = vmul.f32 -1.442695, %v2880_v19  ;;  %v2789_v42 = vpop.f32.mrb[31].mxu1  ;;  %v2829_v45 = vpop.f32.mrb[35].mxu0  ;;  %v2906_v19 = vunpack.c.h.bf16 %v4275_v37  ;;  %v2907_v37 = vunpack.c.h.bf16 %v5997_v35 }
 0x671   :  { %v2908_v46 = vadd.f32 %v2905_v36, %v2829_v45  ;;  %v4274_v24 = vmul.f32 -1.442695, %v2887_v21 }
 0x672   :  { %4712 = vpow2.f32 %v4273_v41 }
 0x673   :  { %v4277_v48 = vmul.f32 -1.442695, %v2908_v46 }
 0x675   :  { %4714 = vpow2.f32 %v4277_v48 }
 0x676   :  { %4716 = vpow2.f32 %v4274_v24 }
 0x67c   :  { %v4713_v25 = vpop.eup %4712 }
 0x67d   :  { %v2884_v54 = vadd.f32 1.0, %v4713_v25 }
 0x67f   :  { %4718 = vrcp.f32 %v2884_v54  ;;  %v4715_v30 = vpop.eup %4714 }
 0x680   :  { %v2912_v50 = vadd.f32 1.0, %v4715_v30  ;;  %v4717_v33 = vpop.eup %4716 }
 0x681   :  { %v2891_v36 = vadd.f32 1.0, %v4717_v33 }
 0x682   :  { %4720 = vrcp.f32 %v2912_v50 }
 0x689   :  { %v4719_v22 = vpop.eup %4718 }
 0x68a   :  { %v2895_v27 = vmul.f32 %v4719_v22, %v2894_v3 }
 0x68c   :  { %v2896_v49 = vadd.f32 %v2895_v27, %v2879_v31  ;;  %v4721_v45 = vpop.eup %4720 }
 0x68d   :  { %v2866_v40 = vpop.f32.mrb[32].mxu1 }
 0x68e   :  { %4722 = vtanh.f32 %v2896_v49  ;;  %v2867_v43 = vpop.f32.mrb[33].mxu1 }
 0x68f   :  { %v2868_v38 = vpop.f32.mrb[34].mxu1  ;;  %4724 = vrcp.f32 %v2891_v36  ;;  %v6014_v36 = vld [vmem:[%s6209_s2 + $0x10] ss:$24 sps:$4 sm:$0xff]   ;;  %v6023_v43 = vld [vmem:[%s6209_s2 + $0x44] ss:$24 sps:$4 sm:$0xff]  }
 0x690   :  { %v2915_v44 = vadd.f32 %v2906_v19, %v2868_v38  ;;  %v2870_v41 = vpop.f32.mrb[35].mxu1  ;;  %v6039_v38 = vld [vmem:[%s6209_s2 + $0x74] ss:$24 sps:$4 sm:$0xff]  }
 0x691   :  { %v2922_v42 = vadd.f32 %v5741_v39, %v2870_v41  ;;  %v6054_v41 = vld [vmem:[%s6209_s2 + $0xa4] ss:$24 sps:$4 sm:$0xff]  }
 0x692   :  { %v4278_v46 = vmul.f32 -1.442695, %v2915_v44  ;;  %v6048_v44 = vld [vmem:[%s6209_s2 + $0x70] ss:$24 sps:$4 sm:$0xff]  }
 0x693   :  { %v2923_v47 = vmul.f32 %v4721_v45, %v2922_v42  ;;  %v3353_v45 = vunpack.c.h.bf16 %v5989_v29 }
 0x694   :  { %4726 = vpow2.f32 %v4278_v46 }
 0x695   :  { %v2924_v21 = vadd.f32 %v2923_v47, %v2907_v37 }
 0x697   :  { %4728 = vtanh.f32 %v2924_v21 }
 0x698   :  { %v4723_v48 = vpop.eup %4722 }
 0x699   :  { %v2898_v24 = vsub.f32 %v5746_v20, %v4723_v48  ;;  %v4725_v25 = vpop.eup %4724 }
 0x69b   :  { %v2899_v54 = vmul.f32 %v4725_v25, %v2898_v24 }
 0x69d   :  { %v6001_v30 = vadd.f32 %v4723_v48, %v2899_v54 }
 0x69e   :  { %v4727_v50 = vpop.eup %4726 }
 0x69f   :  { %v2919_v33 = vadd.f32 1.0, %v4727_v50  ;;  %v2929_v31 = vpack.c.bf16 %v6001_v30, %v6001_v30 }
 0x6a1   :  { %4730 = vrcp.f32 %v2919_v33  ;;  %4279 = vst [vmem:[%s6214_s5 + $0x14] sm:$0xf] %v2929_v31  ;;  %v4729_v3 = vpop.eup %4728 }
 0x6a2   :  { %v2926_v22 = vsub.f32 %v5754_v56, %v4729_v3  ;;  %v6032_v56 = vld [vmem:[%s6209_s2 + $0x40] ss:$24 sps:$4 sm:$0xff]  }
 0x6ab   :  { %v4731_v27 = vpop.eup %4730 }
 0x6ac   :  { %v2927_v20 = vmul.f32 %v4731_v27, %v2926_v22 }
 0x6ae   :  { %v6009_v49 = vadd.f32 %v4729_v3, %v2927_v20  ;;  %v3381_v20 = vunpack.c.l.bf16 %v5997_v35 }
 0x6b0   :  { %v2932_v19 = vpack.c.bf16 %v6009_v49, %v6009_v49  ;;  %v2935_v40 = vpack.c.bf16 %v6009_v49, %v6001_v30 }
 0x6b2   :  { %4280 = vst [vmem:[%s6215_s6 + $0x8] sm:$0xf] %v2932_v19  ;;  %3257 = vmatmul.mubr.bf16.vlgmr.msra.gmra.mrb[36].mxu0 %v2935_v40  ;;  %3298 = vmatmul.mubr.bf16.vlgmr.msra.gmra.mrb[36].mxu1 %v2935_v40 }
 0x6b3   :  { %3307 = vmatpush1.bf16.msra.mxu0 %v6014_v36  ;;  %3338 = vmatprep.mubr.bf16.mxu0 %v6236_v53 }
 0x6b4   :  { %3308 = vmatprep.subr.bf16.mxu0 %v6023_v43  ;;  %3699 = vmatpush1.bf16.msra.mxu1 %v5789_v51  ;;  %v6062_v51 = vld [vmem:[%s6209_s2 + $0xa0] ss:$24 sps:$4 sm:$0xff]  }
 0x6b5   :  { %3700 = vmatprep.subr.bf16.mxu1 %v5808_v6  ;;  %3730 = vmatprep.mubr.bf16.mxu1 %v6236_v53  ;;  %v6068_v6 = vld [vmem:[%s6209_s2 + $0xd4] ss:$24 sps:$4 sm:$0xff]  }
 0x6b7   :  { %3309 = vmatpush1.bf16.msra.mxu0 %v6032_v56 }
 0x6b8   :  { %3310 = vmatprep.subr.bf16.mxu0 %v6039_v38  ;;  %3701 = vmatpush1.bf16.msra.mxu1 %v5813_v7  ;;  %v6076_v7 = vld [vmem:[%s6209_s2 + $0xd0] ss:$24 sps:$4 sm:$0xff]  }
 0x6b9   :  { %3702 = vmatprep.subr.bf16.mxu1 %v5832_v11  ;;  %v6082_v11 = vld [vmem:[%s6209_s2 + $0x104] ss:$24 sps:$4 sm:$0xff]  }
 0x6bb   :  { %3311 = vmatpush1.bf16.msra.mxu0 %v6048_v44 }
 0x6bc   :  { %3312 = vmatprep.subr.bf16.mxu0 %v6054_v41  ;;  %3703 = vmatpush1.bf16.msra.mxu1 %v5837_v12  ;;  %v6090_v12 = vld [vmem:[%s6209_s2 + $0x100] ss:$24 sps:$4 sm:$0xff]  }
 0x6bd   :  { %3704 = vmatprep.subr.bf16.mxu1 %v5856_v13  ;;  %v6096_v13 = vld [vmem:[%s6209_s2 + $0x134] ss:$24 sps:$4 sm:$0xff]  }
 0x6bf   :  { %3313 = vmatpush1.bf16.msra.mxu0 %v6062_v51 }
 0x6c0   :  { %3314 = vmatprep.subr.bf16.mxu0 %v6068_v6  ;;  %3705 = vmatpush1.bf16.msra.mxu1 %v5861_v14  ;;  %v6104_v14 = vld [vmem:[%s6209_s2 + $0x130] ss:$24 sps:$4 sm:$0xff]  }
 0x6c1   :  { %3706 = vmatprep.subr.bf16.mxu1 %v5880_v0  ;;  %v6110_v0 = vld [vmem:[%s6209_s2 + $0x164] ss:$24 sps:$4 sm:$0xff]  }
 0x6c3   :  { %3315 = vmatpush1.bf16.msra.mxu0 %v6076_v7 }
 0x6c4   :  { %3316 = vmatprep.subr.bf16.mxu0 %v6082_v11  ;;  %3707 = vmatpush1.bf16.msra.mxu1 %v5885_v60  ;;  %v6118_v60 = vld [vmem:[%s6209_s2 + $0x160] ss:$24 sps:$4 sm:$0xff]  }
 0x6c5   :  { %3708 = vmatprep.subr.bf16.mxu1 %v5901_v10 }
 0x6c7   :  { %3317 = vmatpush1.bf16.msra.mxu0 %v6090_v12 }
 0x6c8   :  { %3318 = vmatprep.subr.bf16.mxu0 %v6096_v13  ;;  %3709 = vmatpush1.bf16.msra.mxu1 %v5908_v57 }
 0x6c9   :  { %3710 = vmatprep.subr.bf16.mxu1 %v5925_v4 }
 0x6cb   :  { %3319 = vmatpush1.bf16.msra.mxu0 %v6104_v14 }
 0x6cc   :  { %3320 = vmatprep.subr.bf16.mxu0 %v6110_v0  ;;  %3711 = vmatpush1.bf16.msra.mxu1 %v5937_v16 }
 0x6cd   :  { %3712 = vmatprep.subr.bf16.mxu1 %v5949_v2 }
 0x6cf   :  { %3321 = vmatpush1.bf16.msra.mxu0 %v6118_v60 }
 0x6d0   :  { %3739 = vmatprep.subr.bf16.mxu0 %v5794_v17  ;;  %3713 = vmatpush1.bf16.msra.mxu1 %v5961_v28  ;;  %v4329_v17 = vld [vmem:[%s6210_s0 + $0x48] sm:$0xff] }
 0x6d1   :  { %3780 = vmatprep.subr.bf16.mxu1 %v5973_v55 }
 0x6d2   :  { %3339 = vmatmul.mubr.bf16.vlgmr.msra.gmra.mrb[40].mxu0 %v2935_v40 }
 0x6d3   :  { %3740 = vmatpush1.bf16.msra.mxu0 %v5800_v5  ;;  %3771 = vmatprep.mubr.bf16.mxu0 %v6236_v53  ;;  %v3351_v5 = vunpack.c.l.bf16 %v4329_v17 }
 0x6d4   :  { %3741 = vmatprep.subr.bf16.mxu0 %v5818_v8  ;;  %v4333_v8 = vld [vmem:[%s6211_s1 + $0xc] sm:$0xff] }
 0x6d5   :  { %v3380_v24 = vunpack.c.h.bf16 %v4333_v8 }
 0x6d7   :  { %3742 = vmatpush1.bf16.msra.mxu0 %v5824_v9 }
 0x6d8   :  { %3743 = vmatprep.subr.bf16.mxu0 %v5842_v32 }
 0x6db   :  { %3744 = vmatpush1.bf16.msra.mxu0 %v5848_v63  ;;  %v3379_v63 = vunpack.c.l.bf16 %v4333_v8 }
 0x6dc   :  { %3745 = vmatprep.subr.bf16.mxu0 %v5866_v15 }
 0x6df   :  { %3746 = vmatpush1.bf16.msra.mxu0 %v5872_v23 }
 0x6e0   :  { %3747 = vmatprep.subr.bf16.mxu0 %v5890_v62 }
 0x6e3   :  { %3748 = vmatpush1.bf16.msra.mxu0 %v5896_v59 }
 0x6e4   :  { %3749 = vmatprep.subr.bf16.mxu0 %v5913_v58 }
 0x6e7   :  { %3750 = vmatpush1.bf16.msra.mxu0 %v5920_v18 }
 0x6e8   :  { %3751 = vmatprep.subr.bf16.mxu0 %v5931_v34  ;;  %v3352_v34 = vunpack.c.h.bf16 %v4329_v17 }
 0x6eb   :  { %3752 = vmatpush1.bf16.msra.mxu0 %v5944_v1 }
 0x6ec   :  { %3753 = vmatprep.subr.bf16.mxu0 %v5955_v52 }
 0x6ef   :  { %3754 = vmatpush1.bf16.msra.mxu0 %v5968_v26 }
 0x785   :  { %v3258_v9 = vpop.f32.mrb[36].mxu0  ;;  %v3299_v32 = vpop.f32.mrb[36].mxu1 }
 0x786   :  { %v3354_v15 = vadd.f32 %v3351_v5, %v3258_v9  ;;  %v3260_v23 = vpop.f32.mrb[37].mxu0  ;;  %v3301_v62 = vpop.f32.mrb[37].mxu1  ;;  %v3368_v46 = vadd.f32 %v5735_v61, %v3299_v32 }
 0x787   :  { %v3262_v59 = vpop.f32.mrb[38].mxu0  ;;  %v3302_v10 = vpop.f32.mrb[38].mxu1  ;;  %v3361_v1 = vadd.f32 %v3352_v34, %v3260_v23 }
 0x788   :  { %v4331_v57 = vmul.f32 -1.442695, %v3354_v15  ;;  %v3263_v58 = vpop.f32.mrb[39].mxu0  ;;  %v3303_v18 = vpop.f32.mrb[39].mxu1 }
 0x789   :  { %v3382_v4 = vadd.f32 %v3379_v63, %v3303_v18  ;;  %v4332_v2 = vmul.f32 -1.442695, %v3361_v1 }
 0x78a   :  { %4732 = vpow2.f32 %v4331_v57 }
 0x78b   :  { %v4335_v16 = vmul.f32 -1.442695, %v3382_v4 }
 0x78d   :  { %4734 = vpow2.f32 %v4335_v16 }
 0x78e   :  { %4736 = vpow2.f32 %v4332_v2  ;;  %v4388_v2 = vld [vmem:[%s6210_s0 + $0x5c] sm:$0xf] }
 0x794   :  { %v4733_v52 = vpop.eup %4732 }
 0x795   :  { %v3358_v28 = vadd.f32 1.0, %v4733_v52 }
 0x797   :  { %4738 = vrcp.f32 %v3358_v28  ;;  %v4735_v26 = vpop.eup %4734  ;;  %v3827_v28 = vunpack.c.l.bf16 %v4388_v2 }
 0x798   :  { %v3386_v55 = vadd.f32 1.0, %v4735_v26  ;;  %v4737_v42 = vpop.eup %4736 }
 0x799   :  { %v3365_v21 = vadd.f32 1.0, %v4737_v42 }
 0x79a   :  { %4740 = vrcp.f32 %v3386_v55 }
 0x7a1   :  { %v4739_v47 = vpop.eup %4738 }
 0x7a2   :  { %v3369_v37 = vmul.f32 %v4739_v47, %v3368_v46 }
 0x7a4   :  { %v3370_v48 = vadd.f32 %v3369_v37, %v3353_v45  ;;  %v4741_v22 = vpop.eup %4740 }
 0x7a5   :  { %v3340_v25 = vpop.f32.mrb[40].mxu0 }
 0x7a6   :  { %4742 = vtanh.f32 %v3370_v48  ;;  %v3341_v54 = vpop.f32.mrb[41].mxu0 }
 0x7a7   :  { %v3342_v50 = vpop.f32.mrb[42].mxu0  ;;  %4744 = vrcp.f32 %v3365_v21 }
 0x7a8   :  { %v3389_v33 = vadd.f32 %v3380_v24, %v3342_v50  ;;  %v3344_v31 = vpop.f32.mrb[43].mxu0 }
 0x7a9   :  { %v3396_v3 = vadd.f32 %v5741_v39, %v3344_v31 }
 0x7aa   :  { %v4336_v27 = vmul.f32 -1.442695, %v3389_v33 }
 0x7ab   :  { %v3397_v29 = vmul.f32 %v4741_v22, %v3396_v3 }
 0x7ac   :  { %4746 = vpow2.f32 %v4336_v27 }
 0x7ad   :  { %v3398_v40 = vadd.f32 %v3397_v29, %v3381_v20 }
 0x7af   :  { %4748 = vtanh.f32 %v3398_v40 }
 0x7b0   :  { %v4743_v19 = vpop.eup %4742 }
 0x7b1   :  { %v3372_v17 = vsub.f32 %v6001_v30, %v4743_v19  ;;  %v4745_v5 = vpop.eup %4744 }
 0x7b3   :  { %v3373_v8 = vmul.f32 %v4745_v5, %v3372_v17 }
 0x7b5   :  { %v6154_v9 = vadd.f32 %v4743_v19, %v3373_v8 }
 0x7b6   :  { %v4747_v32 = vpop.eup %4746 }
 0x7b7   :  { %v3393_v63 = vadd.f32 1.0, %v4747_v32  ;;  %v3403_v15 = vpack.c.bf16 %v6154_v9, %v6154_v9 }
 0x7b9   :  { %4750 = vrcp.f32 %v3393_v63  ;;  %4337 = vst [vmem:[%s6214_s5 + $0x18] sm:$0xf] %v3403_v15  ;;  %v4749_v35 = vpop.eup %4748 }
 0x7ba   :  { %v3400_v23 = vsub.f32 %v6009_v49, %v4749_v35 }
 0x7c3   :  { %v4751_v62 = vpop.eup %4750 }
 0x7c4   :  { %v3401_v30 = vmul.f32 %v4751_v62, %v3400_v23 }
 0x7c6   :  { %v6162_v59 = vadd.f32 %v4749_v35, %v3401_v30 }
 0x7c8   :  { %v3406_v10 = vpack.c.bf16 %v6162_v59, %v6162_v59  ;;  %v3409_v57 = vpack.c.bf16 %v6162_v59, %v6154_v9 }
 0x7ca   :  { %4338 = vst [vmem:[%s6215_s6 + $0x4] sm:$0xf] %v3406_v10  ;;  %3731 = vmatmul.mubr.bf16.vlgmr.msra.gmra.mrb[40].mxu1 %v3409_v57  ;;  %3772 = vmatmul.mubr.bf16.vlgmr.msra.gmra.mrb[44].mxu0 %v3409_v57 }
 0x7cb   :  { %3781 = vmatpush1.bf16.msra.mxu1 %v6014_v36  ;;  %3812 = vmatprep.mubr.bf16.mxu1 %v6236_v53  ;;  %v4387_v53 = vld [vmem:[%s6210_s0 + $0x54] sm:$0xff]  ;;  %v3851_v36 = vld [vmem:[%s6211_s1] sm:$0xff] }
 0x7cc   :  { %3782 = vmatprep.subr.bf16.mxu1 %v6023_v43  ;;  %v3825_v49 = vunpack.c.l.bf16 %v4387_v53  ;;  %v3854_v47 = vunpack.c.h.bf16 %v3851_v36 }
 0x7cf   :  { %3783 = vmatpush1.bf16.msra.mxu1 %v6032_v56 }
 0x7d0   :  { %3784 = vmatprep.subr.bf16.mxu1 %v6039_v38  ;;  %v3853_v38 = vunpack.c.l.bf16 %v3851_v36 }
 0x7d3   :  { %3785 = vmatpush1.bf16.msra.mxu1 %v6048_v44 }
 0x7d4   :  { %3786 = vmatprep.subr.bf16.mxu1 %v6054_v41 }
 0x7d7   :  { %3787 = vmatpush1.bf16.msra.mxu1 %v6062_v51 }
 0x7d8   :  { %3788 = vmatprep.subr.bf16.mxu1 %v6068_v6 }
 0x7db   :  { %3789 = vmatpush1.bf16.msra.mxu1 %v6076_v7 }
 0x7dc   :  { %3790 = vmatprep.subr.bf16.mxu1 %v6082_v11 }
 0x7df   :  { %3791 = vmatpush1.bf16.msra.mxu1 %v6090_v12 }
 0x7e0   :  { %3792 = vmatprep.subr.bf16.mxu1 %v6096_v13 }
 0x7e3   :  { %3793 = vmatpush1.bf16.msra.mxu1 %v6104_v14 }
 0x7e4   :  { %3794 = vmatprep.subr.bf16.mxu1 %v6110_v0  ;;  %v3826_v0 = vunpack.c.h.bf16 %v4387_v53 }
 0x7e7   :  { %3795 = vmatpush1.bf16.msra.mxu1 %v6118_v60 }
 0x7ea   :  { %3813 = vmatmul.mubr.bf16.vlgmr.msra.gmra.mrb[44].mxu1 %v3409_v57 }
 0x89d   :  { %v3732_v43 = vpop.f32.mrb[40].mxu1  ;;  %v3773_v56 = vpop.f32.mrb[44].mxu0 }
 0x89e   :  { %v3828_v44 = vadd.f32 %v3825_v49, %v3732_v43  ;;  %v3734_v41 = vpop.f32.mrb[41].mxu1  ;;  %v3775_v51 = vpop.f32.mrb[45].mxu0  ;;  %v3842_v26 = vadd.f32 %v5735_v61, %v3773_v56  ;;  %v3852_v61 = vld [vmem:[%s6211_s1 + $0x8] sm:$0xf] }
 0x89f   :  { %v3736_v6 = vpop.f32.mrb[42].mxu1  ;;  %v3776_v7 = vpop.f32.mrb[46].mxu0  ;;  %v3835_v58 = vadd.f32 %v3826_v0, %v3734_v41  ;;  %v3855_v3 = vunpack.c.l.bf16 %v3852_v61 }
 0x8a0   :  { %v4389_v11 = vmul.f32 -1.442695, %v3828_v44  ;;  %v3737_v12 = vpop.f32.mrb[43].mxu1  ;;  %v3777_v13 = vpop.f32.mrb[47].mxu0 }
 0x8a1   :  { %v3856_v14 = vadd.f32 %v3853_v38, %v3777_v13  ;;  %v4390_v18 = vmul.f32 -1.442695, %v3835_v58 }
 0x8a2   :  { %4752 = vpow2.f32 %v4389_v11 }
 0x8a3   :  { %v4391_v60 = vmul.f32 -1.442695, %v3856_v14 }
 0x8a5   :  { %4754 = vpow2.f32 %v4391_v60 }
 0x8a6   :  { %4756 = vpow2.f32 %v4390_v18 }
 0x8ac   :  { %v4753_v4 = vpop.eup %4752 }
 0x8ad   :  { %v3832_v34 = vadd.f32 1.0, %v4753_v4 }
 0x8af   :  { %4758 = vrcp.f32 %v3832_v34  ;;  %v4755_v16 = vpop.eup %4754 }
 0x8b0   :  { %v3860_v1 = vadd.f32 1.0, %v4755_v16  ;;  %v4757_v52 = vpop.eup %4756 }
 0x8b1   :  { %v3839_v46 = vadd.f32 1.0, %v4757_v52 }
 0x8b2   :  { %4760 = vrcp.f32 %v3860_v1 }
 0x8b9   :  { %v4759_v55 = vpop.eup %4758 }
 0x8ba   :  { %v3843_v42 = vmul.f32 %v4759_v55, %v3842_v26 }
 0x8bc   :  { %v3844_v45 = vadd.f32 %v3843_v42, %v3827_v28  ;;  %v4761_v50 = vpop.eup %4760 }
 0x8bd   :  { %v3814_v37 = vpop.f32.mrb[44].mxu1 }
 0x8be   :  { %4762 = vtanh.f32 %v3844_v45  ;;  %v3815_v48 = vpop.f32.mrb[45].mxu1 }
 0x8bf   :  { %v3816_v21 = vpop.f32.mrb[46].mxu1  ;;  %4764 = vrcp.f32 %v3839_v46 }
 0x8c0   :  { %v3863_v24 = vadd.f32 %v3854_v47, %v3816_v21  ;;  %v3818_v25 = vpop.f32.mrb[47].mxu1 }
 0x8c1   :  { %v3870_v54 = vadd.f32 %v5741_v39, %v3818_v25 }
 0x8c2   :  { %v4392_v33 = vmul.f32 -1.442695, %v3863_v24 }
 0x8c3   :  { %v3871_v31 = vmul.f32 %v4761_v50, %v3870_v54 }
 0x8c4   :  { %4766 = vpow2.f32 %v4392_v33 }
 0x8c5   :  { %v3872_v29 = vadd.f32 %v3871_v31, %v3855_v3 }
 0x8c7   :  { %4768 = vtanh.f32 %v3872_v29 }
 0x8c8   :  { %v4763_v22 = vpop.eup %4762 }
 0x8c9   :  { %v3846_v27 = vsub.f32 %v6154_v9, %v4763_v22  ;;  %v4765_v20 = vpop.eup %4764 }
 0x8cb   :  { %v3847_v19 = vmul.f32 %v4765_v20, %v3846_v27 }
 0x8cd   :  { %v3848_v40 = vadd.f32 %v4763_v22, %v3847_v19 }
 0x8ce   :  { %v4767_v17 = vpop.eup %4766 }
 0x8cf   :  { %v3877_v5 = vpack.c.bf16 %v3848_v40, %v3848_v40  ;;  %v3867_v39 = vadd.f32 1.0, %v4767_v17 }
 0x8d1   :  { %4393 = vst [vmem:[%s6214_s5 + $0x1c] sm:$0xf] %v3877_v5  ;;  %4770 = vrcp.f32 %v3867_v39  ;;  %v4769_v8 = vpop.eup %4768 }
 0x8d2   :  { %v3874_v32 = vsub.f32 %v6162_v59, %v4769_v8 }
 0x8db   :  { %v4771_v63 = vpop.eup %4770 }
 0x8dc   :  { %v3875_v15 = vmul.f32 %v4771_v63, %v3874_v32 }
 0x8de   :  { %v3876_v35 = vadd.f32 %v4769_v8, %v3875_v15 }
 0x8e0   :  { %v3880_v9 = vpack.c.bf16 %v3876_v35, %v3876_v35 }
 0x8e2   :  { %3881 = vst [vmem:[%s6215_s6] sm:$0xf] %v3880_v9 }

</bundles_post_ra>
